<compile_context>
chip_gen: v5e
topology: v5e:2x2
jax: 0.10.0
libtpu: 0.0.40
codegen_flags: <defaults>
</compile_context>

<pallas_src>
import functools

import numpy as np
import jax
import jax.numpy as jnp
from jax.experimental import pallas as pl
from jax.experimental.pallas import tpu as pltpu


# ---------------------------------------------------------------------------
# Host-side prep (BN folding, weight re-layout, upsample matrix)
# ---------------------------------------------------------------------------
def bn_fold(bn, eps=1e-5):
    scale = bn["gamma"] / jnp.sqrt(bn["var"] + eps)
    bias = bn["beta"] - bn["mean"] * scale
    return scale, bias


def _upsample_matrix_1d(n_in, n_out):
    # bilinear, align_corners=False (what torch F.upsample/F.interpolate does now)
    o = np.arange(n_out, dtype=np.float64)
    s = np.clip((o + 0.5) * (n_in / n_out) - 0.5, 0.0, n_in - 1.0)
    i0 = np.floor(s).astype(np.int64)
    i1 = np.minimum(i0 + 1, n_in - 1)
    f = s - i0
    m = np.zeros((n_out, n_in), np.float64)
    m[np.arange(n_out), i0] += 1.0 - f
    m[np.arange(n_out), i1] += f
    return m


def _upsample_matrix_2x(h_in, w_in):
    rh = _upsample_matrix_1d(h_in, 2 * h_in)
    rw = _upsample_matrix_1d(w_in, 2 * w_in)
    m2d = np.kron(rh, rw)                       # (Hout*Wout, Hin*Win)
    return jnp.asarray(m2d.T, jnp.float32)      # (Hin*Win, Hout*Wout)


def _prep_bottleneck(p):
    planes = p["w1"].shape[0]
    s1, b1 = bn_fold(p["bn1"])
    s2, b2 = bn_fold(p["bn2"])
    s3, b3 = bn_fold(p["bn3"])
    w1 = (p["w1"][:, :, 0, 0] * s1[:, None]).astype(jnp.bfloat16)            # (planes, Cin)
    w2 = jnp.transpose(p["w2"], (0, 2, 3, 1)).reshape(planes, 9 * planes)    # (co, (ky,kx,ci))
    w2 = (w2 * s2[:, None]).astype(jnp.bfloat16)                             # (planes, 9*planes)
    w3 = (p["w3"][:, :, 0, 0] * s3[:, None]).astype(jnp.bfloat16)            # (Cout, planes)
    return (w1, b1.reshape(-1, 1).astype(jnp.float32),
            w2, b2.reshape(-1, 1).astype(jnp.float32),
            w3, b3.reshape(-1, 1).astype(jnp.float32))


def _prep_skconv(p):
    C = p["w_branch"][0].shape[0]
    # groups=32 with cin==cout==32 -> pure depthwise branches.
    assert p["M"] == 2 and p["w_branch"][0].shape[1] == 1
    wcols, bcols = [], []
    for i in range(p["M"]):
        s, b = bn_fold(p["bn_branch"][i])
        wcols.append(p["w_branch"][i][:, 0].reshape(C, 9) * s[:, None])
        bcols.append(b.reshape(C, 1))
    wdw = jnp.concatenate(wcols, axis=1).astype(jnp.float32)    # (C, M*9)
    bdw = jnp.concatenate(bcols, axis=1).astype(jnp.float32)    # (C, M)
    s1, b1 = bn_fold(p["bn_fc1"])
    wf1 = (p["w_fc1"][:, :, 0, 0] * s1[:, None]).astype(jnp.float32)   # (d, C)
    bf1 = b1.reshape(-1, 1).astype(jnp.float32)                        # (d, 1)
    wf2 = p["w_fc2"][:, :, 0, 0].astype(jnp.float32)                   # (M*C, d)
    return wdw, bdw, wf1, bf1, wf2


# ---------------------------------------------------------------------------
# In-kernel helpers (all values in (C, H*W) layout: C on sublanes, HW on lanes)
# ---------------------------------------------------------------------------
_PAD = 128  # lane-tile aligned zero extension; covers every 3x3 offset used here


def _shift_taps(x, d, W, HW, masks):
    """9 zero-padded spatially shifted copies of x (C, HW) for a 3x3 window
    with dilation d, in (ky, kx) row-major order."""
    C = x.shape[0]
    assert d * (W + 1) <= _PAD
    z = jnp.zeros((C, _PAD), x.dtype)
    xp = jnp.concatenate([z, x, z], axis=1)          # (C, HW + 2*_PAD), aligned concat
    taps = []
    for ky in (-1, 0, 1):
        for kx in (-1, 0, 1):
            off = (ky * W + kx) * d
            t = xp[:, _PAD + off:_PAD + off + HW]
            if kx != 0:                               # x-edge columns leak across rows
                t = jnp.where(masks[(kx, d)], t, 0.0)
            taps.append(t)
    return taps


def _bottleneck(x, w1, b1, w2, b2, w3, b3, skip, W, HW, masks):
    # conv1 (1x1) + bn + relu
    y = jnp.dot(w1, x.astype(jnp.bfloat16), preferred_element_type=jnp.float32)
    y = jnp.maximum(y + b1, 0.0)
    # conv2 (3x3, pad 1) + bn + relu: one K = 9*planes contraction over stacked taps
    taps = jnp.concatenate(_shift_taps(y, 1, W, HW, masks), axis=0)     # (9*planes, HW)
    y = jnp.dot(w2, taps.astype(jnp.bfloat16), preferred_element_type=jnp.float32)
    y = jnp.maximum(y + b2, 0.0)
    # conv3 (1x1) + bn (+ residual) + relu
    y = jnp.dot(w3, y.astype(jnp.bfloat16), preferred_element_type=jnp.float32) + b3
    if skip:
        y = y + x
    return jnp.maximum(y, 0.0)


def _dw_branch(x, wdw, bdw, i, d, W, HW, masks):
    # depthwise dilated 3x3 + bn + relu (BN scale folded into wdw)
    taps = _shift_taps(x, d, W, HW, masks)
    acc = taps[0] * wdw[:, i * 9:i * 9 + 1]
    for t in range(1, 9):
        acc = acc + taps[t] * wdw[:, i * 9 + t:i * 9 + t + 1]
    return jnp.maximum(acc + bdw[:, i:i + 1], 0.0)


def _decoder_kernel(x_ref, up_ref,
                    a_w1, a_b1, a_w2, a_b2, a_w3, a_b3,
                    c_w1, c_b1, c_w2, c_b2, c_w3, c_b3,
                    wdw_ref, bdw_ref, wf1_ref, bf1_ref, wf2_ref,
                    o_ref, *, W, HW, skip1, skip2):
    # x-edge validity masks for the shifted 3x3 windows (dilations 1 and 2)
    lane = jax.lax.broadcasted_iota(jnp.int32, (1, HW), 1)
    xx = (lane & (W - 1)) if (W & (W - 1)) == 0 else (lane % W)
    masks = {}
    for d in (1, 2):
        masks[(-1, d)] = xx >= d
        masks[(1, d)] = xx < (W - d)

    # bilinear 2x upsample as a single matmul: (Cin, HWin) @ (HWin, HW)
    x_up = jnp.dot(x_ref[0], up_ref[...], preferred_element_type=jnp.float32)

    # two fused bottleneck blocks (eval-BN folded into the weights)
    h = _bottleneck(x_up, a_w1[...], a_b1[...], a_w2[...], a_b2[...],
                    a_w3[...], a_b3[...], skip1, W, HW, masks)
    h = _bottleneck(h, c_w1[...], c_b1[...], c_w2[...], c_b2[...],
                    c_w3[...], c_b3[...], skip2, W, HW, masks)

    # SKConv: two depthwise dilated branches + squeeze/excite attention
    wdw = wdw_ref[...]
    bdw = bdw_ref[...]
    o0 = _dw_branch(h, wdw, bdw, 0, 1, W, HW, masks)
    o1 = _dw_branch(h, wdw, bdw, 1, 2, W, HW, masks)

    C = o0.shape[0]
    s = jnp.sum(o0 + o1, axis=1, keepdims=True) * (1.0 / HW)                 # GAP (C,1)
    z = jnp.dot(wf1_ref[...], s, preferred_element_type=jnp.float32) + bf1_ref[...]
    z = jnp.maximum(z, 0.0)                                                  # (d, 1)
    logits = jnp.dot(wf2_ref[...], z, preferred_element_type=jnp.float32)    # (2C, 1)
    a0 = 1.0 / (1.0 + jnp.exp(logits[C:2 * C] - logits[0:C]))                # softmax(M=2)
    o_ref[0] = o0 * a0 + o1 * (1.0 - a0)                                     # lane-dense store


# ---------------------------------------------------------------------------
# Wrapper: one pallas_call for the whole decoder block (NCHW in / NCHW out)
# ---------------------------------------------------------------------------
def decoder_bottleneck_forward(params, x, e=None):
    if e is not None:
        # TODO(synk): optional skip input `e` (channel concat after the 2x
        # upsample) is not wired into the fused kernel; only e=None supported.
        raise NotImplementedError("fused decoder kernel only supports e=None")
    N, Cin, Hin, Win = x.shape
    Hout, Wout = 2 * Hin, 2 * Win
    HW = Hout * Wout

    up_mat = _upsample_matrix_2x(Hin, Win)                     # (Hin*Win, HW)
    b1p = _prep_bottleneck(params["block1"])
    b2p = _prep_bottleneck(params["block2"])
    skp = _prep_skconv(params["skconv"])
    Cout = params["block2"]["w3"].shape[0]

    x_in = x.reshape(N, Cin, Hin * Win)                        # NCHW, layout-free reshape

    kern = functools.partial(
        _decoder_kernel, W=Wout, HW=HW,
        skip1=bool(params["block1"]["is_skip"]),
        skip2=bool(params["block2"]["is_skip"]))

    weights = (up_mat,) + b1p + b2p + skp                      # all 2D arrays
    in_specs = [pl.BlockSpec((1, Cin, Hin * Win), lambda n: (n, 0, 0))]
    in_specs += [pl.BlockSpec(w.shape, lambda n: (0, 0)) for w in weights]

    out = pl.pallas_call(
        kern,
        out_shape=jax.ShapeDtypeStruct((N, Cout, HW), jnp.float32),
        grid=(N,),
        in_specs=in_specs,
        out_specs=pl.BlockSpec((1, Cout, HW), lambda n: (n, 0, 0)),
        compiler_params=pltpu.CompilerParams(
            # one image per grid step: v7x's two TCs each take one; on v5e/v6e
            # this is a short serial loop (could be batch-folded there).
            dimension_semantics=("parallel",),
            vmem_limit_bytes=32 * 1024 * 1024,
        ),
    )(x_in, *weights)
    return out.reshape(N, Cout, Hout, Wout)


# ---------------------------------------------------------------------------
# Pure-JAX NCHW reference (for a sanity check against the fused kernel)
# ---------------------------------------------------------------------------
def _conv_ref(x, w, padding=0, dilation=1, groups=1):
    return jax.lax.conv_general_dilated(
        x, w, window_strides=(1, 1),
        padding=[(padding, padding), (padding, padding)],
        rhs_dilation=(dilation, dilation),
        dimension_numbers=("NCHW", "OIHW", "NCHW"),
        feature_group_count=groups)


def _bn_ref(x, bn, eps=1e-5):
    s = bn["gamma"] / jnp.sqrt(bn["var"] + eps)
    b = bn["beta"] - bn["mean"] * s
    return x * s[None, :, None, None] + b[None, :, None, None]


def _upsample_ref(x):
    n, c, h, w = x.shape

    def idx(size):
        o = jnp.arange(2 * size, dtype=jnp.float32)
        s = jnp.clip((o + 0.5) * 0.5 - 0.5, 0.0, size - 1.0)
        i0 = jnp.floor(s).astype(jnp.int32)
        i1 = jnp.minimum(i0 + 1, size - 1)
        return i0, i1, s - i0

    y0, y1, fy = idx(h)
    x0, x1, fx = idx(w)
    t = (x[:, :, y0, :] * (1.0 - fy)[None, None, :, None]
         + x[:, :, y1, :] * fy[None, None, :, None])
    return (t[:, :, :, x0] * (1.0 - fx)[None, None, None, :]
            + t[:, :, :, x1] * fx[None, None, None, :])


def _bottleneck_ref(x, p):
    y = jax.nn.relu(_bn_ref(_conv_ref(x, p["w1"]), p["bn1"]))
    y = jax.nn.relu(_bn_ref(_conv_ref(y, p["w2"], padding=1), p["bn2"]))
    y = _bn_ref(_conv_ref(y, p["w3"]), p["bn3"])
    if p["is_skip"]:
        y = y + x
    return jax.nn.relu(y)


def _skconv_ref(x, p):
    n = x.shape[0]
    C = p["w_branch"][0].shape[0]
    outs = []
    for i in range(p["M"]):
        y = _conv_ref(x, p["w_branch"][i], padding=1 + i, dilation=1 + i, groups=32)
        outs.append(jax.nn.relu(_bn_ref(y, p["bn_branch"][i])))
    U = outs[0] + outs[1]
    s = jnp.mean(U, axis=(2, 3), keepdims=True)
    z = jax.nn.relu(_bn_ref(_conv_ref(s, p["w_fc1"]), p["bn_fc1"]))
    ab = _conv_ref(z, p["w_fc2"]).reshape(n, p["M"], C, 1, 1)
    ab = jax.nn.softmax(ab, axis=1)
    return outs[0] * ab[:, 0] + outs[1] * ab[:, 1]


def decoder_bottleneck_reference(params, x, e=None):
    x = _upsample_ref(x)
    if e is not None:
        x = jnp.concatenate([x, e], axis=1)
    x = _bottleneck_ref(x, params["block1"])
    x = _bottleneck_ref(x, params["block2"])
    return _skconv_ref(x, params["skconv"])


# ---------------------------------------------------------------------------
# Deterministic synthetic parameters (eval-mode BN stats)
# ---------------------------------------------------------------------------
def init_bn(key, c):
    k1, k2, k3, k4 = jax.random.split(key, 4)
    return {
        "gamma": 1.0 + 0.1 * jax.random.normal(k1, (c,), jnp.float32),
        "beta": 0.1 * jax.random.normal(k2, (c,), jnp.float32),
        "mean": 0.1 * jax.random.normal(k3, (c,), jnp.float32),
        "var": jax.random.uniform(k4, (c,), jnp.float32, 0.5, 1.5),
    }


def init_bottleneck(key, inplanes, outplanes):
    planes = inplanes // 4
    ks = jax.random.split(key, 6)
    return {
        "w1": 0.1 * jax.random.normal(ks[0], (planes, inplanes, 1, 1), jnp.float32),
        "bn1": init_bn(ks[1], planes),
        "w2": 0.1 * jax.random.normal(ks[2], (planes, planes, 3, 3), jnp.float32),
        "bn2": init_bn(ks[3], planes),
        "w3": 0.1 * jax.random.normal(ks[4], (outplanes, planes, 1, 1), jnp.float32),
        "bn3": init_bn(ks[5], outplanes),
        "is_skip": inplanes == outplanes,
    }


def init_skconv(key, cin, cout, M=2, r=16, L=32):
    d = max(cin // r, L)
    ks = jax.random.split(key, 2 * M + 3)
    p = {"M": M, "w_branch": [], "bn_branch": []}
    for i in range(M):
        p["w_branch"].append(
            0.1 * jax.random.normal(ks[2 * i], (cout, cin // 32, 3, 3), jnp.float32))
        p["bn_branch"].append(init_bn(ks[2 * i + 1], cout))
    p["w_fc1"] = 0.1 * jax.random.normal(ks[2 * M], (d, cout, 1, 1), jnp.float32)
    p["bn_fc1"] = init_bn(ks[2 * M + 1], d)
    p["w_fc2"] = 0.1 * jax.random.normal(ks[2 * M + 2], (cout * M, d, 1, 1), jnp.float32)
    return p


def init_decoder_params(key, in_channels, channels, out_channels):
    k1, k2, k3 = jax.random.split(key, 3)
    return {
        "block1": init_bottleneck(k1, in_channels, channels),
        "block2": init_bottleneck(k2, channels, out_channels),
        "skconv": init_skconv(k3, out_channels, out_channels),
    }


if __name__ == "__main__":
    # SKConv uses groups=32 -> out_channels multiple of 32; Bottleneck needs
    # in_channels divisible by 4.
    in_channels, channels, out_channels = 64, 64, 32
    N, H, W = 2, 8, 8

    key = jax.random.PRNGKey(0)
    k_x, k_p = jax.random.split(key)
    x = jax.random.normal(k_x, (N, in_channels, H, W), dtype=jnp.float32)
    params = init_decoder_params(k_p, in_channels, channels, out_channels)

    y = jax.block_until_ready(decoder_bottleneck_forward(params, x))   # e=None path
    assert y.shape == (N, out_channels, 2 * H, 2 * W), y.shape
    assert bool(jnp.all(jnp.isfinite(y)))

    # sanity check vs pure-JAX reference (tolerance covers bf16 MXU operands)
    y_ref = decoder_bottleneck_reference(params, x)
    ok = jnp.all(jnp.abs(y - y_ref) <= 0.03 + 0.05 * jnp.abs(y_ref))
    assert bool(ok), float(jnp.max(jnp.abs(y - y_ref)))

    print("KERNEL_OK")
</pallas_src>

<mosaic_0001>
module attributes {stable_mosaic.version = 11 : i64} {
  func.func @_decoder_kernel(%arg0: i32, %arg1: memref<1x64x64xf32, #tpu.memory_space<vmem>>, %arg2: memref<64x256xf32, #tpu.memory_space<vmem>>, %arg3: memref<16x64xbf16, #tpu.memory_space<vmem>>, %arg4: memref<16x1xf32, #tpu.memory_space<vmem>>, %arg5: memref<16x144xbf16, #tpu.memory_space<vmem>>, %arg6: memref<16x1xf32, #tpu.memory_space<vmem>>, %arg7: memref<64x16xbf16, #tpu.memory_space<vmem>>, %arg8: memref<64x1xf32, #tpu.memory_space<vmem>>, %arg9: memref<16x64xbf16, #tpu.memory_space<vmem>>, %arg10: memref<16x1xf32, #tpu.memory_space<vmem>>, %arg11: memref<16x144xbf16, #tpu.memory_space<vmem>>, %arg12: memref<16x1xf32, #tpu.memory_space<vmem>>, %arg13: memref<32x16xbf16, #tpu.memory_space<vmem>>, %arg14: memref<32x1xf32, #tpu.memory_space<vmem>>, %arg15: memref<32x18xf32, #tpu.memory_space<vmem>>, %arg16: memref<32x2xf32, #tpu.memory_space<vmem>>, %arg17: memref<32x32xf32, #tpu.memory_space<vmem>>, %arg18: memref<32x1xf32, #tpu.memory_space<vmem>>, %arg19: memref<64x32xf32, #tpu.memory_space<vmem>>, %arg20: memref<1x32x256xf32, #tpu.memory_space<vmem>>) attributes {dimension_semantics = [#tpu.dimension_semantics<parallel>], iteration_bounds = array<i64: 2>, scalar_prefetch = 0 : i64, scratch_operands = 0 : i64, tpu.core_type = #tpu.core_type<tc>, window_params = [{transform_indices = @transform_0, window_bounds = array<i64: 1, 64, 64>}, {pipeline_mode = #tpu.pipeline_mode<synchronous>, transform_indices = @transform_1, window_bounds = array<i64: 64, 256>}, {pipeline_mode = #tpu.pipeline_mode<synchronous>, transform_indices = @transform_2, window_bounds = array<i64: 16, 64>}, {pipeline_mode = #tpu.pipeline_mode<synchronous>, transform_indices = @transform_3, window_bounds = array<i64: 16, 1>}, {pipeline_mode = #tpu.pipeline_mode<synchronous>, transform_indices = @transform_4, window_bounds = array<i64: 16, 144>}, {pipeline_mode = #tpu.pipeline_mode<synchronous>, transform_indices = @transform_5, window_bounds = array<i64: 16, 1>}, {pipeline_mode = #tpu.pipeline_mode<synchronous>, transform_indices = @transform_6, window_bounds = array<i64: 64, 16>}, {pipeline_mode = #tpu.pipeline_mode<synchronous>, transform_indices = @transform_7, window_bounds = array<i64: 64, 1>}, {pipeline_mode = #tpu.pipeline_mode<synchronous>, transform_indices = @transform_8, window_bounds = array<i64: 16, 64>}, {pipeline_mode = #tpu.pipeline_mode<synchronous>, transform_indices = @transform_9, window_bounds = array<i64: 16, 1>}, {pipeline_mode = #tpu.pipeline_mode<synchronous>, transform_indices = @transform_10, window_bounds = array<i64: 16, 144>}, {pipeline_mode = #tpu.pipeline_mode<synchronous>, transform_indices = @transform_11, window_bounds = array<i64: 16, 1>}, {pipeline_mode = #tpu.pipeline_mode<synchronous>, transform_indices = @transform_12, window_bounds = array<i64: 32, 16>}, {pipeline_mode = #tpu.pipeline_mode<synchronous>, transform_indices = @transform_13, window_bounds = array<i64: 32, 1>}, {pipeline_mode = #tpu.pipeline_mode<synchronous>, transform_indices = @transform_14, window_bounds = array<i64: 32, 18>}, {pipeline_mode = #tpu.pipeline_mode<synchronous>, transform_indices = @transform_15, window_bounds = array<i64: 32, 2>}, {pipeline_mode = #tpu.pipeline_mode<synchronous>, transform_indices = @transform_16, window_bounds = array<i64: 32, 32>}, {pipeline_mode = #tpu.pipeline_mode<synchronous>, transform_indices = @transform_17, window_bounds = array<i64: 32, 1>}, {pipeline_mode = #tpu.pipeline_mode<synchronous>, transform_indices = @transform_18, window_bounds = array<i64: 64, 32>}, {transform_indices = @transform_19, window_bounds = array<i64: 1, 32, 256>}]} {
    %0 = tpu.iota {dimensions = array<i32: 1>} : vector<1x256xi32>
    %c15_i32 = arith.constant 15 : i32
    %1 = vector.broadcast %c15_i32 : i32 to vector<1x256xi32>
    %2 = arith.andi %0, %1 : vector<1x256xi32>
    %c1_i32 = arith.constant 1 : i32
    %3 = vector.broadcast %c1_i32 : i32 to vector<1x256xi32>
    %4 = arith.cmpi sge, %2, %3 : vector<1x256xi32>
    %c15_i32_0 = arith.constant 15 : i32
    %5 = vector.broadcast %c15_i32_0 : i32 to vector<1x256xi32>
    %6 = arith.cmpi slt, %2, %5 : vector<1x256xi32>
    %c2_i32 = arith.constant 2 : i32
    %7 = vector.broadcast %c2_i32 : i32 to vector<1x256xi32>
    %8 = arith.cmpi sge, %2, %7 : vector<1x256xi32>
    %c14_i32 = arith.constant 14 : i32
    %9 = vector.broadcast %c14_i32 : i32 to vector<1x256xi32>
    %10 = arith.cmpi slt, %2, %9 : vector<1x256xi32>
    %c0 = arith.constant 0 : index
    %c0_1 = arith.constant 0 : index
    %c0_2 = arith.constant 0 : index
    %11 = vector.load %arg1[%c0, %c0_1, %c0_2] : memref<1x64x64xf32, #tpu.memory_space<vmem>>, vector<1x64x64xf32>
    %12 = vector.shape_cast %11 : vector<1x64x64xf32> to vector<64x64xf32>
    %c0_3 = arith.constant 0 : index
    %c0_4 = arith.constant 0 : index
    %13 = vector.load %arg2[%c0_3, %c0_4] : memref<64x256xf32, #tpu.memory_space<vmem>>, vector<64x256xf32>
    %cst = arith.constant dense<0.000000e+00> : vector<64x256xf32>
    %14 = tpu.matmul %12, %13, %cst {dimension_numbers = #tpu.dot_dimension_numbers<[1], [0], [0], [1], [0, 0, 1, 1], [], []>} : vector<64x64xf32>, vector<64x256xf32>, vector<64x256xf32> -> vector<64x256xf32>
    %c0_5 = arith.constant 0 : index
    %c0_6 = arith.constant 0 : index
    %15 = vector.load %arg3[%c0_5, %c0_6] : memref<16x64xbf16, #tpu.memory_space<vmem>>, vector<16x64xbf16>
    %c0_7 = arith.constant 0 : index
    %c0_8 = arith.constant 0 : index
    %16 = vector.load %arg4[%c0_7, %c0_8] : memref<16x1xf32, #tpu.memory_space<vmem>>, vector<16x1xf32>
    %c0_9 = arith.constant 0 : index
    %c0_10 = arith.constant 0 : index
    %17 = vector.load %arg5[%c0_9, %c0_10] : memref<16x144xbf16, #tpu.memory_space<vmem>>, vector<16x144xbf16>
    %c0_11 = arith.constant 0 : index
    %c0_12 = arith.constant 0 : index
    %18 = vector.load %arg6[%c0_11, %c0_12] : memref<16x1xf32, #tpu.memory_space<vmem>>, vector<16x1xf32>
    %c0_13 = arith.constant 0 : index
    %c0_14 = arith.constant 0 : index
    %19 = vector.load %arg7[%c0_13, %c0_14] : memref<64x16xbf16, #tpu.memory_space<vmem>>, vector<64x16xbf16>
    %c0_15 = arith.constant 0 : index
    %c0_16 = arith.constant 0 : index
    %20 = vector.load %arg8[%c0_15, %c0_16] : memref<64x1xf32, #tpu.memory_space<vmem>>, vector<64x1xf32>
    %21 = arith.truncf %14 : vector<64x256xf32> to vector<64x256xbf16>
    %cst_17 = arith.constant dense<0.000000e+00> : vector<16x256xf32>
    %22 = tpu.matmul %15, %21, %cst_17 {dimension_numbers = #tpu.dot_dimension_numbers<[1], [0], [0], [1], [0, 0, 1, 1], [], []>} : vector<16x64xbf16>, vector<64x256xbf16>, vector<16x256xf32> -> vector<16x256xf32>
    %23 = vector.broadcast %16 : vector<16x1xf32> to vector<16x256xf32>
    %24 = arith.addf %22, %23 : vector<16x256xf32>
    %cst_18 = arith.constant 0.000000e+00 : f32
    %25 = vector.broadcast %cst_18 : f32 to vector<16x256xf32>
    %26 = arith.maximumf %24, %25 : vector<16x256xf32>
    %cst_19 = arith.constant 0.000000e+00 : f32
    %27 = vector.broadcast %cst_19 : f32 to vector<16x128xf32>
    %28 = tpu.concatenate %27, %26, %27 in 1 : vector<16x128xf32>, vector<16x256xf32>, vector<16x128xf32> -> vector<16x512xf32>
    %29 = vector.extract_strided_slice %28 {offsets = [0, 111], sizes = [16, 256], strides = [1, 1]} : vector<16x512xf32> to vector<16x256xf32>
    %cst_20 = arith.constant 0.000000e+00 : f32
    %30 = vector.shape_cast %4 : vector<1x256xi1> to vector<1x256xi1>
    %31 = vector.broadcast %30 : vector<1x256xi1> to vector<16x256xi1>
    %32 = vector.broadcast %cst_20 : f32 to vector<16x256xf32>
    %33 = arith.select %31, %29, %32 : vector<16x256xi1>, vector<16x256xf32>
    %34 = vector.extract_strided_slice %28 {offsets = [0, 112], sizes = [16, 256], strides = [1, 1]} : vector<16x512xf32> to vector<16x256xf32>
    %35 = vector.extract_strided_slice %28 {offsets = [0, 113], sizes = [16, 256], strides = [1, 1]} : vector<16x512xf32> to vector<16x256xf32>
    %cst_21 = arith.constant 0.000000e+00 : f32
    %36 = vector.shape_cast %6 : vector<1x256xi1> to vector<1x256xi1>
    %37 = vector.broadcast %36 : vector<1x256xi1> to vector<16x256xi1>
    %38 = vector.broadcast %cst_21 : f32 to vector<16x256xf32>
    %39 = arith.select %37, %35, %38 : vector<16x256xi1>, vector<16x256xf32>
    %40 = vector.extract_strided_slice %28 {offsets = [0, 127], sizes = [16, 256], strides = [1, 1]} : vector<16x512xf32> to vector<16x256xf32>
    %cst_22 = arith.constant 0.000000e+00 : f32
    %41 = vector.shape_cast %4 : vector<1x256xi1> to vector<1x256xi1>
    %42 = vector.broadcast %41 : vector<1x256xi1> to vector<16x256xi1>
    %43 = vector.broadcast %cst_22 : f32 to vector<16x256xf32>
    %44 = arith.select %42, %40, %43 : vector<16x256xi1>, vector<16x256xf32>
    %45 = vector.extract_strided_slice %28 {offsets = [0, 128], sizes = [16, 256], strides = [1, 1]} : vector<16x512xf32> to vector<16x256xf32>
    %46 = vector.extract_strided_slice %28 {offsets = [0, 129], sizes = [16, 256], strides = [1, 1]} : vector<16x512xf32> to vector<16x256xf32>
    %cst_23 = arith.constant 0.000000e+00 : f32
    %47 = vector.shape_cast %6 : vector<1x256xi1> to vector<1x256xi1>
    %48 = vector.broadcast %47 : vector<1x256xi1> to vector<16x256xi1>
    %49 = vector.broadcast %cst_23 : f32 to vector<16x256xf32>
    %50 = arith.select %48, %46, %49 : vector<16x256xi1>, vector<16x256xf32>
    %51 = vector.extract_strided_slice %28 {offsets = [0, 143], sizes = [16, 256], strides = [1, 1]} : vector<16x512xf32> to vector<16x256xf32>
    %cst_24 = arith.constant 0.000000e+00 : f32
    %52 = vector.shape_cast %4 : vector<1x256xi1> to vector<1x256xi1>
    %53 = vector.broadcast %52 : vector<1x256xi1> to vector<16x256xi1>
    %54 = vector.broadcast %cst_24 : f32 to vector<16x256xf32>
    %55 = arith.select %53, %51, %54 : vector<16x256xi1>, vector<16x256xf32>
    %56 = vector.extract_strided_slice %28 {offsets = [0, 144], sizes = [16, 256], strides = [1, 1]} : vector<16x512xf32> to vector<16x256xf32>
    %57 = vector.extract_strided_slice %28 {offsets = [0, 145], sizes = [16, 256], strides = [1, 1]} : vector<16x512xf32> to vector<16x256xf32>
    %cst_25 = arith.constant 0.000000e+00 : f32
    %58 = vector.shape_cast %6 : vector<1x256xi1> to vector<1x256xi1>
    %59 = vector.broadcast %58 : vector<1x256xi1> to vector<16x256xi1>
    %60 = vector.broadcast %cst_25 : f32 to vector<16x256xf32>
    %61 = arith.select %59, %57, %60 : vector<16x256xi1>, vector<16x256xf32>
    %62 = tpu.concatenate %33, %34, %39, %44, %45, %50, %55, %56, %61 in 0 : vector<16x256xf32>, vector<16x256xf32>, vector<16x256xf32>, vector<16x256xf32>, vector<16x256xf32>, vector<16x256xf32>, vector<16x256xf32>, vector<16x256xf32>, vector<16x256xf32> -> vector<144x256xf32>
    %63 = arith.truncf %62 : vector<144x256xf32> to vector<144x256xbf16>
    %cst_26 = arith.constant dense<0.000000e+00> : vector<16x256xf32>
    %64 = tpu.matmul %17, %63, %cst_26 {dimension_numbers = #tpu.dot_dimension_numbers<[1], [0], [0], [1], [0, 0, 1, 1], [], []>} : vector<16x144xbf16>, vector<144x256xbf16>, vector<16x256xf32> -> vector<16x256xf32>
    %65 = vector.broadcast %18 : vector<16x1xf32> to vector<16x256xf32>
    %66 = arith.addf %64, %65 : vector<16x256xf32>
    %cst_27 = arith.constant 0.000000e+00 : f32
    %67 = vector.broadcast %cst_27 : f32 to vector<16x256xf32>
    %68 = arith.maximumf %66, %67 : vector<16x256xf32>
    %69 = arith.truncf %68 : vector<16x256xf32> to vector<16x256xbf16>
    %cst_28 = arith.constant dense<0.000000e+00> : vector<64x256xf32>
    %70 = tpu.matmul %19, %69, %cst_28 {dimension_numbers = #tpu.dot_dimension_numbers<[1], [0], [0], [1], [0, 0, 1, 1], [], []>} : vector<64x16xbf16>, vector<16x256xbf16>, vector<64x256xf32> -> vector<64x256xf32>
    %71 = vector.broadcast %20 : vector<64x1xf32> to vector<64x256xf32>
    %72 = arith.addf %70, %71 : vector<64x256xf32>
    %73 = arith.addf %72, %14 : vector<64x256xf32>
    %cst_29 = arith.constant 0.000000e+00 : f32
    %74 = vector.broadcast %cst_29 : f32 to vector<64x256xf32>
    %75 = arith.maximumf %73, %74 : vector<64x256xf32>
    %c0_30 = arith.constant 0 : index
    %c0_31 = arith.constant 0 : index
    %76 = vector.load %arg9[%c0_30, %c0_31] : memref<16x64xbf16, #tpu.memory_space<vmem>>, vector<16x64xbf16>
    %c0_32 = arith.constant 0 : index
    %c0_33 = arith.constant 0 : index
    %77 = vector.load %arg10[%c0_32, %c0_33] : memref<16x1xf32, #tpu.memory_space<vmem>>, vector<16x1xf32>
    %c0_34 = arith.constant 0 : index
    %c0_35 = arith.constant 0 : index
    %78 = vector.load %arg11[%c0_34, %c0_35] : memref<16x144xbf16, #tpu.memory_space<vmem>>, vector<16x144xbf16>
    %c0_36 = arith.constant 0 : index
    %c0_37 = arith.constant 0 : index
    %79 = vector.load %arg12[%c0_36, %c0_37] : memref<16x1xf32, #tpu.memory_space<vmem>>, vector<16x1xf32>
    %c0_38 = arith.constant 0 : index
    %c0_39 = arith.constant 0 : index
    %80 = vector.load %arg13[%c0_38, %c0_39] : memref<32x16xbf16, #tpu.memory_space<vmem>>, vector<32x16xbf16>
    %c0_40 = arith.constant 0 : index
    %c0_41 = arith.constant 0 : index
    %81 = vector.load %arg14[%c0_40, %c0_41] : memref<32x1xf32, #tpu.memory_space<vmem>>, vector<32x1xf32>
    %82 = arith.truncf %75 : vector<64x256xf32> to vector<64x256xbf16>
    %cst_42 = arith.constant dense<0.000000e+00> : vector<16x256xf32>
    %83 = tpu.matmul %76, %82, %cst_42 {dimension_numbers = #tpu.dot_dimension_numbers<[1], [0], [0], [1], [0, 0, 1, 1], [], []>} : vector<16x64xbf16>, vector<64x256xbf16>, vector<16x256xf32> -> vector<16x256xf32>
    %84 = vector.broadcast %77 : vector<16x1xf32> to vector<16x256xf32>
    %85 = arith.addf %83, %84 : vector<16x256xf32>
    %cst_43 = arith.constant 0.000000e+00 : f32
    %86 = vector.broadcast %cst_43 : f32 to vector<16x256xf32>
    %87 = arith.maximumf %85, %86 : vector<16x256xf32>
    %cst_44 = arith.constant 0.000000e+00 : f32
    %88 = vector.broadcast %cst_44 : f32 to vector<16x128xf32>
    %89 = tpu.concatenate %88, %87, %88 in 1 : vector<16x128xf32>, vector<16x256xf32>, vector<16x128xf32> -> vector<16x512xf32>
    %90 = vector.extract_strided_slice %89 {offsets = [0, 111], sizes = [16, 256], strides = [1, 1]} : vector<16x512xf32> to vector<16x256xf32>
    %cst_45 = arith.constant 0.000000e+00 : f32
    %91 = vector.shape_cast %4 : vector<1x256xi1> to vector<1x256xi1>
    %92 = vector.broadcast %91 : vector<1x256xi1> to vector<16x256xi1>
    %93 = vector.broadcast %cst_45 : f32 to vector<16x256xf32>
    %94 = arith.select %92, %90, %93 : vector<16x256xi1>, vector<16x256xf32>
    %95 = vector.extract_strided_slice %89 {offsets = [0, 112], sizes = [16, 256], strides = [1, 1]} : vector<16x512xf32> to vector<16x256xf32>
    %96 = vector.extract_strided_slice %89 {offsets = [0, 113], sizes = [16, 256], strides = [1, 1]} : vector<16x512xf32> to vector<16x256xf32>
    %cst_46 = arith.constant 0.000000e+00 : f32
    %97 = vector.shape_cast %6 : vector<1x256xi1> to vector<1x256xi1>
    %98 = vector.broadcast %97 : vector<1x256xi1> to vector<16x256xi1>
    %99 = vector.broadcast %cst_46 : f32 to vector<16x256xf32>
    %100 = arith.select %98, %96, %99 : vector<16x256xi1>, vector<16x256xf32>
    %101 = vector.extract_strided_slice %89 {offsets = [0, 127], sizes = [16, 256], strides = [1, 1]} : vector<16x512xf32> to vector<16x256xf32>
    %cst_47 = arith.constant 0.000000e+00 : f32
    %102 = vector.shape_cast %4 : vector<1x256xi1> to vector<1x256xi1>
    %103 = vector.broadcast %102 : vector<1x256xi1> to vector<16x256xi1>
    %104 = vector.broadcast %cst_47 : f32 to vector<16x256xf32>
    %105 = arith.select %103, %101, %104 : vector<16x256xi1>, vector<16x256xf32>
    %106 = vector.extract_strided_slice %89 {offsets = [0, 128], sizes = [16, 256], strides = [1, 1]} : vector<16x512xf32> to vector<16x256xf32>
    %107 = vector.extract_strided_slice %89 {offsets = [0, 129], sizes = [16, 256], strides = [1, 1]} : vector<16x512xf32> to vector<16x256xf32>
    %cst_48 = arith.constant 0.000000e+00 : f32
    %108 = vector.shape_cast %6 : vector<1x256xi1> to vector<1x256xi1>
    %109 = vector.broadcast %108 : vector<1x256xi1> to vector<16x256xi1>
    %110 = vector.broadcast %cst_48 : f32 to vector<16x256xf32>
    %111 = arith.select %109, %107, %110 : vector<16x256xi1>, vector<16x256xf32>
    %112 = vector.extract_strided_slice %89 {offsets = [0, 143], sizes = [16, 256], strides = [1, 1]} : vector<16x512xf32> to vector<16x256xf32>
    %cst_49 = arith.constant 0.000000e+00 : f32
    %113 = vector.shape_cast %4 : vector<1x256xi1> to vector<1x256xi1>
    %114 = vector.broadcast %113 : vector<1x256xi1> to vector<16x256xi1>
    %115 = vector.broadcast %cst_49 : f32 to vector<16x256xf32>
    %116 = arith.select %114, %112, %115 : vector<16x256xi1>, vector<16x256xf32>
    %117 = vector.extract_strided_slice %89 {offsets = [0, 144], sizes = [16, 256], strides = [1, 1]} : vector<16x512xf32> to vector<16x256xf32>
    %118 = vector.extract_strided_slice %89 {offsets = [0, 145], sizes = [16, 256], strides = [1, 1]} : vector<16x512xf32> to vector<16x256xf32>
    %cst_50 = arith.constant 0.000000e+00 : f32
    %119 = vector.shape_cast %6 : vector<1x256xi1> to vector<1x256xi1>
    %120 = vector.broadcast %119 : vector<1x256xi1> to vector<16x256xi1>
    %121 = vector.broadcast %cst_50 : f32 to vector<16x256xf32>
    %122 = arith.select %120, %118, %121 : vector<16x256xi1>, vector<16x256xf32>
    %123 = tpu.concatenate %94, %95, %100, %105, %106, %111, %116, %117, %122 in 0 : vector<16x256xf32>, vector<16x256xf32>, vector<16x256xf32>, vector<16x256xf32>, vector<16x256xf32>, vector<16x256xf32>, vector<16x256xf32>, vector<16x256xf32>, vector<16x256xf32> -> vector<144x256xf32>
    %124 = arith.truncf %123 : vector<144x256xf32> to vector<144x256xbf16>
    %cst_51 = arith.constant dense<0.000000e+00> : vector<16x256xf32>
    %125 = tpu.matmul %78, %124, %cst_51 {dimension_numbers = #tpu.dot_dimension_numbers<[1], [0], [0], [1], [0, 0, 1, 1], [], []>} : vector<16x144xbf16>, vector<144x256xbf16>, vector<16x256xf32> -> vector<16x256xf32>
    %126 = vector.broadcast %79 : vector<16x1xf32> to vector<16x256xf32>
    %127 = arith.addf %125, %126 : vector<16x256xf32>
    %cst_52 = arith.constant 0.000000e+00 : f32
    %128 = vector.broadcast %cst_52 : f32 to vector<16x256xf32>
    %129 = arith.maximumf %127, %128 : vector<16x256xf32>
    %130 = arith.truncf %129 : vector<16x256xf32> to vector<16x256xbf16>
    %cst_53 = arith.constant dense<0.000000e+00> : vector<32x256xf32>
    %131 = tpu.matmul %80, %130, %cst_53 {dimension_numbers = #tpu.dot_dimension_numbers<[1], [0], [0], [1], [0, 0, 1, 1], [], []>} : vector<32x16xbf16>, vector<16x256xbf16>, vector<32x256xf32> -> vector<32x256xf32>
    %132 = vector.broadcast %81 : vector<32x1xf32> to vector<32x256xf32>
    %133 = arith.addf %131, %132 : vector<32x256xf32>
    %cst_54 = arith.constant 0.000000e+00 : f32
    %134 = vector.broadcast %cst_54 : f32 to vector<32x256xf32>
    %135 = arith.maximumf %133, %134 : vector<32x256xf32>
    %c0_55 = arith.constant 0 : index
    %c0_56 = arith.constant 0 : index
    %136 = vector.load %arg15[%c0_55, %c0_56] : memref<32x18xf32, #tpu.memory_space<vmem>>, vector<32x18xf32>
    %c0_57 = arith.constant 0 : index
    %c0_58 = arith.constant 0 : index
    %137 = vector.load %arg16[%c0_57, %c0_58] : memref<32x2xf32, #tpu.memory_space<vmem>>, vector<32x2xf32>
    %cst_59 = arith.constant 0.000000e+00 : f32
    %138 = vector.broadcast %cst_59 : f32 to vector<32x128xf32>
    %139 = tpu.concatenate %138, %135, %138 in 1 : vector<32x128xf32>, vector<32x256xf32>, vector<32x128xf32> -> vector<32x512xf32>
    %140 = vector.extract_strided_slice %139 {offsets = [0, 111], sizes = [32, 256], strides = [1, 1]} : vector<32x512xf32> to vector<32x256xf32>
    %cst_60 = arith.constant 0.000000e+00 : f32
    %141 = vector.shape_cast %4 : vector<1x256xi1> to vector<1x256xi1>
    %142 = vector.broadcast %141 : vector<1x256xi1> to vector<32x256xi1>
    %143 = vector.broadcast %cst_60 : f32 to vector<32x256xf32>
    %144 = arith.select %142, %140, %143 : vector<32x256xi1>, vector<32x256xf32>
    %145 = vector.extract_strided_slice %139 {offsets = [0, 112], sizes = [32, 256], strides = [1, 1]} : vector<32x512xf32> to vector<32x256xf32>
    %146 = vector.extract_strided_slice %139 {offsets = [0, 113], sizes = [32, 256], strides = [1, 1]} : vector<32x512xf32> to vector<32x256xf32>
    %cst_61 = arith.constant 0.000000e+00 : f32
    %147 = vector.shape_cast %6 : vector<1x256xi1> to vector<1x256xi1>
    %148 = vector.broadcast %147 : vector<1x256xi1> to vector<32x256xi1>
    %149 = vector.broadcast %cst_61 : f32 to vector<32x256xf32>
    %150 = arith.select %148, %146, %149 : vector<32x256xi1>, vector<32x256xf32>
    %151 = vector.extract_strided_slice %139 {offsets = [0, 127], sizes = [32, 256], strides = [1, 1]} : vector<32x512xf32> to vector<32x256xf32>
    %cst_62 = arith.constant 0.000000e+00 : f32
    %152 = vector.shape_cast %4 : vector<1x256xi1> to vector<1x256xi1>
    %153 = vector.broadcast %152 : vector<1x256xi1> to vector<32x256xi1>
    %154 = vector.broadcast %cst_62 : f32 to vector<32x256xf32>
    %155 = arith.select %153, %151, %154 : vector<32x256xi1>, vector<32x256xf32>
    %156 = vector.extract_strided_slice %139 {offsets = [0, 128], sizes = [32, 256], strides = [1, 1]} : vector<32x512xf32> to vector<32x256xf32>
    %157 = vector.extract_strided_slice %139 {offsets = [0, 129], sizes = [32, 256], strides = [1, 1]} : vector<32x512xf32> to vector<32x256xf32>
    %cst_63 = arith.constant 0.000000e+00 : f32
    %158 = vector.shape_cast %6 : vector<1x256xi1> to vector<1x256xi1>
    %159 = vector.broadcast %158 : vector<1x256xi1> to vector<32x256xi1>
    %160 = vector.broadcast %cst_63 : f32 to vector<32x256xf32>
    %161 = arith.select %159, %157, %160 : vector<32x256xi1>, vector<32x256xf32>
    %162 = vector.extract_strided_slice %139 {offsets = [0, 143], sizes = [32, 256], strides = [1, 1]} : vector<32x512xf32> to vector<32x256xf32>
    %cst_64 = arith.constant 0.000000e+00 : f32
    %163 = vector.shape_cast %4 : vector<1x256xi1> to vector<1x256xi1>
    %164 = vector.broadcast %163 : vector<1x256xi1> to vector<32x256xi1>
    %165 = vector.broadcast %cst_64 : f32 to vector<32x256xf32>
    %166 = arith.select %164, %162, %165 : vector<32x256xi1>, vector<32x256xf32>
    %167 = vector.extract_strided_slice %139 {offsets = [0, 144], sizes = [32, 256], strides = [1, 1]} : vector<32x512xf32> to vector<32x256xf32>
    %168 = vector.extract_strided_slice %139 {offsets = [0, 145], sizes = [32, 256], strides = [1, 1]} : vector<32x512xf32> to vector<32x256xf32>
    %cst_65 = arith.constant 0.000000e+00 : f32
    %169 = vector.shape_cast %6 : vector<1x256xi1> to vector<1x256xi1>
    %170 = vector.broadcast %169 : vector<1x256xi1> to vector<32x256xi1>
    %171 = vector.broadcast %cst_65 : f32 to vector<32x256xf32>
    %172 = arith.select %170, %168, %171 : vector<32x256xi1>, vector<32x256xf32>
    %173 = vector.extract_strided_slice %136 {offsets = [0, 0], sizes = [32, 1], strides = [1, 1]} : vector<32x18xf32> to vector<32x1xf32>
    %174 = vector.broadcast %173 : vector<32x1xf32> to vector<32x256xf32>
    %175 = arith.mulf %144, %174 : vector<32x256xf32>
    %176 = vector.extract_strided_slice %136 {offsets = [0, 1], sizes = [32, 1], strides = [1, 1]} : vector<32x18xf32> to vector<32x1xf32>
    %177 = vector.broadcast %176 : vector<32x1xf32> to vector<32x256xf32>
    %178 = arith.mulf %145, %177 : vector<32x256xf32>
    %179 = arith.addf %175, %178 : vector<32x256xf32>
    %180 = vector.extract_strided_slice %136 {offsets = [0, 2], sizes = [32, 1], strides = [1, 1]} : vector<32x18xf32> to vector<32x1xf32>
    %181 = vector.broadcast %180 : vector<32x1xf32> to vector<32x256xf32>
    %182 = arith.mulf %150, %181 : vector<32x256xf32>
    %183 = arith.addf %179, %182 : vector<32x256xf32>
    %184 = vector.extract_strided_slice %136 {offsets = [0, 3], sizes = [32, 1], strides = [1, 1]} : vector<32x18xf32> to vector<32x1xf32>
    %185 = vector.broadcast %184 : vector<32x1xf32> to vector<32x256xf32>
    %186 = arith.mulf %155, %185 : vector<32x256xf32>
    %187 = arith.addf %183, %186 : vector<32x256xf32>
    %188 = vector.extract_strided_slice %136 {offsets = [0, 4], sizes = [32, 1], strides = [1, 1]} : vector<32x18xf32> to vector<32x1xf32>
    %189 = vector.broadcast %188 : vector<32x1xf32> to vector<32x256xf32>
    %190 = arith.mulf %156, %189 : vector<32x256xf32>
    %191 = arith.addf %187, %190 : vector<32x256xf32>
    %192 = vector.extract_strided_slice %136 {offsets = [0, 5], sizes = [32, 1], strides = [1, 1]} : vector<32x18xf32> to vector<32x1xf32>
    %193 = vector.broadcast %192 : vector<32x1xf32> to vector<32x256xf32>
    %194 = arith.mulf %161, %193 : vector<32x256xf32>
    %195 = arith.addf %191, %194 : vector<32x256xf32>
    %196 = vector.extract_strided_slice %136 {offsets = [0, 6], sizes = [32, 1], strides = [1, 1]} : vector<32x18xf32> to vector<32x1xf32>
    %197 = vector.broadcast %196 : vector<32x1xf32> to vector<32x256xf32>
    %198 = arith.mulf %166, %197 : vector<32x256xf32>
    %199 = arith.addf %195, %198 : vector<32x256xf32>
    %200 = vector.extract_strided_slice %136 {offsets = [0, 7], sizes = [32, 1], strides = [1, 1]} : vector<32x18xf32> to vector<32x1xf32>
    %201 = vector.broadcast %200 : vector<32x1xf32> to vector<32x256xf32>
    %202 = arith.mulf %167, %201 : vector<32x256xf32>
    %203 = arith.addf %199, %202 : vector<32x256xf32>
    %204 = vector.extract_strided_slice %136 {offsets = [0, 8], sizes = [32, 1], strides = [1, 1]} : vector<32x18xf32> to vector<32x1xf32>
    %205 = vector.broadcast %204 : vector<32x1xf32> to vector<32x256xf32>
    %206 = arith.mulf %172, %205 : vector<32x256xf32>
    %207 = arith.addf %203, %206 : vector<32x256xf32>
    %208 = vector.extract_strided_slice %137 {offsets = [0, 0], sizes = [32, 1], strides = [1, 1]} : vector<32x2xf32> to vector<32x1xf32>
    %209 = vector.broadcast %208 : vector<32x1xf32> to vector<32x256xf32>
    %210 = arith.addf %207, %209 : vector<32x256xf32>
    %cst_66 = arith.constant 0.000000e+00 : f32
    %211 = vector.broadcast %cst_66 : f32 to vector<32x256xf32>
    %212 = arith.maximumf %210, %211 : vector<32x256xf32>
    %cst_67 = arith.constant 0.000000e+00 : f32
    %213 = vector.broadcast %cst_67 : f32 to vector<32x128xf32>
    %214 = tpu.concatenate %213, %135, %213 in 1 : vector<32x128xf32>, vector<32x256xf32>, vector<32x128xf32> -> vector<32x512xf32>
    %215 = vector.extract_strided_slice %214 {offsets = [0, 94], sizes = [32, 256], strides = [1, 1]} : vector<32x512xf32> to vector<32x256xf32>
    %cst_68 = arith.constant 0.000000e+00 : f32
    %216 = vector.shape_cast %8 : vector<1x256xi1> to vector<1x256xi1>
    %217 = vector.broadcast %216 : vector<1x256xi1> to vector<32x256xi1>
    %218 = vector.broadcast %cst_68 : f32 to vector<32x256xf32>
    %219 = arith.select %217, %215, %218 : vector<32x256xi1>, vector<32x256xf32>
    %220 = vector.extract_strided_slice %214 {offsets = [0, 96], sizes = [32, 256], strides = [1, 1]} : vector<32x512xf32> to vector<32x256xf32>
    %221 = vector.extract_strided_slice %214 {offsets = [0, 98], sizes = [32, 256], strides = [1, 1]} : vector<32x512xf32> to vector<32x256xf32>
    %cst_69 = arith.constant 0.000000e+00 : f32
    %222 = vector.shape_cast %10 : vector<1x256xi1> to vector<1x256xi1>
    %223 = vector.broadcast %222 : vector<1x256xi1> to vector<32x256xi1>
    %224 = vector.broadcast %cst_69 : f32 to vector<32x256xf32>
    %225 = arith.select %223, %221, %224 : vector<32x256xi1>, vector<32x256xf32>
    %226 = vector.extract_strided_slice %214 {offsets = [0, 126], sizes = [32, 256], strides = [1, 1]} : vector<32x512xf32> to vector<32x256xf32>
    %cst_70 = arith.constant 0.000000e+00 : f32
    %227 = vector.shape_cast %8 : vector<1x256xi1> to vector<1x256xi1>
    %228 = vector.broadcast %227 : vector<1x256xi1> to vector<32x256xi1>
    %229 = vector.broadcast %cst_70 : f32 to vector<32x256xf32>
    %230 = arith.select %228, %226, %229 : vector<32x256xi1>, vector<32x256xf32>
    %231 = vector.extract_strided_slice %214 {offsets = [0, 128], sizes = [32, 256], strides = [1, 1]} : vector<32x512xf32> to vector<32x256xf32>
    %232 = vector.extract_strided_slice %214 {offsets = [0, 130], sizes = [32, 256], strides = [1, 1]} : vector<32x512xf32> to vector<32x256xf32>
    %cst_71 = arith.constant 0.000000e+00 : f32
    %233 = vector.shape_cast %10 : vector<1x256xi1> to vector<1x256xi1>
    %234 = vector.broadcast %233 : vector<1x256xi1> to vector<32x256xi1>
    %235 = vector.broadcast %cst_71 : f32 to vector<32x256xf32>
    %236 = arith.select %234, %232, %235 : vector<32x256xi1>, vector<32x256xf32>
    %237 = vector.extract_strided_slice %214 {offsets = [0, 158], sizes = [32, 256], strides = [1, 1]} : vector<32x512xf32> to vector<32x256xf32>
    %cst_72 = arith.constant 0.000000e+00 : f32
    %238 = vector.shape_cast %8 : vector<1x256xi1> to vector<1x256xi1>
    %239 = vector.broadcast %238 : vector<1x256xi1> to vector<32x256xi1>
    %240 = vector.broadcast %cst_72 : f32 to vector<32x256xf32>
    %241 = arith.select %239, %237, %240 : vector<32x256xi1>, vector<32x256xf32>
    %242 = vector.extract_strided_slice %214 {offsets = [0, 160], sizes = [32, 256], strides = [1, 1]} : vector<32x512xf32> to vector<32x256xf32>
    %243 = vector.extract_strided_slice %214 {offsets = [0, 162], sizes = [32, 256], strides = [1, 1]} : vector<32x512xf32> to vector<32x256xf32>
    %cst_73 = arith.constant 0.000000e+00 : f32
    %244 = vector.shape_cast %10 : vector<1x256xi1> to vector<1x256xi1>
    %245 = vector.broadcast %244 : vector<1x256xi1> to vector<32x256xi1>
    %246 = vector.broadcast %cst_73 : f32 to vector<32x256xf32>
    %247 = arith.select %245, %243, %246 : vector<32x256xi1>, vector<32x256xf32>
    %248 = vector.extract_strided_slice %136 {offsets = [0, 9], sizes = [32, 1], strides = [1, 1]} : vector<32x18xf32> to vector<32x1xf32>
    %249 = vector.broadcast %248 : vector<32x1xf32> to vector<32x256xf32>
    %250 = arith.mulf %219, %249 : vector<32x256xf32>
    %251 = vector.extract_strided_slice %136 {offsets = [0, 10], sizes = [32, 1], strides = [1, 1]} : vector<32x18xf32> to vector<32x1xf32>
    %252 = vector.broadcast %251 : vector<32x1xf32> to vector<32x256xf32>
    %253 = arith.mulf %220, %252 : vector<32x256xf32>
    %254 = arith.addf %250, %253 : vector<32x256xf32>
    %255 = vector.extract_strided_slice %136 {offsets = [0, 11], sizes = [32, 1], strides = [1, 1]} : vector<32x18xf32> to vector<32x1xf32>
    %256 = vector.broadcast %255 : vector<32x1xf32> to vector<32x256xf32>
    %257 = arith.mulf %225, %256 : vector<32x256xf32>
    %258 = arith.addf %254, %257 : vector<32x256xf32>
    %259 = vector.extract_strided_slice %136 {offsets = [0, 12], sizes = [32, 1], strides = [1, 1]} : vector<32x18xf32> to vector<32x1xf32>
    %260 = vector.broadcast %259 : vector<32x1xf32> to vector<32x256xf32>
    %261 = arith.mulf %230, %260 : vector<32x256xf32>
    %262 = arith.addf %258, %261 : vector<32x256xf32>
    %263 = vector.extract_strided_slice %136 {offsets = [0, 13], sizes = [32, 1], strides = [1, 1]} : vector<32x18xf32> to vector<32x1xf32>
    %264 = vector.broadcast %263 : vector<32x1xf32> to vector<32x256xf32>
    %265 = arith.mulf %231, %264 : vector<32x256xf32>
    %266 = arith.addf %262, %265 : vector<32x256xf32>
    %267 = vector.extract_strided_slice %136 {offsets = [0, 14], sizes = [32, 1], strides = [1, 1]} : vector<32x18xf32> to vector<32x1xf32>
    %268 = vector.broadcast %267 : vector<32x1xf32> to vector<32x256xf32>
    %269 = arith.mulf %236, %268 : vector<32x256xf32>
    %270 = arith.addf %266, %269 : vector<32x256xf32>
    %271 = vector.extract_strided_slice %136 {offsets = [0, 15], sizes = [32, 1], strides = [1, 1]} : vector<32x18xf32> to vector<32x1xf32>
    %272 = vector.broadcast %271 : vector<32x1xf32> to vector<32x256xf32>
    %273 = arith.mulf %241, %272 : vector<32x256xf32>
    %274 = arith.addf %270, %273 : vector<32x256xf32>
    %275 = vector.extract_strided_slice %136 {offsets = [0, 16], sizes = [32, 1], strides = [1, 1]} : vector<32x18xf32> to vector<32x1xf32>
    %276 = vector.broadcast %275 : vector<32x1xf32> to vector<32x256xf32>
    %277 = arith.mulf %242, %276 : vector<32x256xf32>
    %278 = arith.addf %274, %277 : vector<32x256xf32>
    %279 = vector.extract_strided_slice %136 {offsets = [0, 17], sizes = [32, 1], strides = [1, 1]} : vector<32x18xf32> to vector<32x1xf32>
    %280 = vector.broadcast %279 : vector<32x1xf32> to vector<32x256xf32>
    %281 = arith.mulf %247, %280 : vector<32x256xf32>
    %282 = arith.addf %278, %281 : vector<32x256xf32>
    %283 = vector.extract_strided_slice %137 {offsets = [0, 1], sizes = [32, 1], strides = [1, 1]} : vector<32x2xf32> to vector<32x1xf32>
    %284 = vector.broadcast %283 : vector<32x1xf32> to vector<32x256xf32>
    %285 = arith.addf %282, %284 : vector<32x256xf32>
    %cst_74 = arith.constant 0.000000e+00 : f32
    %286 = vector.broadcast %cst_74 : f32 to vector<32x256xf32>
    %287 = arith.maximumf %285, %286 : vector<32x256xf32>
    %288 = arith.addf %212, %287 : vector<32x256xf32>
    %cst_75 = arith.constant dense<0.000000e+00> : vector<32xf32>
    %289 = vector.multi_reduction <add>, %288, %cst_75 [1] : vector<32x256xf32> to vector<32xf32>
    %290 = vector.shape_cast %289 : vector<32xf32> to vector<32x1xf32>
    %cst_76 = arith.constant 3.906250e-03 : f32
    %291 = vector.broadcast %cst_76 : f32 to vector<32x1xf32>
    %292 = arith.mulf %290, %291 : vector<32x1xf32>
    %c0_77 = arith.constant 0 : index
    %c0_78 = arith.constant 0 : index
    %293 = vector.load %arg17[%c0_77, %c0_78] : memref<32x32xf32, #tpu.memory_space<vmem>>, vector<32x32xf32>
    %cst_79 = arith.constant dense<0.000000e+00> : vector<32x1xf32>
    %294 = tpu.matmul %293, %292, %cst_79 {dimension_numbers = #tpu.dot_dimension_numbers<[1], [0], [0], [1], [0, 0, 1, 1], [], []>} : vector<32x32xf32>, vector<32x1xf32>, vector<32x1xf32> -> vector<32x1xf32>
    %c0_80 = arith.constant 0 : index
    %c0_81 = arith.constant 0 : index
    %295 = vector.load %arg18[%c0_80, %c0_81] : memref<32x1xf32, #tpu.memory_space<vmem>>, vector<32x1xf32>
    %296 = arith.addf %294, %295 : vector<32x1xf32>
    %cst_82 = arith.constant 0.000000e+00 : f32
    %297 = vector.broadcast %cst_82 : f32 to vector<32x1xf32>
    %298 = arith.maximumf %296, %297 : vector<32x1xf32>
    %c0_83 = arith.constant 0 : index
    %c0_84 = arith.constant 0 : index
    %299 = vector.load %arg19[%c0_83, %c0_84] : memref<64x32xf32, #tpu.memory_space<vmem>>, vector<64x32xf32>
    %cst_85 = arith.constant dense<0.000000e+00> : vector<64x1xf32>
    %300 = tpu.matmul %299, %298, %cst_85 {dimension_numbers = #tpu.dot_dimension_numbers<[1], [0], [0], [1], [0, 0, 1, 1], [], []>} : vector<64x32xf32>, vector<32x1xf32>, vector<64x1xf32> -> vector<64x1xf32>
    %301 = vector.extract_strided_slice %300 {offsets = [32, 0], sizes = [32, 1], strides = [1, 1]} : vector<64x1xf32> to vector<32x1xf32>
    %302 = vector.extract_strided_slice %300 {offsets = [0, 0], sizes = [32, 1], strides = [1, 1]} : vector<64x1xf32> to vector<32x1xf32>
    %303 = arith.subf %301, %302 : vector<32x1xf32>
    %304 = math.exp %303 : vector<32x1xf32>
    %cst_86 = arith.constant 1.000000e+00 : f32
    %305 = vector.broadcast %cst_86 : f32 to vector<32x1xf32>
    %306 = arith.addf %305, %304 : vector<32x1xf32>
    %cst_87 = arith.constant 1.000000e+00 : f32
    %307 = vector.broadcast %cst_87 : f32 to vector<32x1xf32>
    %308 = arith.divf %307, %306 : vector<32x1xf32>
    %309 = vector.broadcast %308 : vector<32x1xf32> to vector<32x256xf32>
    %310 = arith.mulf %212, %309 : vector<32x256xf32>
    %cst_88 = arith.constant 1.000000e+00 : f32
    %311 = vector.broadcast %cst_88 : f32 to vector<32x1xf32>
    %312 = arith.subf %311, %308 : vector<32x1xf32>
    %313 = vector.broadcast %312 : vector<32x1xf32> to vector<32x256xf32>
    %314 = arith.mulf %287, %313 : vector<32x256xf32>
    %315 = arith.addf %310, %314 : vector<32x256xf32>
    %c0_89 = arith.constant 0 : index
    %c0_90 = arith.constant 0 : index
    %c0_91 = arith.constant 0 : index
    %316 = vector.load %arg20[%c0_89, %c0_90, %c0_91] : memref<1x32x256xf32, #tpu.memory_space<vmem>>, vector<1x32x256xf32>
    %317 = vector.shape_cast %316 : vector<1x32x256xf32> to vector<32x256xf32>
    %318 = vector.shape_cast %315 : vector<32x256xf32> to vector<1x32x256xf32>
    tpu.vector_store %arg20[%c0_89, %c0_90, %c0_91], %318 {strides = array<i32>} : memref<1x32x256xf32, #tpu.memory_space<vmem>>, vector<1x32x256xf32>,
    return
  }
  func.func @transform_0(%arg0: i32) -> (i32, i32, i32) {
    %c0_i32 = arith.constant 0 : i32
    %c0_i32_0 = arith.constant 0 : i32
    %c0_i32_1 = arith.constant 0 : i32
    return %arg0, %c0_i32, %c0_i32_0 : i32, i32, i32
  }
  func.func @transform_1(%arg0: i32) -> (i32, i32) {
    %c0_i32 = arith.constant 0 : i32
    %c0_i32_0 = arith.constant 0 : i32
    %c0_i32_1 = arith.constant 0 : i32
    return %c0_i32, %c0_i32_0 : i32, i32
  }
  func.func @transform_2(%arg0: i32) -> (i32, i32) {
    %c0_i32 = arith.constant 0 : i32
    %c0_i32_0 = arith.constant 0 : i32
    %c0_i32_1 = arith.constant 0 : i32
    return %c0_i32, %c0_i32_0 : i32, i32
  }
  func.func @transform_3(%arg0: i32) -> (i32, i32) {
    %c0_i32 = arith.constant 0 : i32
    %c0_i32_0 = arith.constant 0 : i32
    %c0_i32_1 = arith.constant 0 : i32
    return %c0_i32, %c0_i32_0 : i32, i32
  }
  func.func @transform_4(%arg0: i32) -> (i32, i32) {
    %c0_i32 = arith.constant 0 : i32
    %c0_i32_0 = arith.constant 0 : i32
    %c0_i32_1 = arith.constant 0 : i32
    return %c0_i32, %c0_i32_0 : i32, i32
  }
  func.func @transform_5(%arg0: i32) -> (i32, i32) {
    %c0_i32 = arith.constant 0 : i32
    %c0_i32_0 = arith.constant 0 : i32
    %c0_i32_1 = arith.constant 0 : i32
    return %c0_i32, %c0_i32_0 : i32, i32
  }
  func.func @transform_6(%arg0: i32) -> (i32, i32) {
    %c0_i32 = arith.constant 0 : i32
    %c0_i32_0 = arith.constant 0 : i32
    %c0_i32_1 = arith.constant 0 : i32
    return %c0_i32, %c0_i32_0 : i32, i32
  }
  func.func @transform_7(%arg0: i32) -> (i32, i32) {
    %c0_i32 = arith.constant 0 : i32
    %c0_i32_0 = arith.constant 0 : i32
    %c0_i32_1 = arith.constant 0 : i32
    return %c0_i32, %c0_i32_0 : i32, i32
  }
  func.func @transform_8(%arg0: i32) -> (i32, i32) {
    %c0_i32 = arith.constant 0 : i32
    %c0_i32_0 = arith.constant 0 : i32
    %c0_i32_1 = arith.constant 0 : i32
    return %c0_i32, %c0_i32_0 : i32, i32
  }
  func.func @transform_9(%arg0: i32) -> (i32, i32) {
    %c0_i32 = arith.constant 0 : i32
    %c0_i32_0 = arith.constant 0 : i32
    %c0_i32_1 = arith.constant 0 : i32
    return %c0_i32, %c0_i32_0 : i32, i32
  }
  func.func @transform_10(%arg0: i32) -> (i32, i32) {
    %c0_i32 = arith.constant 0 : i32
    %c0_i32_0 = arith.constant 0 : i32
    %c0_i32_1 = arith.constant 0 : i32
    return %c0_i32, %c0_i32_0 : i32, i32
  }
  func.func @transform_11(%arg0: i32) -> (i32, i32) {
    %c0_i32 = arith.constant 0 : i32
    %c0_i32_0 = arith.constant 0 : i32
    %c0_i32_1 = arith.constant 0 : i32
    return %c0_i32, %c0_i32_0 : i32, i32
  }
  func.func @transform_12(%arg0: i32) -> (i32, i32) {
    %c0_i32 = arith.constant 0 : i32
    %c0_i32_0 = arith.constant 0 : i32
    %c0_i32_1 = arith.constant 0 : i32
    return %c0_i32, %c0_i32_0 : i32, i32
  }
  func.func @transform_13(%arg0: i32) -> (i32, i32) {
    %c0_i32 = arith.constant 0 : i32
    %c0_i32_0 = arith.constant 0 : i32
    %c0_i32_1 = arith.constant 0 : i32
    return %c0_i32, %c0_i32_0 : i32, i32
  }
  func.func @transform_14(%arg0: i32) -> (i32, i32) {
    %c0_i32 = arith.constant 0 : i32
    %c0_i32_0 = arith.constant 0 : i32
    %c0_i32_1 = arith.constant 0 : i32
    return %c0_i32, %c0_i32_0 : i32, i32
  }
  func.func @transform_15(%arg0: i32) -> (i32, i32) {
    %c0_i32 = arith.constant 0 : i32
    %c0_i32_0 = arith.constant 0 : i32
    %c0_i32_1 = arith.constant 0 : i32
    return %c0_i32, %c0_i32_0 : i32, i32
  }
  func.func @transform_16(%arg0: i32) -> (i32, i32) {
    %c0_i32 = arith.constant 0 : i32
    %c0_i32_0 = arith.constant 0 : i32
    %c0_i32_1 = arith.constant 0 : i32
    return %c0_i32, %c0_i32_0 : i32, i32
  }
  func.func @transform_17(%arg0: i32) -> (i32, i32) {
    %c0_i32 = arith.constant 0 : i32
    %c0_i32_0 = arith.constant 0 : i32
    %c0_i32_1 = arith.constant 0 : i32
    return %c0_i32, %c0_i32_0 : i32, i32
  }
  func.func @transform_18(%arg0: i32) -> (i32, i32) {
    %c0_i32 = arith.constant 0 : i32
    %c0_i32_0 = arith.constant 0 : i32
    %c0_i32_1 = arith.constant 0 : i32
    return %c0_i32, %c0_i32_0 : i32, i32
  }
  func.func @transform_19(%arg0: i32) -> (i32, i32, i32) {
    %c0_i32 = arith.constant 0 : i32
    %c0_i32_0 = arith.constant 0 : i32
    %c0_i32_1 = arith.constant 0 : i32
    return %arg0, %c0_i32, %c0_i32_0 : i32, i32, i32
  }
}

</mosaic_0001>

<bundles_post_ra>
// kernel: tpu_custom_call.1
= control target key start
LH: loop header
LB: loop body
LE: loop exit
PB: predicated region body
PF: predicated region fallthrough
CT: control target
= control target key end

     0   :  { %s6855_s0 = inlined_call_operand.vmem [shape: f32[2,64,64], index: 0, kind: input, shape index: {}]   ;;  %s6856_s1 = inlined_call_operand.hbm [shape: f32[64,256], index: 1, kind: input, shape index: {}]   ;;  %s6857_s2 = inlined_call_operand.vmem [shape: bf16[16,64], index: 2, kind: input, shape index: {}]   ;;  %s6858_s3 = inlined_call_operand.vmem [shape: f32[16,1], index: 3, kind: input, shape index: {}]   ;;  %s6859_s4 = inlined_call_operand.vmem [shape: bf16[16,144], index: 4, kind: input, shape index: {}]   ;;  %s6860_s5 = inlined_call_operand.vmem [shape: f32[16,1], index: 5, kind: input, shape index: {}]   ;;  %s6861_s6 = inlined_call_operand.vmem [shape: bf16[64,16], index: 6, kind: input, shape index: {}]   ;;  %s6862_s7 = inlined_call_operand.vmem [shape: f32[64,1], index: 7, kind: input, shape index: {}]   ;;  %s6863_s8 = inlined_call_operand.vmem [shape: bf16[16,64], index: 8, kind: input, shape index: {}]   ;;  %s6864_s9 = inlined_call_operand.vmem [shape: f32[16,1], index: 9, kind: input, shape index: {}]   ;;  %s6865_s10 = inlined_call_operand.vmem [shape: bf16[16,144], index: 10, kind: input, shape index: {}]   ;;  %s6866_s11 = inlined_call_operand.vmem [shape: f32[16,1], index: 11, kind: input, shape index: {}]   ;;  %s6867_s12 = inlined_call_operand.vmem [shape: bf16[32,16], index: 12, kind: input, shape index: {}]   ;;  %s6868_s13 = inlined_call_operand.vmem [shape: f32[32,1], index: 13, kind: input, shape index: {}]   ;;  %s6869_s14 = inlined_call_operand.vmem [shape: f32[32,18], index: 14, kind: input, shape index: {}]   ;;  %s6870_s15 = inlined_call_operand.vmem [shape: f32[32,2], index: 15, kind: input, shape index: {}]   ;;  %s6871_s16 = inlined_call_operand.vmem [shape: f32[32,32], index: 16, kind: input, shape index: {}]   ;;  %s6872_s17 = inlined_call_operand.vmem [shape: f32[32,1], index: 17, kind: input, shape index: {}]   ;;  %s6873_s18 = inlined_call_operand.vmem [shape: f32[64,32], index: 18, kind: input, shape index: {}]   ;;  %s6874_s19 = inlined_call_operand.hbm [shape: f32[2,32,256], index: 19, kind: output, shape index: {}]  }
   0x1   :  { %7060 = sst [smem:[#allocation111_spill]] %s6855_s0 }
   0x2   :  { %7061 = sst [smem:[#allocation112_spill]] %s6856_s1 }
   0x3   :  { %7062 = sst [smem:[#allocation113_spill]] %s6857_s2 }
   0x4   :  { %7063 = sst [smem:[#allocation114_spill]] %s6858_s3 }
   0x5   :  { %7064 = sst [smem:[#allocation115_spill]] %s6859_s4 }
   0x6   :  { %7065 = sst [smem:[#allocation116_spill]] %s6860_s5 }
   0x7   :  { %7066 = sst [smem:[#allocation117_spill]] %s6861_s6 }
   0x8   :  { %7067 = sst [smem:[#allocation118_spill]] %s6862_s7 }
   0x9   :  { %7068 = sst [smem:[#allocation119_spill]] %s6863_s8 }
   0xa   :  { %7069 = sst [smem:[#allocation120_spill]] %s6864_s9 }
   0xb   :  { %24 = vsyncpa [#allocation3], 0 }
   0xc   :  { %25 = vsyncpa [#allocation4], 0 }
   0xd   :  { %27 = vsyncpa [#allocation4 + $0x1], 0  ;;  %s4248_s0 = smov 0   ;;  %s4250_s30 = smov 0  }
   0xe   :  { %s4252_s20 = smov 0   ;;  %s4254_s21 = smov 0  }
   0xf LB: > { %7070 = sst [smem:[#allocation8_spill]] %s4103_s20  ;;  %s4269_s1 = sadd.s32 4294967295, %s4107_s21   ;;  %s4107_s21 = sphi %s4254_s21, %s7501_s21   ;;  %s4103_s20 = sphi %s4252_s20, %s7503_s20   ;;  %s4099_s30 = sphi %s4250_s30, %s7505_s30   ;;  %s4095_s0 = sphi %s4248_s0, %s7504_s0  }
  0x10   : > { %s3484_s22 = sadd.s32 4294967294, %s4107_s21   ;;  %s4273_s2 = sadd.s32 1, %s4107_s21  }
  0x11   : > { %7071 = sst [smem:[#allocation9_spill]] %s4273_s2  ;;  %s444_s23 = sadd.s32 1, %s4103_s20 }
  0x12   : > { %s441_s24 = ssub.s32 %s4107_s21, %s4273_s2  ;;  %p454_p0 = scmp.ne.s32.totalorder %s4103_s20, %s4099_s30 }
  0x13   : > { %p442_p1 = scmp.eq.s32.totalorder %s441_s24, 0  ;;  %p455_p2 = scmp.eq.s32.totalorder %s4269_s1, 1 }
  0x14   : > { %p460_p3 = scmp.ne.s32.totalorder %s4099_s30, %s4095_s0  ;;  %p461_p4 = scmp.eq.s32.totalorder %s3484_s22, 1 }
  0x15   : > { %s4284_s25 = scalar_select %p442_p1, %s4103_s20, %s444_s23  }
  0x16   : > { %p4286_p5 = por %p455_p2, %p454_p0  ;;  %p4290_p6 = por %p461_p4, %p460_p3 }
  0x17   : > { %7072 = sst [smem:[#allocation10_spill]] %s4284_s25  ;;  %p3485_p7 = scmp.ge.s32.totalorder %s4107_s21, 1 }
  0x18   : > { %s7074_s26 = scalar_select %p4290_p6, 1, 0 }
  0x19   : > { %p468_p8 = scmp.lt.s32.totalorder %s4107_s21, 3  ;;  %p3694_p9 = scmp.eq.s32.totalorder %s4269_s1, 0 }
  0x1a   : > { %7075 = sst [smem:[#allocation11_spill]] %s7074_s26  ;;  %s4109_s22 = smov [#allocation2]  }
  0x1b   : > { %p469_p10 = pnand %p3485_p7, %p468_p8  ;;  %s7076_s29 = sld [smem:[#allocation112_spill]] }
  0x1c   : > { %s481_s23 = sshll.u32 %s4109_s22, 4  ;;  %s4110_s25 = smov 256   ;;  %s482_s23 = int_to_ptr.vmem [resolvable:$true] %s481_s23 }
  0x1d   : > { %p3686_p11 = pneg %p469_p10  ;;  %s4111_s20 = smov 16  }
  0x1e   : > { %556 = sbr.rel (%p469_p10) target bundleno = 2665 (0xa69), region = 96 }
  0x1f   : > { %p3687_p12 = pnand %p3694_p9, %p3686_p11 }
  0x21   : > { %s479_s24 = sshll.u32 %s7076_s29, 4  ;;  %s480_s24 = int_to_ptr.hbm [resolvable:$true] %s479_s24 }
  0x22   : > { %3689 = dma.hbm_to_vmem [thread:$0]  (!%p3687_p12), %s480_s24, 2048, %s482_s23, [#allocation3], %s4110_s25, %s4110_s25, %s4111_s20  }
  0x23   : > { %4086 = dma.done.wait (%p3694_p9), [#allocation3], 2048  }
  0x24   : > { %4088 = vsyncadd (%p3694_p9), [#allocation3], 4294965248  ;;  %p613_p13 = scmp.lt.s32.totalorder %s4269_s1, 1  ;;  %v654_v0 = vld [vmem:[#allocation2 + $0x70] sm:$0xff]  ;;  %v655_v1 = vld [vmem:[#allocation2 + $0x78] sm:$0xff]  ;;  %s7077_s29 = sld [smem:[#allocation111_spill]] }
  0x25   : > { %v652_v2 = vld [vmem:[#allocation2 + $0x60] sm:$0xff]  ;;  %689 = vmatpush.msra.mxu0 %v654_v0  ;;  %730 = vmatpush.msra.mxu1 %v655_v1  ;;  %v653_v3 = vld [vmem:[#allocation2 + $0x68] sm:$0xff]  ;;  %v650_v4 = vld [vmem:[#allocation2 + $0x50] sm:$0xff]  ;;  %vm656_vm0 = vcmask 523264   ;;  %v6899_v37 = vmov 0   ;;  %v6901_v38 = vmov 0.0  }
  0x26   : > { %v651_v5 = vld [vmem:[#allocation2 + $0x58] sm:$0xff]  ;;  %s614_s20 = scalar_select %p613_p13, %s4269_s1, 1  ;;  %v648_v6 = vld [vmem:[#allocation2 + $0x40] sm:$0xff]  ;;  %v649_v7 = vld [vmem:[#allocation2 + $0x48] sm:$0xff]  ;;  %3768 = vset.pattern.permute.xlu0 %v6899_v37  ;;  %3850 = vset.pattern.permute.xlu1 %v6899_v37  ;;  %vm7055_vm1 = vcmask 916480   ;;  %vm7052_vm3 = vcmask 924672  }
  0x27   : > { %690 = vmatpush.msra.mxu0 %v652_v2  ;;  %731 = vmatpush.msra.mxu1 %v653_v3  ;;  %v646_v8 = vld [vmem:[#allocation2 + $0x30] sm:$0xff]  ;;  %v647_v9 = vld [vmem:[#allocation2 + $0x38] sm:$0xff]  ;;  %v644_v10 = vld [vmem:[#allocation2 + $0x20] sm:$0xff]  ;;  %s6881_s27 = smov 112   ;;  %s7080_s23 = sld [smem:[#allocation113_spill]]  ;;  %vm7053_vm6 = vcmask 1039360  }
  0x28   : > { %s3666_s25 = sshll.u32 %s614_s20, 6  ;;  %v645_v11 = vld [vmem:[#allocation2 + $0x28] sm:$0xff]  ;;  %v642_v12 = vld [vmem:[#allocation2 + $0x10] sm:$0xff]  ;;  %v643_v13 = vld [vmem:[#allocation2 + $0x18] sm:$0xff]  ;;  %s7078_s20 = sld [smem:[#allocation114_spill]]  ;;  %1019 = vrot.lane.b32.xlu2 %v6901_v38, %s6881_s27  ;;  %vm914_vm8 = vcmask 7168  }
  0x29   : > { %691 = vmatpush.msra.mxu0 %v650_v4  ;;  %732 = vmatpush.msra.mxu1 %v651_v5  ;;  %v640_v14 = vld [vmem:[#allocation2] sm:$0xff]  ;;  %v641_v15 = vld [vmem:[#allocation2 + $0x8] sm:$0xff]  ;;  %s6879_s28 = smov 127   ;;  %s6888_s22 = smov 16   ;;  %vm983_vm9 = vcmask 908288   ;;  %vm891_vm10 = vcmask 121856  }
  0x2a   : > { %s4311_s24 = scalar_lea.vmem %s7077_s29, %s3666_s25  ;;  %3849 = vset.pattern.permute.xlu2 %v6899_v37  ;;  %s6885_s29 = smov 1   ;;  %vm1006_vm13 = vcmask 130048  }
  0x2b   : > { %692 = vmatpush.msra.mxu0 %v648_v6  ;;  %733 = vmatpush.msra.mxu1 %v649_v7  ;;  %v632_v16 = vld [vmem:[%s4311_s24] sm:$0xff]  ;;  %v633_v17 = vld [vmem:[%s4311_s24 + $0x8] sm:$0xff]  ;;  %v634_v18 = vld [vmem:[%s4311_s24 + $0x10] sm:$0xff]  ;;  %s7081_s5 = sld [smem:[#allocation116_spill]]  ;;  %s7083_s2 = smov 111  }
  0x2c   : > { %v635_v19 = vld [vmem:[%s4311_s24 + $0x18] sm:$0xff]  ;;  %v636_v20 = vld [vmem:[%s4311_s24 + $0x20] sm:$0xff]  ;;  %v637_v21 = vld [vmem:[%s4311_s24 + $0x28] sm:$0xff]  ;;  %s7082_s7 = sld [smem:[#allocation118_spill]]  ;;  %s6971_s26 = smov 2  }
  0x2d   : > { %693 = vmatpush.msra.mxu0 %v646_v8  ;;  %734 = vmatpush.msra.mxu1 %v647_v9  ;;  %v638_v22 = vld [vmem:[%s4311_s24 + $0x30] sm:$0xff]  ;;  %v639_v23 = vld [vmem:[%s4311_s24 + $0x38] sm:$0xff]  ;;  %v3667_v52 = vld [vmem:[%s7080_s23] sm:$0xff]  ;;  %s6894_s24 = smov 15   ;;  %s6883_s23 = smov 111  }
  0x2e   : > { %s7079_s25 = smov %s7078_s20  ;;  %v765_v36 = vld [vmem:[%s7078_s20] sm:$0xff]  ;;  %s6877_s20 = smov 113  }
  0x2f   : > { %694 = vmatpush.msra.mxu0 %v644_v10  ;;  %735 = vmatpush.msra.mxu1 %v645_v11  ;;  %v766_v41 = vld [vmem:[%s7079_s25 + $0x8] sm:$0xff]  ;;  %s7084_s9 = sld [smem:[#allocation120_spill]]  ;;  %s6967_s25 = smov 126  }
  0x30   : > { %797 = vperm.xlu0 %3768, %v765_v36   ;;  %954 = vrot.lane.b32.xlu2 %v6901_v38, %s6877_s20  ;;  %s7094_s4 = sld [smem:[#allocation115_spill]] }
  0x31   : > { %695 = vmatpush.msra.mxu0 %v642_v12  ;;  %736 = vmatpush.msra.mxu1 %v643_v13  ;;  %v770_v9 = vld [vmem:[%s7081_s5 + $0x8] sm:$0xff]  ;;  %v769_v10 = vld [vmem:[%s7081_s5] sm:$0xff]  ;;  %s7120_s6 = sld [smem:[#allocation117_spill]]  ;;  %s6975_s5 = smov 30  }
  0x32   : > { %v781_v11 = vld [vmem:[%s7082_s7 + $0x10] sm:$0xff]  ;;  %v780_v12 = vld [vmem:[%s7082_s7 + $0x8] sm:$0xff]  ;;  %s7151_s8 = sld [smem:[#allocation119_spill]] }
  0x33   : > { %696 = vmatpush.msra.mxu0 %v640_v14  ;;  %737 = vmatpush.msra.mxu1 %v641_v15  ;;  %v784_v13 = vld [vmem:[%s7082_s7 + $0x28] sm:$0xff]  ;;  %v779_v14 = vld [vmem:[%s7082_s7] sm:$0xff] }
  0x34   : > { %3493 = vmatmul.msk.f32.vlgmr.msra.gmra.mxu0 %vm656_vm0, %v632_v16  ;;  %3501 = vmatmul.msk.f32.vlgmr.msra.gmra.mxu1 %vm656_vm0, %v632_v16  ;;  %v783_v15 = vld [vmem:[%s7082_s7 + $0x20] sm:$0xff] }
  0x35   : > { %v1300_v16 = vld [vmem:[%s7084_s9] sm:$0xff] }
  0x36   : > { %v3668_v37 = vld [vmem:[%s7094_s4 + $0x4] sm:$0xf] }
  0x38   : > { %802 = vperm.xlu0 %3768, %v766_v41   ;;  %v1313_v41 = vld [vmem:[%s6868_s13 + $0x18] sm:$0xff] }
  0x3c   : > { %3494 = vmatmul.msk.f32.gmra.mxu0 %vm656_vm0, %v633_v17  ;;  %3502 = vmatmul.msk.f32.gmra.mxu1 %vm656_vm0, %v633_v17  ;;  %v782_v17 = vld [vmem:[%s7082_s7 + $0x18] sm:$0xff] }
  0x44   : > { %3495 = vmatmul.msk.f32.gmra.mxu0 %vm656_vm0, %v634_v18  ;;  %3503 = vmatmul.msk.f32.gmra.mxu1 %vm656_vm0, %v634_v18 }
  0x4c   : > { %3496 = vmatmul.msk.f32.gmra.mxu0 %vm656_vm0, %v635_v19  ;;  %3504 = vmatmul.msk.f32.gmra.mxu1 %vm656_vm0, %v635_v19  ;;  %v786_v19 = vld [vmem:[%s7082_s7 + $0x38] sm:$0xff] }
  0x54   : > { %3497 = vmatmul.msk.f32.gmra.mxu0 %vm656_vm0, %v636_v20  ;;  %3505 = vmatmul.msk.f32.gmra.mxu1 %vm656_vm0, %v636_v20  ;;  %v785_v20 = vld [vmem:[%s7082_s7 + $0x30] sm:$0xff]  ;;  %s7212_s7 = smov 126  }
  0x5c   : > { %3498 = vmatmul.msk.f32.gmra.mxu0 %vm656_vm0, %v637_v21  ;;  %3506 = vmatmul.msk.f32.gmra.mxu1 %vm656_vm0, %v637_v21 }
  0x64   : > { %3499 = vmatmul.msk.f32.gmra.mxu0 %vm656_vm0, %v638_v22  ;;  %3507 = vmatmul.msk.f32.gmra.mxu1 %vm656_vm0, %v638_v22  ;;  %v1310_v22 = vld [vmem:[%s6868_s13] sm:$0xff] }
  0x6c   : > { %3500 = vmatmul.msk.f32.gmra.mxu0 %vm656_vm0, %v639_v23  ;;  %3508 = vmatmul.msk.f32.gmra.mxu1 %vm656_vm0, %v639_v23  ;;  %v1301_v23 = vld [vmem:[%s7084_s9 + $0x8] sm:$0xff]  ;;  %s7220_s9 = smov 96  }
  0x82   : > { %v4478_v18 = vpop.permute.xlu2 %1019 }
  0x8a   : > { %v4486_v21 = vpop.permute.xlu2 %954 }
  0xa2   : > { %v798_v53 = vpop.permute.xlu0 %797 }
  0xaa   : > { %v803_v59 = vpop.permute.xlu0 %802 }
  0xb1   : > { %v4337_v24 = vpop.f32.mrf.mxu0  ;;  %v4339_v25 = vpop.f32.mrf.mxu1 }
  0xb9   : > { %v4341_v26 = vpop.f32.mrf.mxu0  ;;  %v4343_v27 = vpop.f32.mrf.mxu1 }
  0xba   : > { %v787_v50 = vpack.c.bf16 %v4341_v26, %v4337_v24  ;;  %v788_v51 = vpack.c.bf16 %v4343_v27, %v4339_v25 }
  0xc1   : > { %v4345_v28 = vpop.f32.mrf.mxu0  ;;  %v4347_v29 = vpop.f32.mrf.mxu1 }
  0xc9   : > { %v4349_v30 = vpop.f32.mrf.mxu0  ;;  %v4351_v31 = vpop.f32.mrf.mxu1 }
  0xca   : > { %v789_v48 = vpack.c.bf16 %v4349_v30, %v4345_v28  ;;  %v790_v49 = vpack.c.bf16 %v4351_v31, %v4347_v29 }
  0xd1   : > { %v4353_v32 = vpop.f32.mrf.mxu0  ;;  %v4355_v33 = vpop.f32.mrf.mxu1 }
  0xd9   : > { %v4357_v34 = vpop.f32.mrf.mxu0  ;;  %v4359_v35 = vpop.f32.mrf.mxu1 }
  0xda   : > { %v791_v46 = vpack.c.bf16 %v4357_v34, %v4353_v32  ;;  %v792_v47 = vpack.c.bf16 %v4359_v35, %v4355_v33 }
  0xe1   : > { %v4369_v39 = vpop.f32.mrf.mxu0  ;;  %v4371_v40 = vpop.f32.mrf.mxu1 }
  0xe9   : > { %v4376_v42 = vpop.f32.mrf.mxu0  ;;  %v4378_v43 = vpop.f32.mrf.mxu1 }
  0xea   : > { %v793_v44 = vpack.c.bf16 %v4376_v42, %v4369_v39  ;;  %v794_v45 = vpack.c.bf16 %v4378_v43, %v4371_v40 }
  0xec   : > { %817 = vmatpush.bf16.msra.mxu2 %v793_v44  ;;  %831 = vmatpush.bf16.msrb.mxu0 %v794_v45  ;;  %v1305_v44 = vld [vmem:[%s6866_s11 + $0x8] sm:$0xff]  ;;  %v4505_v45 = vld [vmem:[%s6869_s14 + $0x10] sm:$0xff] }
  0xf0   : > { %818 = vmatpush.bf16.msra.mxu2 %v791_v46  ;;  %832 = vmatpush.bf16.msrb.mxu0 %v792_v47  ;;  %v1312_v46 = vld [vmem:[%s6868_s13 + $0x10] sm:$0xff] }
  0xf4   : > { %819 = vmatpush.bf16.msra.mxu2 %v789_v48  ;;  %833 = vmatpush.bf16.msrb.mxu0 %v790_v49 }
  0xf8   : > { %820 = vmatpush.bf16.msra.mxu2 %v787_v50  ;;  %834 = vmatpush.bf16.msrb.mxu0 %v788_v51  ;;  %v619_v50 = vlaneseq  ;;  %v4520_v51 = vld [vmem:[%s6869_s14 + $0x8] sm:$0xff] }
  0xfb   : > { %3513 = vmatmul.msk.bf16.vlgmr.msra.gmra.mxu2 %vm656_vm0, %v3667_v52  ;;  %3514 = vmatmul.msk.bf16.vlgmr.msrb.gmra.mxu0 %vm656_vm0, %v3667_v52  ;;  %v620_v52 = vand.u32 127, %v619_v50  ;;  %v6897_v50 = vmov 1  }
 0x178   : > { %v836_v54 = vpop.f32.mrf.mxu0 }
 0x179   : > { %v837_v55 = vadd.f32 %v836_v54, %v798_v53 }
 0x17b   : > { %v4403_v57 = vmax.f32 %v837_v55, 0.0 }
 0x17e   : > { %v822_v56 = vpop.f32.mrf.mxu2 }
 0x17f   : > { %v823_v58 = vadd.f32 %v822_v56, %v798_v53 }
 0x180   : > { %v838_v60 = vpop.f32.mrf.mxu0 }
 0x181   : > { %v4405_v61 = vmax.f32 %v823_v58, 0.0  ;;  %v839_v62 = vadd.f32 %v838_v60, %v803_v59 }
 0x183   : > { %v4407_v63 = vmax.f32 %v839_v62, 0.0  ;;  %v3779_v0 = vpack.i.bf16 %v4403_v57, %v4405_v61  ;;  %v3784_v5 = vpack.i.bf16 %v4405_v61, %v6901_v38 }
 0x185   : > { %3780 = vrot.lane.b32.xlu0 %v3779_v0, %s6879_s28  ;;  %3775 = vrot.lane.b32.xlu2 %v3779_v0, %s6877_s20 }
 0x186   : > { %3770 = vrot.lane.b32.xlu1 %v3779_v0, %s6881_s27  ;;  %v824_v2 = vpop.f32.mrf.mxu2 }
 0x187   : > { %v825_v3 = vadd.f32 %v824_v2, %v803_v59  ;;  %v4531_v59 = vand.u32 15, %v620_v52 }
 0x189   : > { %v4416_v4 = vmax.f32 %v825_v3, 0.0  ;;  %7086 = vst [vmem:[#allocation13_spill] sm:$0xff] %v4531_v59  ;;  %vm624_vm2 = vcmp.ge.s32.totalorder %v4531_v59, 1  ;;  %vm626_vm5 = vcmp.lt.s32.totalorder %v4531_v59, 15 }
 0x18a   : > { %vm4559_vm4 = vmpackc.low %vm624_vm2, %vm624_vm2 }
 0x18b   : > { %v3799_v6 = vpack.i.bf16 %v4407_v63, %v4416_v4  ;;  %v1042_v7 = vpack.c.bf16 %v4416_v4, %v4405_v61  ;;  %v3819_v8 = vpack.i.bf16 %v4403_v57, %v4416_v4  ;;  %vm4586_vm7 = vmpackc.low %vm626_vm5, %vm626_vm5 }
 0x18d   : > { %3785 = vrot.lane.b32.xlu0 %v3784_v5, %s6885_s29  ;;  %3800 = vrot.lane.b32.xlu2 %v3799_v6, %s6877_s20  ;;  %s6892_s20 = smov 17  }
 0x18e   : > { %3795 = vrot.lane.b32.xlu1 %v3799_v6, %s6881_s27  ;;  %s7145_s27 = smov 112  }
 0x195   : > { %3790 = vrot.lane.b32.xlu0 %v3784_v5, %s6894_s24  ;;  %931 = vrot.lane.b32.xlu2 %v6901_v38, %s6879_s28 }
 0x196   : > { %3815 = vrot.lane.b32.xlu1 %v3799_v6, %s6879_s28  ;;  %s6973_s28 = smov 34  }
 0x19d   : > { %3805 = vrot.lane.b32.xlu0 %v3784_v5, %s6888_s22  ;;  %3810 = vrot.lane.b32.xlu2 %v3779_v0, %s6883_s23 }
 0x19e   : > { %3820 = vrot.lane.b32.xlu1 %v3819_v8, %s6885_s29 }
 0x1a5   : > { %3840 = vrot.lane.b32.xlu0 %v3799_v6, %s6883_s23  ;;  %3845 = vrot.lane.b32.xlu2 %v3819_v8, %s6892_s20  ;;  %s7165_s23 = smov 15  }
 0x1a6   : > { %3825 = vrot.lane.b32.xlu1 %v3819_v8, %s6894_s24 }
 0x1ad   : > { %912 = vrot.lane.b32.xlu0 %v4407_v63, %s6885_s29  ;;  %1004 = vrot.lane.b32.xlu2 %v4407_v63, %s6888_s22  ;;  %s7164_s29 = smov 1  }
 0x1ae   : > { %3830 = vrot.lane.b32.xlu1 %v3819_v8, %s6888_s22  ;;  %s6969_s22 = smov 32  }
 0x1b5   : > { %862 = vrot.lane.b32.xlu0 %v4407_v63, %s6892_s20  ;;  %1054 = vperm.xlu2 %3849, %v769_v10  }
 0x1b6   : > { %3835 = vrot.lane.b32.xlu1 %v3784_v5, %s6892_s20  ;;  %s6965_s20 = smov 98  }
 0x1bd   : > { %1059 = vperm.xlu0 %3768, %v770_v9   ;;  %1143 = vperm.xlu2 %3849, %v780_v12  }
 0x1be   : > { %889 = vrot.lane.b32.xlu1 %v4407_v63, %s6894_s24  ;;  %s7114_s24 = smov 16  }
 0x1c5   : > { %1148 = vperm.xlu0 %3768, %v781_v11   ;;  %1158 = vperm.xlu2 %3849, %v783_v15  }
 0x1c6   : > { %977 = vrot.lane.b32.xlu1 %v6901_v38, %s7083_s2  ;;  %v3519_v38 = vld [vmem:[%s7094_s4 + $0x8] sm:$0xf0] }
 0x1cd   : > { %1163 = vperm.xlu0 %3768, %v784_v13   ;;  %1173 = vperm.xlu2 %3849, %v786_v19  }
 0x1ce   : > { %1138 = vperm.xlu1 %3850, %v779_v14  }
 0x1d5   : > { %1324 = vperm.xlu0 %3768, %v1300_v16   ;;  %1632 = vperm.xlu2 %3849, %v1310_v22  }
 0x1d6   : > { %1153 = vperm.xlu1 %3850, %v782_v17  }
 0x1dd   : > { %1647 = vperm.xlu2 %3849, %v1313_v41   ;;  %3853 = vset.pattern.permute.xlu0 %v6897_v50 }
 0x1de   : > { %1168 = vperm.xlu1 %3850, %v785_v20   ;;  %2005 = vperm.xlu0 %3853, %v4505_v45  }
 0x1df   : > { %v4494_v36 = vpop.permute.xlu2 %3775 }
 0x1e0   : > { %v3778_v3 = vunpack.i.h.bf16 %v4494_v36  ;;  %v3777_v5 = vunpack.i.l.bf16 %v4494_v36 }
 0x1e2   : > { %v961_v14 = vsel %vm7052_vm3, %v3777_v5, %v3778_v3 }
 0x1e5   : > { %1980 = vperm.xlu2 %3849, %v4505_v45  }
 0x1e6   : > { %1329 = vperm.xlu1 %3850, %v1301_v23   ;;  %v4575_v23 = vld [vmem:[%s6869_s14] sm:$0xff] }
 0x1e7   : > { %v4511_v47 = vpop.permute.xlu2 %3800 }
 0x1e8   : > { %v3803_v60 = vunpack.i.h.bf16 %v4511_v47  ;;  %v3802_v62 = vunpack.i.l.bf16 %v4511_v47 }
 0x1ea   : > { %v963_v10 = vsel %vm7052_vm3, %v3802_v62, %v3803_v60 }
 0x1eb   : > { %v3524_v19 = vpack.c.bf16 %v963_v10, %v961_v14 }
 0x1ed   : > { %3852 = vset.pattern.permute.xlu2 %v6897_v50 }
 0x1ee   : > { %1553 = vperm.xlu1 %3850, %v1305_v44   ;;  %2001 = vperm.xlu2 %3852, %v4520_v51  }
 0x1ef   : > { %v4522_v53 = vpop.permute.xlu2 %931 }
 0x1f0   : > { %7085 = vst [vmem:[#allocation12_spill] sm:$0xff] %v4522_v53 }
 0x1f6   : > { %1642 = vperm.xlu1 %3850, %v1312_v46  }
 0x1f7   : > { %v4513_v48 = vpop.permute.xlu0 %3780  ;;  %v4563_v16 = vpop.permute.xlu2 %3810 }
 0x1f8   : > { %v4515_v49 = vpop.permute.xlu1 %3770  ;;  %v6906_v11 = vunpack.i.h.bf16 %v4513_v48  ;;  %v3782_v12 = vunpack.i.l.bf16 %v4513_v48  ;;  %v6904_v61 = vunpack.i.h.bf16 %v4563_v16  ;;  %v3812_v4 = vunpack.i.l.bf16 %v4563_v16 }
 0x1f9   : > { %v3773_v54 = vunpack.i.h.bf16 %v4515_v49  ;;  %v3772_v55 = vunpack.i.l.bf16 %v4515_v49 }
 0x1fa   : > { %v938_v41 = vsel %vm7053_vm6, %v3782_v12, %v6906_v11 }
 0x1fb   : > { %v1026_v6 = vsel %vm7055_vm1, %v3772_v55, %v3773_v54 }
 0x1fe   : > { %1975 = vperm.xlu1 %3850, %v4520_v51  }
 0x1ff   : > { %v4527_v56 = vpop.permute.xlu0 %3785 }
 0x200   : > { %v4529_v58 = vpop.permute.xlu1 %3795  ;;  %v6903_v62 = vunpack.i.h.bf16 %v4527_v56 }
 0x201   : > { %v3798_v0 = vunpack.i.h.bf16 %v4529_v58  ;;  %v3797_v2 = vunpack.i.l.bf16 %v4529_v58 }
 0x203   : > { %v1028_v8 = vsel %vm7055_vm1, %v3797_v2, %v3798_v0  ;;  %v4600_v2 = vunpack.i.l.bf16 %v4527_v56 }
 0x204   : > { %v1048_v9 = vpack.c.bf16 %v1028_v8, %v1026_v6 }
 0x205   : > { %7091 = vst [vmem:[#allocation14_spill] sm:$0xff] %v4600_v2  ;;  %v915_v10 = vsel %vm914_vm8, %v4600_v2, %v6903_v62 }
 0x206   : > { %1074 = vmatpush.bf16.msrb.mxu2 %v1048_v9  ;;  %3851 = vset.pattern.permute.xlu1 %v6897_v50  ;;  %v4607_v9 = vpop.permute.xlu2 %3845 }
 0x207   : > { %v4551_v13 = vpop.permute.xlu0 %3790  ;;  %1997 = vperm.xlu1 %3851, %v4575_v23  }
 0x208   : > { %v4565_v17 = vpop.permute.xlu1 %3815 }
 0x209   : > { %v3818_v20 = vunpack.i.h.bf16 %v4565_v17  ;;  %v3817_v22 = vunpack.i.l.bf16 %v4565_v17  ;;  %v7100_v17 = vmov 0 }
 0x20a   : > { %3525 = vmatpush.bf16.msk.msrb.mxu2 %vm4559_vm4, %v3524_v19  ;;  %v621_v19 = vadd.s32 128, %v620_v52 }
 0x20b   : > { %v940_v44 = vsel %vm7053_vm6, %v3817_v22, %v3818_v20  ;;  %v4623_v22 = vld [vmem:[%s6869_s14 + $0x18] sm:$0xff]  ;;  %v941_v36 = vsel %vm7053_vm6, %v3818_v20, %v4522_v53 }
 0x20c   : > { %v3527_v55 = vpack.c.bf16 %v940_v44, %v938_v41  ;;  %v4632_v41 = vunpack.i.l.bf16 %v4551_v13 }
 0x20e   : > { %3528 = vmatpush.bf16.msk.msrb.mxu2 %vm4586_vm7, %v3527_v55  ;;  %7092 = vst [vmem:[#allocation15_spill] sm:$0xff] %v4632_v41 }
 0x20f   : > { %v4602_v5 = vpop.permute.xlu0 %3805  ;;  %2009 = vperm.xlu1 %3851, %v4623_v22  }
 0x210   : > { %v4604_v6 = vpop.permute.xlu1 %3820  ;;  %v3808_v49 = vunpack.i.h.bf16 %v4602_v5 }
 0x211   : > { %v6905_v8 = vunpack.i.l.bf16 %v4604_v6 }
 0x212   : > { %1077 = vmatpush.bf16.msrb.mxu2 %v1042_v7  ;;  %v3793_v7 = vunpack.i.h.bf16 %v4551_v13 }
 0x213   : > { %v917_v12 = vsel %vm914_vm8, %v4600_v2, %v6905_v8 }
 0x214   : > { %v3530_v14 = vpack.c.bf16 %v917_v12, %v915_v10  ;;  %v4640_v12 = vand.u32 15, %v621_v19  ;;  %v984_v19 = vsel %vm983_vm9, %v3812_v4, %v6904_v61  ;;  %v892_v58 = vsel %vm891_vm10, %v4632_v41, %v3793_v7  ;;  %v1005_v61 = vpop.permute.xlu2 %1004 }
 0x215   : > { %v1027_v4 = vsel %vm7055_vm1, %v3773_v54, %v4478_v18  ;;  %v4684_v54 = vunpack.i.l.bf16 %v4602_v5  ;;  %v7099_v5 = vunpack.i.h.bf16 %v4513_v48  ;;  %v3823_v48 = vunpack.i.h.bf16 %v4604_v6 }
 0x216   : > { %3531 = vmatpush.bf16.msk.msrb.mxu2 %vm4559_vm4, %v3530_v14  ;;  %7093 = vst [vmem:[#allocation16_spill] sm:$0xff] %v4640_v12  ;;  %v1029_v14 = vsel %vm7055_vm1, %v3798_v0, %v4478_v18  ;;  %vm7020_vm11 = vcmp.ge.s32.totalorder %v4640_v12, 1  ;;  %vm6907_vm14 = vcmp.lt.s32.totalorder %v4640_v12, 15 }
 0x217   : > { %v4634_v52 = vpop.permute.xlu0 %3840  ;;  %v1049_v11 = vpack.c.bf16 %v1029_v14, %v1027_v4  ;;  %7095 = vst [vmem:[#allocation17_spill] sm:$0xff] %v4684_v54  ;;  %vm4693_vm12 = vmpackc.low %vm7020_vm11, %vm7020_vm11  ;;  %v3847_v4 = vunpack.i.l.bf16 %v4607_v9 }
 0x218   : > { %v3843_v44 = vunpack.i.h.bf16 %v4634_v52  ;;  %v3842_v55 = vunpack.i.l.bf16 %v4634_v52  ;;  %v4638_v10 = vpop.permute.xlu1 %3825  ;;  %vm4717_vm15 = vmpackc.low %vm6907_vm14, %vm6907_vm14  ;;  %vm864_vm14 = vcmask 138240  }
 0x219   : > { %v3827_v50 = vunpack.i.l.bf16 %v4638_v10  ;;  %v7101_v17 = vsel %vm4717_vm15, 4294967295, %v7100_v17 }
 0x21a   : > { %v986_v62 = vsel %vm983_vm9, %v3842_v55, %v3843_v44  ;;  %v4672_v55 = vor.u32 %v3668_v37, %v3519_v38  ;;  %v962_v37 = vsel %vm7052_vm3, %v3778_v3, %v4486_v21  ;;  %v7096_v38 = vmov 0  ;;  %7102 = vst [vmem:[#allocation19_spill] sm:$0xff] %v7101_v17 }
 0x21b   : > { %v894_v0 = vsel %vm891_vm10, %v4632_v41, %v3827_v50  ;;  %v3539_v1 = vpack.c.bf16 %v986_v62, %v984_v19  ;;  %v964_v62 = vsel %vm7052_vm3, %v3803_v60, %v4486_v21  ;;  %v7097_v38 = vsel %vm4693_vm12, 4294967295, %v7096_v38 }
 0x21c   : > { %v3533_v8 = vpack.c.bf16 %v894_v0, %v892_v58  ;;  %7098 = vst [vmem:[#allocation18_spill] sm:$0xff] %v7097_v38  ;;  %v3543_v47 = vpack.c.bf16 %v964_v62, %v962_v37  ;;  %v1007_v3 = vsel %vm1006_vm13, %v4684_v54, %v3808_v49  ;;  %v4721_v19 = vpop.permute.xlu2 %1054  ;;  %v7103_v62 = vunpack.i.l.bf16 %v4604_v6 }
 0x21d   : > { %3540 = vmatpush.bf16.msk.msra.mxu3 %vm4586_vm7, %v3539_v1  ;;  %v7106_v6 = vunpack.i.h.bf16 %v4527_v56 }
 0x21e   : > { %3534 = vmatpush.bf16.msk.msrb.mxu2 %vm4586_vm7, %v3533_v8  ;;  %v939_v8 = vsel %vm7053_vm6, %v7099_v5, %v4522_v53 }
 0x21f   : > { %v3546_v14 = vpack.c.bf16 %v941_v36, %v939_v8  ;;  %v913_v58 = vpop.permute.xlu0 %912  ;;  %v7105_v36 = vpack.c.bf16 %v4407_v63, %v4403_v57  ;;  %v916_v8 = vsel %vm914_vm8, %v7106_v6, %v3823_v48 }
 0x220   : > { %v3831_v1 = vpop.permute.xlu1 %3830  ;;  %3541 = vmatmul.msk.bf16.vlgmr.msra.gmra.mxu3 %vm1006_vm13, %v4672_v55  ;;  %v918_v37 = vsel %vm914_vm8, %v7103_v62, %v913_v58  ;;  %v3828_v58 = vunpack.i.h.bf16 %v4638_v10 }
 0x221   : > { %1102 = vmatpush.bf16.msrb.mxu3 %v1049_v11  ;;  %v3832_v60 = vunpack.i.l.bf16 %v3831_v1  ;;  %v3549_v57 = vpack.c.bf16 %v918_v37, %v916_v8  ;;  %v3833_v48 = vunpack.i.h.bf16 %v3831_v1  ;;  %v3848_v1 = vunpack.i.h.bf16 %v4607_v9 }
 0x223   : > { %v1009_v11 = vsel %vm1006_vm13, %v4684_v54, %v3832_v60  ;;  %v1010_v6 = vsel %vm1006_vm13, %v3832_v60, %v1005_v61 }
 0x224   : > { %v1036_v20 = vpack.c.bf16 %v1009_v11, %v1007_v3  ;;  %v3517_v3 = vld [vmem:[%s7094_s4] sm:$0xf]  ;;  %v3669_v11 = vld [vmem:[%s7094_s4 + $0x4] sm:$0xf0]  ;;  %v4753_v56 = vpop.permute.xlu2 %1143  ;;  %s6996_s4 = smov 96  }
 0x225   : > { %3544 = vmatpush.bf16.msk.msrb.mxu3 %vm4693_vm12, %v3543_v47 }
 0x226   : > { %1080 = vmatpush.bf16.msrb.mxu2 %v1036_v20 }
 0x227   : > { %v863_v8 = vpop.permute.xlu0 %862 }
 0x228   : > { %v3836_v0 = vpop.permute.xlu1 %3835 }
 0x229   : > { %3547 = vmatpush.bf16.msk.msrb.mxu3 %vm4717_vm15, %v3546_v14  ;;  %v3838_v47 = vunpack.i.h.bf16 %v3836_v0  ;;  %v4730_v5 = vunpack.i.l.bf16 %v3836_v0  ;;  %v3518_v0 = vor.u32 %v3669_v11, %v3517_v3  ;;  %v1008_v11 = vsel %vm1006_vm13, %v3808_v49, %v3833_v48 }
 0x22a   : > { %v7108_v49 = vunpack.i.h.bf16 %v4563_v16 }
 0x22b   : > { %7104 = vst [vmem:[#allocation20_spill] sm:$0xff] %v4730_v5  ;;  %v865_v20 = vsel %vm864_vm14, %v4730_v5, %v3838_v47  ;;  %v867_v14 = vsel %vm864_vm14, %v4730_v5, %v3847_v4  ;;  %v866_v13 = vsel %vm864_vm14, %v3838_v47, %v3848_v1 }
 0x22c   : > { %v3536_v63 = vpack.c.bf16 %v867_v14, %v865_v20  ;;  %v1037_v20 = vpack.c.bf16 %v1010_v6, %v1008_v11  ;;  %v4769_v10 = vpop.permute.xlu2 %1158 }
 0x22d   : > { %1105 = vmatpush.bf16.msrb.mxu3 %v7105_v36  ;;  %v893_v36 = vsel %vm891_vm10, %v3793_v7, %v3828_v58 }
 0x22e   : > { %3537 = vmatpush.bf16.msk.msrb.mxu2 %vm4559_vm4, %v3536_v63 }
 0x22f   : > { %v4799_v58 = vpop.permute.xlu0 %1059 }
 0x230   : > { %v890_v62 = vpop.permute.xlu1 %889 }
 0x231   : > { %3550 = vmatpush.bf16.msk.msrb.mxu3 %vm4693_vm12, %v3549_v57  ;;  %v895_v37 = vsel %vm891_vm10, %v3827_v50, %v890_v62  ;;  %1082 = vmatmul.bf16.vlgmr.msrb.gmra.mxu2 %v3518_v0  ;;  %v868_v50 = vsel %vm864_vm14, %v3847_v4, %v863_v8  ;;  %v4123_v57 = vmov 2  }
 0x232   : > { %v3552_v3 = vpack.c.bf16 %v895_v37, %v893_v36  ;;  %v3555_v60 = vpack.c.bf16 %v868_v50, %v866_v13  ;;  %3855 = vset.pattern.permute.xlu1 %v4123_v57  ;;  %3854 = vset.pattern.permute.xlu0 %v4123_v57  ;;  %v4124_v37 = vmov 3  }
 0x233   : > { %2089 = vperm.xlu1 %3855, %v4520_v51   ;;  %3856 = vset.pattern.permute.xlu2 %v4123_v57  ;;  %v4127_v57 = vmov 6  }
 0x234   : > { %v4788_v16 = vpop.permute.xlu2 %1173 }
 0x235   : > { %3553 = vmatpush.bf16.msk.msrb.mxu3 %vm4717_vm15, %v3552_v3 }
 0x237   : > { %v4806_v48 = vpop.permute.xlu0 %1148 }
 0x238   : > { %v4767_v7 = vpop.permute.xlu1 %977 }
 0x239   : > { %7107 = vst [vmem:[#allocation21_spill] sm:$0xff] %v4767_v7  ;;  %1108 = vmatpush.bf16.msrb.mxu3 %v1037_v20  ;;  %v985_v61 = vsel %vm983_vm9, %v7108_v49, %v4767_v7  ;;  %v987_v9 = vsel %vm983_vm9, %v3843_v44, %v4767_v7 }
 0x23a   : > { %v3558_v14 = vpack.c.bf16 %v987_v9, %v985_v61 }
 0x23b   : > { %2097 = vperm.xlu1 %3855, %v4623_v22  }
 0x23c   : > { %3559 = vmatpush.bf16.msk.msra.mxu2 %vm4717_vm15, %v3558_v14  ;;  %v4792_v52 = vpop.permute.xlu2 %1632  ;;  %v4126_v14 = vmov 5  }
 0x23d   : > { %3556 = vmatpush.bf16.msk.msrb.mxu3 %vm4693_vm12, %v3555_v60  ;;  %7109 = vst [vmem:[#allocation22_spill] sm:$0xff] %v4792_v52  ;;  %v4125_v60 = vmov 4  }
 0x23f   : > { %v4815_v11 = vpop.permute.xlu0 %1163 }
 0x240   : > { %1110 = vmatmul.bf16.vlgmr.msrb.gmra.mxu3 %v3518_v0  ;;  %v4784_v4 = vpop.permute.xlu1 %1138  ;;  %v7194_v46 = vld [vmem:[#allocation21_spill] sm:$0xff] }
 0x241   : > { %3560 = vmatmul.msk.bf16.vlgmr.msra.gmra.mxu2 %vm1006_vm13, %v4672_v55 }
 0x243   : > { %3859 = vset.pattern.permute.xlu1 %v4124_v37 }
 0x244   : > { %v4797_v63 = vpop.permute.xlu2 %1647  ;;  %2125 = vperm.xlu1 %3859, %v4505_v45  }
 0x245   : > { %7110 = vst [vmem:[#allocation23_spill] sm:$0xff] %v4797_v63 }
 0x247   : > { %v4819_v1 = vpop.permute.xlu0 %1324 }
 0x248   : > { %v4790_v47 = vpop.permute.xlu1 %1153 }
 0x24c   : > { %v4804_v55 = vpop.permute.xlu2 %1980  ;;  %3860 = vset.pattern.permute.xlu1 %v4125_v60 }
 0x24d   : > { %7111 = vst [vmem:[#allocation24_spill] sm:$0xff] %v4804_v55  ;;  %2149 = vperm.xlu1 %3860, %v4575_v23  }
 0x250   : > { %v4794_v44 = vpop.permute.xlu1 %1168  ;;  %v4823_v20 = vpop.permute.xlu0 %2005 }
 0x251   : > { %7117 = vst [vmem:[#allocation29_spill] sm:$0xff] %v4823_v20  ;;  %v2018_v50 = vmul.f32 0.0, %v4823_v20 }
 0x254   : > { %v4810_v36 = vpop.permute.xlu2 %2001 }
 0x255   : > { %7113 = vst [vmem:[#allocation26_spill] sm:$0xff] %v4810_v36  ;;  %v2015_v3 = vmul.f32 0.0, %v4810_v36  ;;  %2161 = vperm.xlu1 %3860, %v4623_v22  }
 0x257   : > { %2042 = vrot.lane.b32.xlu0 %v2015_v3, %s7114_s24 }
 0x258   : > { %v4801_v0 = vpop.permute.xlu1 %1329 }
 0x25d   : > { %3864 = vset.pattern.permute.xlu1 %v4126_v14 }
 0x25e   : > { %2185 = vperm.xlu1 %3864, %v4520_v51  }
 0x25f   : > { %2048 = vrot.lane.b32.xlu0 %v2018_v50, %s7114_s24  ;;  %v4128_v50 = vmov 7  }
 0x260   : > { %v4808_v62 = vpop.permute.xlu1 %1553 }
 0x261   : > { %7112 = vst [vmem:[#allocation25_spill] sm:$0xff] %v4808_v62 }
 0x266   : > { %3866 = vset.pattern.permute.xlu1 %v4127_v57 }
 0x267   : > { %2213 = vperm.xlu1 %3866, %v4575_v23  }
 0x268   : > { %v4817_v6 = vpop.permute.xlu1 %1642 }
 0x269   : > { %7115 = vst [vmem:[#allocation27_spill] sm:$0xff] %v4817_v6 }
 0x26f   : > { %2221 = vperm.xlu1 %3866, %v4505_v45  }
 0x270   : > { %v4821_v8 = vpop.permute.xlu1 %1975 }
 0x271   : > { %7116 = vst [vmem:[#allocation28_spill] sm:$0xff] %v4821_v8 }
 0x277   : > { %3869 = vset.pattern.permute.xlu1 %v4128_v50 }
 0x278   : > { %2249 = vperm.xlu1 %3869, %v4520_v51  }
 0x279   : > { %v4825_v13 = vpop.permute.xlu1 %1997 }
 0x27a   : > { %7118 = vst [vmem:[#allocation30_spill] sm:$0xff] %v4825_v13  ;;  %v2012_v49 = vmul.f32 0.0, %v4825_v13 }
 0x27c   : > { %2036 = vrot.lane.b32.xlu2 %v2012_v49, %s7114_s24 }
 0x280   : > { %2257 = vperm.xlu1 %3869, %v4623_v22  }
 0x281   : > { %v4831_v61 = vpop.permute.xlu1 %2009 }
 0x282   : > { %7119 = vst [vmem:[#allocation31_spill] sm:$0xff] %v4831_v61  ;;  %v2021_v9 = vmul.f32 0.0, %v4831_v61 }
 0x284   : > { %2054 = vrot.lane.b32.xlu0 %v2021_v9, %s7114_s24  ;;  %2093 = vperm.xlu2 %3856, %v4505_v45  }
 0x28c   : > { %2085 = vperm.xlu0 %3854, %v4575_v23   ;;  %3857 = vset.pattern.permute.xlu2 %v4124_v37 }
 0x28d   : > { %2117 = vperm.xlu2 %3857, %v4575_v23  }
 0x294   : > { %3858 = vset.pattern.permute.xlu0 %v4124_v37 }
 0x295   : > { %2121 = vperm.xlu0 %3858, %v4520_v51   ;;  %2129 = vperm.xlu2 %3857, %v4623_v22  }
 0x29d   : > { %3862 = vset.pattern.permute.xlu0 %v4125_v60  ;;  %3861 = vset.pattern.permute.xlu2 %v4125_v60 }
 0x29e   : > { %2157 = vperm.xlu0 %3862, %v4505_v45   ;;  %2153 = vperm.xlu2 %3861, %v4520_v51  }
 0x2a3   : > { %v1097_v37 = vpop.f32.mrf.mxu3 }
 0x2a6   : > { %3865 = vset.pattern.permute.xlu0 %v4126_v14  ;;  %3863 = vset.pattern.permute.xlu2 %v4126_v14 }
 0x2a7   : > { %2193 = vperm.xlu0 %3865, %v4623_v22   ;;  %2181 = vperm.xlu2 %3863, %v4575_v23  }
 0x2ab   : > { %v1099_v9 = vpop.f32.mrf.mxu3 }
 0x2af   : > { %3868 = vset.pattern.permute.xlu0 %v4128_v50  ;;  %2189 = vperm.xlu2 %3863, %v4505_v45  }
 0x2b0   : > { %2245 = vperm.xlu0 %3868, %v4575_v23  }
 0x2b4   : > { %v1083_v3 = vpop.f32.mrf.mxu2 }
 0x2b5   : > { %v1084_v49 = vadd.f32 %v1083_v3, %v4721_v19  ;;  %v3670_v3 = vld [vmem:[%s7120_s6] sm:$0xff] }
 0x2b7   : > { %v1098_v55 = vadd.f32 %v1097_v37, %v1084_v49  ;;  %3867 = vset.pattern.permute.xlu2 %v4127_v57 }
 0x2b8   : > { %2217 = vperm.xlu2 %3867, %v4520_v51  }
 0x2b9   : > { %v1130_v8 = vmax.f32 %v1098_v55, 0.0 }
 0x2bc   : > { %v1085_v60 = vpop.f32.mrf.mxu2 }
 0x2bd   : > { %v1086_v61 = vadd.f32 %v1085_v60, %v4799_v58 }
 0x2bf   : > { %v1100_v14 = vadd.f32 %v1099_v9, %v1086_v61 }
 0x2c0   : > { %2225 = vperm.xlu2 %3867, %v4623_v22  }
 0x2c1   : > { %v1132_v12 = vmax.f32 %v1100_v14, 0.0 }
 0x2c3   : > { %v1111_v59 = vpop.f32.mrf.mxu3  ;;  %v1134_v20 = vpack.c.bf16 %v1132_v12, %v1130_v8 }
 0x2c4   : > { %v1125_v63 = vpop.f32.mrf.mxu2  ;;  %v1112_v37 = vadd.f32 %v1111_v59, %v4721_v19  ;;  %v3671_v59 = vld [vmem:[%s7120_s6 + $0x8] sm:$0xff]  ;;  %v3672_v19 = vld [vmem:[%s7120_s6 + $0x10] sm:$0xff] }
 0x2c5   : > { %1215 = vmatpush.bf16.msra.mxu0 %v1134_v20 }
 0x2c6   : > { %v1126_v61 = vadd.f32 %v1125_v63, %v1112_v37  ;;  %v3673_v37 = vld [vmem:[%s7120_s6 + $0x18] sm:$0xff]  ;;  %s6990_s6 = smov 94  }
 0x2c8   : > { %3577 = vmatmul.msk.bf16.vlgmr.msra.gmra.mxu0 %vm1006_vm13, %v3670_v3  ;;  %v1131_v8 = vmax.f32 %v1126_v61, 0.0  ;;  %3870 = vset.pattern.permute.xlu2 %v4128_v50 }
 0x2c9   : > { %2253 = vperm.xlu2 %3870, %v4505_v45   ;;  %v4878_v20 = vpop.permute.xlu0 %2042 }
 0x2ca   : > { %7123 = vst [vmem:[#allocation34_spill] sm:$0xff] %v4878_v20 }
 0x2cb   : > { %v1113_v55 = vpop.f32.mrf.mxu3 }
 0x2cc   : > { %v1114_v57 = vadd.f32 %v1113_v55, %v4799_v58  ;;  %v1127_v49 = vpop.f32.mrf.mxu2  ;;  %v4875_v58 = vpop.permute.xlu1 %2089 }
 0x2cd   : > { %7122 = vst [vmem:[#allocation33_spill] sm:$0xff] %v4875_v58 }
 0x2ce   : > { %v1128_v12 = vadd.f32 %v1127_v49, %v1114_v57 }
 0x2d0   : > { %v1133_v9 = vmax.f32 %v1128_v12, 0.0 }
 0x2d2   : > { %v1135_v60 = vpack.c.bf16 %v1133_v9, %v1131_v8 }
 0x2d4   : > { %1244 = vmatpush.bf16.msrb.mxu1 %v1135_v60  ;;  %v4882_v14 = vpop.permute.xlu1 %2097 }
 0x2d5   : > { %7125 = vst [vmem:[#allocation36_spill] sm:$0xff] %v4882_v14 }
 0x2d6   : > { %v4873_v63 = vpop.permute.xlu2 %2036 }
 0x2d7   : > { %3581 = vmatmul.msk.bf16.vlgmr.msrb.gmra.mxu1 %vm1006_vm13, %v3670_v3  ;;  %7121 = vst [vmem:[#allocation32_spill] sm:$0xff] %v4873_v63  ;;  %v4884_v3 = vpop.permute.xlu0 %2048 }
 0x2d8   : > { %3578 = vmatmul.msk.bf16.gmra.mxu0 %vm1006_vm13, %v3671_v59  ;;  %7126 = vst [vmem:[#allocation37_spill] sm:$0xff] %v4884_v3 }
 0x2dc   : > { %v4893_v61 = vpop.permute.xlu1 %2125 }
 0x2dd   : > { %7128 = vst [vmem:[#allocation39_spill] sm:$0xff] %v4893_v61 }
 0x2de   : > { %v4880_v50 = vpop.permute.xlu2 %2093 }
 0x2df   : > { %7124 = vst [vmem:[#allocation35_spill] sm:$0xff] %v4880_v50 }
 0x2e4   : > { %v4899_v12 = vpop.permute.xlu1 %2149 }
 0x2e5   : > { %7131 = vst [vmem:[#allocation42_spill] sm:$0xff] %v4899_v12 }
 0x2e7   : > { %3582 = vmatmul.msk.bf16.gmra.mxu1 %vm1006_vm13, %v3671_v59  ;;  %v4890_v55 = vpop.permute.xlu2 %2117 }
 0x2e8   : > { %3579 = vmatmul.msk.bf16.gmra.mxu0 %vm1006_vm13, %v3672_v19  ;;  %7127 = vst [vmem:[#allocation38_spill] sm:$0xff] %v4890_v55  ;;  %v7150_v55 = vmov 0.0  }
 0x2ec   : > { %v4908_v59 = vpop.permute.xlu1 %2161 }
 0x2ed   : > { %7135 = vst [vmem:[#allocation46_spill] sm:$0xff] %v4908_v59 }
 0x2ef   : > { %v4897_v49 = vpop.permute.xlu2 %2129 }
 0x2f0   : > { %7130 = vst [vmem:[#allocation41_spill] sm:$0xff] %v4897_v49 }
 0x2f4   : > { %v4914_v61 = vpop.permute.xlu1 %2185 }
 0x2f5   : > { %7138 = vst [vmem:[#allocation49_spill] sm:$0xff] %v4914_v61 }
 0x2f6   : > { %v4895_v57 = vpop.permute.xlu0 %2054 }
 0x2f7   : > { %3583 = vmatmul.msk.bf16.gmra.mxu1 %vm1006_vm13, %v3672_v19  ;;  %7129 = vst [vmem:[#allocation40_spill] sm:$0xff] %v4895_v57 }
 0x2f8   : > { %3580 = vmatmul.msk.bf16.gmra.mxu0 %vm1006_vm13, %v3673_v37  ;;  %v4904_v9 = vpop.permute.xlu2 %2153 }
 0x2f9   : > { %7133 = vst [vmem:[#allocation44_spill] sm:$0xff] %v4904_v9 }
 0x2fc   : > { %v4920_v14 = vpop.permute.xlu1 %2213 }
 0x2fd   : > { %7141 = vst [vmem:[#allocation52_spill] sm:$0xff] %v4920_v14 }
 0x2fe   : > { %v4901_v8 = vpop.permute.xlu0 %2085 }
 0x2ff   : > { %7132 = vst [vmem:[#allocation43_spill] sm:$0xff] %v4901_v8 }
 0x301   : > { %v4910_v19 = vpop.permute.xlu2 %2181 }
 0x302   : > { %7136 = vst [vmem:[#allocation47_spill] sm:$0xff] %v4910_v19  ;;  %v4130_v19 = vmov 10  }
 0x303   : > { %3875 = vset.pattern.permute.xlu0 %v4130_v19 }
 0x304   : > { %v4926_v9 = vpop.permute.xlu1 %2221  ;;  %2691 = vperm.xlu0 %3875, %v4575_v23  }
 0x305   : > { %7144 = vst [vmem:[#allocation55_spill] sm:$0xff] %v4926_v9 }
 0x307   : > { %3584 = vmatmul.msk.bf16.gmra.mxu1 %vm1006_vm13, %v3673_v37  ;;  %v4906_v60 = vpop.permute.xlu0 %2121 }
 0x308   : > { %7134 = vst [vmem:[#allocation45_spill] sm:$0xff] %v4906_v60 }
 0x309   : > { %v4916_v50 = vpop.permute.xlu2 %2189 }
 0x30a   : > { %7139 = vst [vmem:[#allocation50_spill] sm:$0xff] %v4916_v50 }
 0x30c   : > { %2404 = vrot.lane.b32.xlu0 %v7150_v55, %s6973_s28  ;;  %s7206_s28 = smov 30  }
 0x310   : > { %v4912_v3 = vpop.permute.xlu0 %2157 }
 0x311   : > { %7137 = vst [vmem:[#allocation48_spill] sm:$0xff] %v4912_v3  ;;  %v4932_v3 = vpop.permute.xlu1 %2249 }
 0x312   : > { %v4922_v57 = vpop.permute.xlu2 %2217  ;;  %7147 = vst [vmem:[#allocation57_spill] sm:$0xff] %v4932_v3  ;;  %v2265_v50 = vmul.f32 0.0, %v4932_v3 }
 0x313   : > { %7142 = vst [vmem:[#allocation53_spill] sm:$0xff] %v4922_v57 }
 0x319   : > { %v4918_v49 = vpop.permute.xlu0 %2193  ;;  %v4940_v61 = vpop.permute.xlu1 %2257 }
 0x31a   : > { %7140 = vst [vmem:[#allocation51_spill] sm:$0xff] %v4918_v49  ;;  %v4930_v60 = vpop.permute.xlu2 %2225  ;;  %v2271_v9 = vmul.f32 0.0, %v4940_v61 }
 0x31b   : > { %7146 = vst [vmem:[#allocation56_spill] sm:$0xff] %v4930_v60 }
 0x31c   : > { %7149 = vst [vmem:[#allocation59_spill] sm:$0xff] %v4940_v61 }
 0x322   : > { %v4924_v37 = vpop.permute.xlu0 %2245 }
 0x323   : > { %7143 = vst [vmem:[#allocation54_spill] sm:$0xff] %v4924_v37  ;;  %v2262_v59 = vmul.f32 0.0, %v4924_v37  ;;  %v4936_v49 = vpop.permute.xlu2 %2253 }
 0x324   : > { %7148 = vst [vmem:[#allocation58_spill] sm:$0xff] %v4936_v49  ;;  %v2268_v57 = vmul.f32 0.0, %v4936_v49 }
 0x325   : > { %2288 = vrot.lane.b32.xlu1 %v2262_v59, %s7145_s27 }
 0x32d   : > { %2294 = vrot.lane.b32.xlu1 %v2265_v50, %s7145_s27  ;;  %v6939_v50 = vmov 8  }
 0x32e   : > { %3872 = vset.pattern.permute.xlu1 %v6939_v50  ;;  %3871 = vset.pattern.permute.xlu2 %v6939_v50 }
 0x32f   : > { %2333 = vperm.xlu2 %3871, %v4575_v23  }
 0x335   : > { %2300 = vrot.lane.b32.xlu1 %v2268_v57, %s7145_s27 }
 0x337   : > { %3873 = vset.pattern.permute.xlu2 %v4130_v19 }
 0x338   : > { %2703 = vperm.xlu2 %3873, %v4623_v22  }
 0x33d   : > { %2306 = vrot.lane.b32.xlu1 %v2271_v9, %s7145_s27 }
 0x340   : > { %2695 = vperm.xlu2 %3873, %v4520_v51  }
 0x345   : > { %v1217_v58 = vpop.f32.mrf.mxu0  ;;  %2341 = vperm.xlu1 %3872, %v4505_v45  }
 0x34d   : > { %v1219_v59 = vpop.f32.mrf.mxu0  ;;  %3874 = vset.pattern.permute.xlu1 %v4130_v19 }
 0x34e   : > { %2699 = vperm.xlu1 %3874, %v4505_v45  }
 0x354   : > { %v4944_v60 = vpop.f32.mrf.mxu1 }
 0x355   : > { %v1222_v20 = vpop.f32.mrf.mxu0 }
 0x356   : > { %v1223_v7 = vadd.f32 %v1222_v20, %v4806_v48 }
 0x35c   : > { %v4946_v14 = vpop.f32.mrf.mxu1 }
 0x35d   : > { %v1224_v57 = vpop.f32.mrf.mxu0 }
 0x35e   : > { %v1225_v52 = vadd.f32 %v1224_v57, %v4790_v47 }
 0x364   : > { %v4952_v61 = vpop.f32.mrf.mxu1 }
 0x365   : > { %v1227_v9 = vpop.f32.mrf.mxu0 }
 0x366   : > { %v1228_v19 = vadd.f32 %v1227_v9, %v4769_v10  ;;  %v1272_v9 = vadd.f32 %v1225_v52, %v4349_v30 }
 0x36c   : > { %v1253_v12 = vpop.f32.mrf.mxu1 }
 0x36d   : > { %v1229_v50 = vpop.f32.mrf.mxu0 }
 0x36e   : > { %v1230_v6 = vadd.f32 %v1229_v50, %v4815_v11  ;;  %v1220_v50 = vadd.f32 %v1219_v59, %v4753_v56  ;;  %v3674_v59 = vld [vmem:[%s7151_s8] sm:$0xff]  ;;  %s7213_s8 = smov 98  }
 0x370   : > { %v1276_v62 = vadd.f32 %v1230_v6, %v4357_v34  ;;  %v1218_v34 = vadd.f32 %v1217_v58, %v4784_v4  ;;  %v1288_v6 = vmax.f32 %v1272_v9, 0.0 }
 0x374   : > { %v1256_v8 = vpop.f32.mrf.mxu1 }
 0x375   : > { %v1232_v63 = vpop.f32.mrf.mxu0 }
 0x376   : > { %v1233_v49 = vadd.f32 %v1232_v63, %v4794_v44  ;;  %v1274_v63 = vadd.f32 %v1228_v19, %v4353_v32  ;;  %v1270_v32 = vadd.f32 %v1223_v7, %v4345_v28 }
 0x378   : > { %v1278_v3 = vadd.f32 %v1233_v49, %v4369_v39  ;;  %v1292_v39 = vmax.f32 %v1276_v62, 0.0 }
 0x37a   : > { %v1294_v5 = vmax.f32 %v1278_v3, 0.0  ;;  %v1257_v3 = vadd.f32 %v1256_v8, %v4769_v10  ;;  %v1252_v10 = vadd.f32 %v4952_v61, %v4806_v48  ;;  %v4133_v8 = vmov 9  }
 0x37b   : > { %3881 = vset.pattern.permute.xlu0 %v4133_v8  ;;  %v1247_v48 = vadd.f32 %v4944_v60, %v4784_v4 }
 0x37c   : > { %v1258_v36 = vpop.f32.mrf.mxu1 }
 0x37d   : > { %v1234_v13 = vpop.f32.mrf.mxu0  ;;  %v1259_v62 = vadd.f32 %v1258_v36, %v4815_v11 }
 0x37e   : > { %v1235_v37 = vadd.f32 %v1234_v13, %v4788_v16  ;;  %v4132_v13 = vmov 16  }
 0x37f   : > { %3877 = vset.pattern.permute.xlu2 %v4132_v13  ;;  %3876 = vset.pattern.permute.xlu1 %v4132_v13 }
 0x380   : > { %v1280_v17 = vadd.f32 %v1235_v37, %v4376_v42  ;;  %2948 = vperm.xlu2 %3877, %v4505_v45   ;;  %2952 = vperm.xlu1 %3876, %v4623_v22   ;;  %v1290_v42 = vmax.f32 %v1274_v63, 0.0 }
 0x382   : > { %v1296_v38 = vmax.f32 %v1280_v17, 0.0  ;;  %v1268_v17 = vadd.f32 %v1220_v50, %v4341_v26  ;;  %v1318_v52 = vpack.c.bf16 %v1292_v39, %v1290_v42  ;;  %v4137_v50 = vmov 12  }
 0x384   : > { %v1261_v54 = vpop.f32.mrf.mxu1  ;;  %v1320_v49 = vpack.c.bf16 %v1296_v38, %v1294_v5  ;;  %v1266_v38 = vadd.f32 %v1218_v34, %v4337_v24  ;;  %v1286_v5 = vmax.f32 %v1270_v32, 0.0  ;;  %v1284_v58 = vmax.f32 %v1268_v17, 0.0 }
 0x385   : > { %v1262_v30 = vadd.f32 %v1261_v54, %v4794_v44  ;;  %v1254_v24 = vadd.f32 %v1253_v12, %v4790_v47  ;;  %v1277_v54 = vadd.f32 %v1259_v62, %v4359_v35  ;;  %v1249_v35 = vadd.f32 %v4946_v14, %v4753_v56 }
 0x386   : > { %1344 = vmatpush.bf16.msrb.mxu2 %v1320_v49  ;;  %v1316_v37 = vpack.c.bf16 %v1288_v6, %v1286_v5  ;;  %v1282_v26 = vmax.f32 %v1266_v38, 0.0  ;;  %v4140_v17 = vmov 13   ;;  %v5044_v5 = vpop.permute.xlu0 %2691 }
 0x387   : > { %v1279_v28 = vadd.f32 %v1262_v30, %v4371_v40  ;;  %v1275_v40 = vadd.f32 %v1257_v3, %v4355_v33  ;;  %v1293_v47 = vmax.f32 %v1277_v54, 0.0  ;;  %v1271_v33 = vadd.f32 %v1252_v10, %v4347_v29 }
 0x388   : > { %2940 = vperm.xlu2 %3877, %v4575_v23   ;;  %2944 = vperm.xlu1 %3876, %v4520_v51   ;;  %v1314_v36 = vpack.c.bf16 %v1284_v58, %v1282_v26  ;;  %v1269_v56 = vadd.f32 %v1249_v35, %v4343_v27  ;;  %v1267_v29 = vadd.f32 %v1247_v48, %v4339_v25  ;;  %v4136_v27 = vmov 11  }
 0x389   : > { %v1291_v61 = vmax.f32 %v1275_v40, 0.0  ;;  %v1287_v4 = vmax.f32 %v1271_v33, 0.0  ;;  %v5017_v39 = vpop.permute.xlu2 %2333  ;;  %v2706_v62 = vmul.f32 0.0, %v5044_v5  ;;  %v4142_v58 = vmov 14  }
 0x38a   : > { %1345 = vmatpush.bf16.msrb.mxu2 %v1318_v52  ;;  %v1285_v60 = vmax.f32 %v1269_v56, 0.0  ;;  %v1283_v19 = vmax.f32 %v1267_v29, 0.0  ;;  %v4143_v3 = vmov 15   ;;  %v4006_v29 = vld [vmem:[%s6869_s14 + $0x10] sm:$0xff] }
 0x38c   : > { %v1263_v20 = vpop.f32.mrf.mxu1  ;;  %v1315_v63 = vpack.c.bf16 %v1285_v60, %v1283_v19  ;;  %v4007_v19 = vld [vmem:[%s6869_s14 + $0x8] sm:$0xff] }
 0x38d   : > { %v1264_v7 = vadd.f32 %v1263_v20, %v4788_v16  ;;  %v1295_v16 = vmax.f32 %v1279_v28, 0.0 }
 0x38e   : > { %1346 = vmatpush.bf16.msrb.mxu2 %v1316_v37 }
 0x38f   : > { %v1281_v44 = vadd.f32 %v1264_v7, %v4378_v43  ;;  %v1273_v43 = vadd.f32 %v1254_v24, %v4351_v31  ;;  %v1319_v31 = vpack.c.bf16 %v1293_v47, %v1291_v61 }
 0x390   : > { %2451 = vrot.lane.b32.xlu2 %v7150_v55, %s6975_s5  ;;  %2494 = vrot.lane.b32.xlu1 %v7150_v55, %s6971_s26  ;;  %s7207_s26 = smov 34   ;;  %s7209_s5 = smov 32  }
 0x391   : > { %v1297_v11 = vmax.f32 %v1281_v44, 0.0  ;;  %v1289_v14 = vmax.f32 %v1273_v43, 0.0  ;;  %3878 = vset.pattern.permute.xlu2 %v4133_v8  ;;  %3879 = vset.pattern.permute.xlu1 %v4133_v8 }
 0x392   : > { %1347 = vmatpush.bf16.msrb.mxu2 %v1314_v36  ;;  %v5023_v13 = vpop.permute.xlu2 %2703 }
 0x393   : > { %v1321_v12 = vpack.c.bf16 %v1297_v11, %v1295_v16  ;;  %v1317_v57 = vpack.c.bf16 %v1289_v14, %v1287_v4  ;;  %7154 = vst [vmem:[#allocation62_spill] sm:$0xff] %v5023_v13  ;;  %v2715_v34 = vmul.f32 0.0, %v5023_v13  ;;  %v5109_v14 = vpop.permute.xlu0 %2404 }
 0x394   : > { %7171 = vst [vmem:[#allocation73_spill] sm:$0xff] %v5109_v14 }
 0x395   : > { %1358 = vmatpush.bf16.msra.mxu3 %v1321_v12  ;;  %3589 = vmatmul.msk.bf16.vlgmr.msrb.gmra.mxu2 %vm656_vm0, %v3674_v59 }
 0x396   : > { %2748 = vrot.lane.b32.xlu0 %v2715_v34, %s6969_s22  ;;  %v5139_v34 = vld [vmem:[%s6869_s14] sm:$0xff] }
 0x397   : > { %v5012_v25 = vpop.permute.xlu1 %2288 }
 0x398   : > { %2679 = vperm.xlu2 %3878, %v4623_v22   ;;  %2675 = vperm.xlu1 %3879, %v4505_v45  }
 0x399   : > { %1359 = vmatpush.bf16.msra.mxu3 %v1319_v31 }
 0x39a   : > { %v5030_v42 = vpop.permute.xlu2 %2695 }
 0x39b   : > { %v2709_v6 = vmul.f32 0.0, %v5030_v42 }
 0x39d   : > { %1360 = vmatpush.bf16.msra.mxu3 %v1317_v57 }
 0x39f   : > { %v5015_v9 = vpop.permute.xlu1 %2294 }
 0x3a0   : > { %3880 = vset.pattern.permute.xlu2 %v4136_v27  ;;  %3882 = vset.pattern.permute.xlu1 %v4136_v27  ;;  %7152 = vst [vmem:[#allocation60_spill] sm:$0xff] %v5015_v9 }
 0x3a1   : > { %1361 = vmatpush.bf16.msra.mxu3 %v1315_v63  ;;  %2792 = vperm.xlu2 %3880, %v4623_v22  }
 0x3a2   : > { %2788 = vperm.xlu1 %3882, %v4505_v45  }
 0x3a4   : > { %3590 = vmatmul.msk.bf16.vlgmr.msra.gmra.mxu3 %vm656_vm0, %v3674_v59  ;;  %vm7034_vm0 = vcmask 277504  }
 0x3a7   : > { %v5021_v49 = vpop.permute.xlu1 %2300 }
 0x3a8   : > { %7153 = vst [vmem:[#allocation61_spill] sm:$0xff] %v5021_v49 }
 0x3a9   : > { %3883 = vset.pattern.permute.xlu2 %v4137_v50 }
 0x3aa   : > { %2824 = vperm.xlu2 %3883, %v4623_v22   ;;  %3886 = vset.pattern.permute.xlu1 %v4137_v50 }
 0x3ab   : > { %2736 = vrot.lane.b32.xlu1 %v2709_v6, %s6969_s22 }
 0x3af   : > { %v5028_v32 = vpop.permute.xlu1 %2306 }
 0x3b0   : > { %7155 = vst [vmem:[#allocation63_spill] sm:$0xff] %v5028_v32 }
 0x3b2   : > { %2541 = vrot.lane.b32.xlu2 %v7150_v55, %s6967_s25  ;;  %s7168_s25 = smov 113  }
 0x3b3   : > { %3884 = vset.pattern.permute.xlu2 %v4133_v8  ;;  %2820 = vperm.xlu1 %3886, %v4505_v45  }
 0x3b7   : > { %v5035_v30 = vpop.permute.xlu1 %2341 }
 0x3b8   : > { %7156 = vst [vmem:[#allocation64_spill] sm:$0xff] %v5035_v30 }
 0x3ba   : > { %2667 = vperm.xlu2 %3884, %v4575_v23  }
 0x3bb   : > { %3890 = vset.pattern.permute.xlu1 %v4140_v17 }
 0x3bc   : > { %2730 = vrot.lane.b32.xlu1 %v2706_v62, %s6969_s22 }
 0x3c0   : > { %v5040_v52 = vpop.permute.xlu1 %2699 }
 0x3c1   : > { %7157 = vst [vmem:[#allocation65_spill] sm:$0xff] %v5040_v52  ;;  %v2712_v38 = vmul.f32 0.0, %v5040_v52 }
 0x3c2   : > { %3887 = vset.pattern.permute.xlu2 %v4140_v17 }
 0x3c3   : > { %2856 = vperm.xlu2 %3887, %v4623_v22   ;;  %2742 = vrot.lane.b32.xlu0 %v2712_v38, %s6969_s22  ;;  %s7169_s22 = smov 127  }
 0x3c4   : > { %2852 = vperm.xlu1 %3890, %v4505_v45  }
 0x3cb   : > { %2584 = vrot.lane.b32.xlu2 %v7150_v55, %s6965_s20  ;;  %2671 = vperm.xlu0 %3881, %v4520_v51   ;;  %s7166_s20 = smov 17  }
 0x3cc   : > { %3888 = vset.pattern.permute.xlu2 %v4136_v27  ;;  %3895 = vset.pattern.permute.xlu1 %v4142_v58 }
 0x3cd   : > { %2884 = vperm.xlu1 %3895, %v4505_v45  }
 0x3d3   : > { %2780 = vperm.xlu2 %3888, %v4575_v23   ;;  %3885 = vset.pattern.permute.xlu0 %v4136_v27 }
 0x3d4   : > { %2784 = vperm.xlu0 %3885, %v4520_v51  }
 0x3d5   : > { %3978 = vset.pattern.permute.xlu1 %v4143_v3 }
 0x3da   : > { %v5059_v20 = vpop.permute.xlu2 %2948 }
 0x3db   : > { %3891 = vset.pattern.permute.xlu2 %v4142_v58  ;;  %7158 = vst [vmem:[#allocation66_spill] sm:$0xff] %v5059_v20  ;;  %v2963_v6 = vmul.f32 0.0, %v5059_v20 }
 0x3dc   : > { %2888 = vperm.xlu2 %3891, %v4623_v22   ;;  %3889 = vset.pattern.permute.xlu0 %v4137_v50 }
 0x3dd   : > { %2816 = vperm.xlu0 %3889, %v4520_v51  }
 0x3e2   : > { %v5066_v45 = vpop.permute.xlu2 %2940 }
 0x3e3   : > { %7160 = vst [vmem:[#allocation67_spill] sm:$0xff] %v5066_v45 }
 0x3e4   : > { %3892 = vset.pattern.permute.xlu2 %v4137_v50  ;;  %v4145_v50 = vmov 17  }
 0x3e5   : > { %2812 = vperm.xlu2 %3892, %v4575_v23   ;;  %3893 = vset.pattern.permute.xlu0 %v4140_v17  ;;  %v7159_v23 = vmov 8  }
 0x3e6   : > { %2848 = vperm.xlu0 %3893, %v4520_v51  }
 0x3ea   : > { %v5068_v28 = vpop.permute.xlu2 %2451 }
 0x3eb   : > { %7161 = vst [vmem:[#allocation68_spill] sm:$0xff] %v5068_v28 }
 0x3ed   : > { %3896 = vset.pattern.permute.xlu2 %v4143_v3 }
 0x3ee   : > { %3894 = vset.pattern.permute.xlu0 %v7159_v23  ;;  %2920 = vperm.xlu2 %3896, %v4623_v22   ;;  %v5159_v23 = vld [vmem:[%s6869_s14 + $0x18] sm:$0xff] }
 0x3ef   : > { %2337 = vperm.xlu0 %3894, %v4520_v51  }
 0x3f2   : > { %v5070_v37 = vpop.permute.xlu2 %2679  ;;  %v5092_v33 = vpop.permute.xlu1 %2952 }
 0x3f3   : > { %7162 = vst [vmem:[#allocation69_spill] sm:$0xff] %v5070_v37 }
 0x3f6   : > { %3977 = vset.pattern.permute.xlu2 %v4140_v17  ;;  %v2966_v17 = vmul.f32 0.0, %v5092_v33 }
 0x3fa   : > { %v5102_v61 = vpop.permute.xlu1 %2944 }
 0x3fb   : > { %v5074_v10 = vpop.permute.xlu2 %2792 }
 0x3fc   : > { %7163 = vst [vmem:[#allocation70_spill] sm:$0xff] %v5074_v10 }
 0x402   : > { %v5111_v31 = vpop.permute.xlu1 %2494 }
 0x403   : > { %7172 = vst [vmem:[#allocation74_spill] sm:$0xff] %v5111_v31 }
 0x404   : > { %v5082_v35 = vpop.permute.xlu2 %2824 }
 0x405   : > { %7167 = vst [vmem:[#allocation71_spill] sm:$0xff] %v5082_v35 }
 0x408   : > { %v5120_v60 = vpop.permute.xlu0 %2748 }
 0x409   : > { %7173 = vst [vmem:[#allocation75_spill] sm:$0xff] %v5120_v60 }
 0x40a   : > { %v5122_v57 = vpop.permute.xlu1 %2675 }
 0x40b   : > { %7174 = vst [vmem:[#allocation76_spill] sm:$0xff] %v5122_v57 }
 0x414   : > { %v5134_v27 = vpop.permute.xlu1 %2788 }
 0x415   : > { %7176 = vst [vmem:[#allocation78_spill] sm:$0xff] %v5134_v27 }
 0x418   : > { %v1349_v7 = vpop.f32.mrf.mxu2 }
 0x419   : > { %v1350_v26 = vadd.f32 %v1349_v7, %v4819_v1 }
 0x41b   : > { %v1368_v44 = vmax.f32 %v1350_v26, 0.0 }
 0x41d   : > { %v5151_v62 = vpop.permute.xlu1 %2736 }
 0x41e   : > { %7179 = vst [vmem:[#allocation81_spill] sm:$0xff] %v5151_v62 }
 0x420   : > { %v1351_v24 = vpop.f32.mrf.mxu2 }
 0x421   : > { %v1352_v54 = vadd.f32 %v1351_v24, %v4801_v0  ;;  %v2960_v24 = vmul.f32 0.0, %v5102_v61 }
 0x423   : > { %v1370_v36 = vmax.f32 %v1352_v54, 0.0  ;;  %v7183_v54 = vmov 0  }
 0x425   : > { %v5076_v40 = vpack.c.bf16 %v1370_v36, %v1368_v44  ;;  %v5165_v26 = vpop.permute.xlu1 %2820 }
 0x426   : > { %7181 = vst [vmem:[#allocation83_spill] sm:$0xff] %v5165_v26 }
 0x427   : > { %v1363_v51 = vpop.f32.mrf.mxu3 }
 0x428   : > { %v1364_v16 = vadd.f32 %v1363_v51, %v4819_v1  ;;  %v5090_v1 = vpop.permute.xlu2 %2541 }
 0x42a   : > { %v1369_v11 = vmax.f32 %v1364_v16, 0.0 }
 0x42c   : > { %v3907_v8 = vpack.i.bf16 %v1369_v11, %v1368_v44  ;;  %v7184_v44 = vmov 1  }
 0x42e   : > { %3908 = vrot.lane.b32.xlu0 %v3907_v8, %s7164_s29  ;;  %3903 = vrot.lane.b32.xlu1 %v3907_v8, %s7165_s23  ;;  %v5175_v51 = vpop.permute.xlu1 %2730 }
 0x42f   : > { %3898 = vrot.lane.b32.xlu2 %v3907_v8, %s7166_s20  ;;  %v1365_v59 = vpop.f32.mrf.mxu3 }
 0x430   : > { %v1366_v43 = vadd.f32 %v1365_v59, %v4801_v0  ;;  %v5097_v0 = vpop.permute.xlu2 %2667 }
 0x432   : > { %v1371_v47 = vmax.f32 %v1366_v43, 0.0 }
 0x434   : > { %v5087_v12 = vpack.c.bf16 %v1371_v47, %v1369_v11  ;;  %v3937_v48 = vpack.i.bf16 %v1371_v47, %v1370_v36 }
 0x435   : > { %v5132_v63 = vpop.permute.xlu0 %2742 }
 0x436   : > { %3923 = vrot.lane.b32.xlu0 %v3907_v8, %s7083_s2  ;;  %3918 = vrot.lane.b32.xlu1 %v3907_v8, %s7168_s25  ;;  %7175 = vst [vmem:[#allocation77_spill] sm:$0xff] %v5132_v63 }
 0x437   : > { %3913 = vrot.lane.b32.xlu2 %v3907_v8, %s7169_s22 }
 0x438   : > { %v5104_v56 = vpop.permute.xlu2 %2856 }
 0x439   : > { %7170 = vst [vmem:[#allocation72_spill] sm:$0xff] %v5104_v56 }
 0x43d   : > { %v5147_v38 = vpop.permute.xlu0 %2671 }
 0x43e   : > { %3938 = vrot.lane.b32.xlu0 %v3937_v48, %s7166_s20  ;;  %3933 = vrot.lane.b32.xlu1 %v3907_v8, %s7145_s27  ;;  %7178 = vst [vmem:[#allocation80_spill] sm:$0xff] %v5147_v38 }
 0x43f   : > { %3928 = vrot.lane.b32.xlu2 %v3907_v8, %s7114_s24  ;;  %v5181_v8 = vpop.permute.xlu1 %2852 }
 0x440   : > { %v5118_v4 = vpop.permute.xlu2 %2584  ;;  %7187 = vst [vmem:[#allocation87_spill] sm:$0xff] %v5181_v8 }
 0x446   : > { %3953 = vrot.lane.b32.xlu0 %v3937_v48, %s7169_s22  ;;  %3948 = vrot.lane.b32.xlu1 %v3937_v48, %s7164_s29  ;;  %v5163_v7 = vpop.permute.xlu0 %2784 }
 0x447   : > { %3943 = vrot.lane.b32.xlu2 %v3937_v48, %s7165_s23  ;;  %7180 = vst [vmem:[#allocation82_spill] sm:$0xff] %v5163_v7  ;;  %v5187_v47 = vpop.permute.xlu1 %2884  ;;  %v7239_v7 = vld [vmem:[#allocation23_spill] sm:$0xff] }
 0x448   : > { %7189 = vst [vmem:[#allocation89_spill] sm:$0xff] %v5187_v47 }
 0x44e   : > { %3968 = vrot.lane.b32.xlu0 %v3937_v48, %s7114_s24  ;;  %3963 = vrot.lane.b32.xlu1 %v3937_v48, %s7083_s2 }
 0x44f   : > { %3958 = vrot.lane.b32.xlu2 %v3937_v48, %s7168_s25  ;;  %v5173_v36 = vpop.permute.xlu0 %2816 }
 0x450   : > { %7185 = vst [vmem:[#allocation85_spill] sm:$0xff] %v5173_v36 }
 0x456   : > { %2345 = vperm.xlu0 %3894, %v4623_v22   ;;  %2916 = vperm.xlu1 %3978, %v4006_v29   ;;  %v5130_v22 = vpop.permute.xlu2 %2780 }
 0x457   : > { %3973 = vrot.lane.b32.xlu2 %v3937_v48, %s7145_s27 }
 0x458   : > { %v5179_v11 = vpop.permute.xlu0 %2848 }
 0x459   : > { %7186 = vst [vmem:[#allocation86_spill] sm:$0xff] %v5179_v11 }
 0x45e   : > { %3979 = vset.pattern.permute.xlu0 %v4142_v58  ;;  %2912 = vperm.xlu1 %3978, %v4007_v19  }
 0x45f   : > { %2627 = vrot.lane.b32.xlu2 %v7150_v55, %s6990_s6  ;;  %2880 = vperm.xlu0 %3979, %v4007_v19   ;;  %v5143_v55 = vpop.permute.xlu2 %2888  ;;  %s7208_s6 = smov 2  }
 0x460   : > { %7177 = vst [vmem:[#allocation79_spill] sm:$0xff] %v5143_v55 }
 0x461   : > { %v5185_v43 = vpop.permute.xlu0 %2337 }
 0x462   : > { %7188 = vst [vmem:[#allocation88_spill] sm:$0xff] %v5185_v43  ;;  %v7242_v43 = vld [vmem:[#allocation29_spill] sm:$0xff] }
 0x466   : > { %3983 = vset.pattern.permute.xlu1 %v4145_v50 }
 0x467   : > { %2844 = vperm.xlu2 %3977, %v5139_v34   ;;  %2876 = vperm.xlu0 %3979, %v5139_v34   ;;  %v5154_v58 = vpop.permute.xlu2 %2812 }
 0x468   : > { %3037 = vperm.xlu1 %3983, %v4006_v29  }
 0x46f   : > { %3001 = vrot.lane.b32.xlu2 %v2966_v17, %s6996_s4  ;;  %2995 = vrot.lane.b32.xlu0 %v2963_v6, %s6996_s4 }
 0x470   : > { %3980 = vset.pattern.permute.xlu2 %v4145_v50  ;;  %3981 = vset.pattern.permute.xlu0 %v4143_v3  ;;  %v5169_v3 = vpop.permute.xlu2 %2920 }
 0x471   : > { %3033 = vperm.xlu1 %3983, %v4007_v19   ;;  %7182 = vst [vmem:[#allocation84_spill] sm:$0xff] %v5169_v3  ;;  %v1304_v3 = vld [vmem:[%s6866_s11] sm:$0xff] }
 0x477   : > { %3041 = vperm.xlu2 %3980, %v5159_v23   ;;  %2908 = vperm.xlu0 %3981, %v5139_v34  }
 0x47f   : > { %2989 = vrot.lane.b32.xlu2 %v2960_v24, %s6996_s4  ;;  %3982 = vset.pattern.permute.xlu0 %v7183_v54 }
 0x480   : > { %3984 = vset.pattern.permute.xlu2 %v7184_v44  ;;  %1548 = vperm.xlu0 %3982, %v1304_v3  }
 0x489   : > { %v5177_v16 = vpop.permute.xlu2 %3898 }
 0x491   : > { %v5183_v59 = vpop.permute.xlu2 %3913 }
 0x492   : > { %v3915_v54 = vunpack.i.l.bf16 %v5183_v59 }
 0x499   : > { %v5189_v48 = vpop.permute.xlu2 %3928 }
 0x4a0   : > { %v5191_v29 = vpop.permute.xlu0 %3908  ;;  %v5193_v19 = vpop.permute.xlu1 %3903 }
 0x4a1   : > { %v5195_v50 = vpop.permute.xlu2 %3943 }
 0x4a2   : > { %v7190_v62 = vunpack.i.l.bf16 %v5195_v50 }
 0x4a8   : > { %v5197_v17 = vpop.permute.xlu0 %3923  ;;  %v5199_v6 = vpop.permute.xlu1 %3918 }
 0x4a9   : > { %v5201_v24 = vpop.permute.xlu2 %3958  ;;  %v3921_v35 = vunpack.i.h.bf16 %v5199_v6  ;;  %v3920_v10 = vunpack.i.l.bf16 %v5199_v6  ;;  %v3916_v6 = vunpack.i.h.bf16 %v5183_v59  ;;  %v3926_v59 = vunpack.i.h.bf16 %v5197_v17 }
 0x4aa   : > { %v3961_v47 = vunpack.i.h.bf16 %v5201_v24  ;;  %v3960_v8 = vunpack.i.l.bf16 %v5201_v24 }
 0x4ab   : > { %v1464_v60 = vsel %vm7052_vm3, %v3920_v10, %v3921_v35  ;;  %v1444_v10 = vsel %vm7053_vm6, %v3915_v54, %v3916_v6  ;;  %v6994_v54 = vunpack.i.l.bf16 %v5193_v19 }
 0x4ac   : > { %v1466_v37 = vsel %vm7052_vm3, %v3960_v8, %v3961_v47 }
 0x4b0   : > { %v5206_v55 = vpop.permute.xlu0 %3938  ;;  %v3934_v56 = vpop.permute.xlu1 %3933 }
 0x4b1   : > { %v3936_v32 = vunpack.i.h.bf16 %v3934_v56  ;;  %v3935_v30 = vunpack.i.l.bf16 %v3934_v56  ;;  %v3974_v49 = vpop.permute.xlu2 %3973  ;;  %v1311_v56 = vld [vmem:[%s6868_s13 + $0x8] sm:$0xff] }
 0x4b2   : > { %v3976_v26 = vunpack.i.h.bf16 %v3974_v49  ;;  %v3975_v27 = vunpack.i.l.bf16 %v3974_v49  ;;  %1637 = vperm.xlu0 %3982, %v1311_v56  }
 0x4b3   : > { %v1520_v57 = vsel %vm7055_vm1, %v3935_v30, %v3936_v32 }
 0x4b4   : > { %v1522_v3 = vsel %vm7055_vm1, %v3975_v27, %v3976_v26 }
 0x4b5   : > { %v1542_v63 = vpack.c.bf16 %v1522_v3, %v1520_v57  ;;  %v3600_v57 = vpack.c.bf16 %v1466_v37, %v1464_v60  ;;  %v6995_v37 = vunpack.i.l.bf16 %v5191_v29 }
 0x4b7   : > { %1568 = vmatpush.bf16.msra.mxu2 %v1542_v63  ;;  %v3925_v63 = vunpack.i.l.bf16 %v5197_v17  ;;  %v1523_v17 = vsel %vm7055_vm1, %v3976_v26, %v4478_v18 }
 0x4b8   : > { %v3954_v49 = vpop.permute.xlu0 %3953  ;;  %v5221_v24 = vpop.permute.xlu1 %3948 }
 0x4b9   : > { %v3956_v30 = vunpack.i.h.bf16 %v3954_v49  ;;  %v3955_v27 = vunpack.i.l.bf16 %v3954_v49  ;;  %v6992_v11 = vunpack.i.l.bf16 %v5221_v24 }
 0x4ba   : > { %1970 = vperm.xlu0 %3982, %v5139_v34  }
 0x4bb   : > { %v1446_v8 = vsel %vm7053_vm6, %v3955_v27, %v3956_v30  ;;  %3601 = vmatpush.bf16.msk.msra.mxu2 %vm4559_vm4, %v3600_v57  ;;  %v1521_v57 = vsel %vm7055_vm1, %v3936_v32, %v4478_v18  ;;  %v1426_v34 = vsel %vm914_vm8, %v4600_v2, %v6992_v11  ;;  %v1424_v18 = vsel %vm914_vm8, %v4600_v2, %v6995_v37 }
 0x4bc   : > { %v3603_v3 = vpack.c.bf16 %v1446_v8, %v1444_v10  ;;  %v3675_v10 = vld [vmem:[%s6865_s10 + $0x4] sm:$0xf]  ;;  %v3595_v8 = vld [vmem:[%s6865_s10 + $0x8] sm:$0xf0]  ;;  %v1404_v11 = vsel %vm891_vm10, %v4632_v41, %v6994_v54  ;;  %v3606_v27 = vpack.c.bf16 %v1426_v34, %v1424_v18  ;;  %v1543_v36 = vpack.c.bf16 %v1523_v17, %v1521_v57  ;;  %v1719_v57 = vld [vmem:[%s6870_s15 + $0x18] sm:$0xff] }
 0x4bd   : > { %3073 = vperm.xlu2 %3984, %v1719_v57   ;;  %v3940_v17 = vunpack.i.l.bf16 %v5206_v55 }
 0x4bf   : > { %3604 = vmatpush.bf16.msk.msra.mxu2 %vm4586_vm7, %v3603_v3  ;;  %v1484_v3 = vsel %vm983_vm9, %v3925_v63, %v3926_v59  ;;  %v5263_v63 = vor.u32 %v3675_v10, %v3595_v8 }
 0x4c0   : > { %v3964_v60 = vpop.permute.xlu1 %3963 }
 0x4c1   : > { %v3966_v56 = vunpack.i.h.bf16 %v3964_v60  ;;  %v3965_v49 = vunpack.i.l.bf16 %v3964_v60  ;;  %v5251_v60 = vpop.permute.xlu0 %3968 }
 0x4c2   : > { %1985 = vperm.xlu0 %3982, %v5159_v23   ;;  %v3900_v23 = vunpack.i.l.bf16 %v5177_v16  ;;  %v3971_v15 = vunpack.i.h.bf16 %v5251_v60 }
 0x4c3   : > { %v1486_v32 = vsel %vm983_vm9, %v3965_v49, %v3966_v56  ;;  %1571 = vmatpush.bf16.msra.mxu2 %v5076_v40  ;;  %v1406_v40 = vsel %vm891_vm10, %v4632_v41, %v7190_v62  ;;  %v1465_v49 = vsel %vm7052_vm3, %v3921_v35, %v4486_v21  ;;  %v3930_v62 = vunpack.i.l.bf16 %v5189_v48 }
 0x4c4   : > { %v3615_v26 = vpack.c.bf16 %v1486_v32, %v1484_v3  ;;  %v1467_v3 = vsel %vm7052_vm3, %v3961_v47, %v4486_v21  ;;  %v3970_v32 = vunpack.i.l.bf16 %v5251_v60  ;;  %v3609_v35 = vpack.c.bf16 %v1406_v40, %v1404_v11 }
 0x4c5   : > { %v3619_v47 = vpack.c.bf16 %v1467_v3, %v1465_v49  ;;  %v1445_v11 = vsel %vm7053_vm6, %v3916_v6, %v4522_v53  ;;  %v3951_v49 = vunpack.i.h.bf16 %v5221_v24  ;;  %v1487_v3 = vsel %vm983_vm9, %v3966_v56, %v7194_v46  ;;  %v3593_v6 = vld [vmem:[%s6865_s10] sm:$0xf] }
 0x4c6   : > { %3616 = vmatpush.bf16.msk.msrb.mxu3 %vm4586_vm7, %v3615_v26  ;;  %v3906_v56 = vunpack.i.h.bf16 %v5193_v19 }
 0x4c7   : > { %3607 = vmatpush.bf16.msk.msra.mxu2 %vm4559_vm4, %v3606_v27  ;;  %v1447_v27 = vsel %vm7053_vm6, %v3956_v30, %v4522_v53  ;;  %v7193_v30 = vld [vmem:[#allocation20_spill] sm:$0xff] }
 0x4c8   : > { %v3622_v26 = vpack.c.bf16 %v1447_v27, %v1445_v11  ;;  %v1386_v40 = vsel %vm864_vm14, %v7193_v30, %v3940_v17  ;;  %v1384_v27 = vsel %vm864_vm14, %v7193_v30, %v3900_v23 }
 0x4c9   : > { %3617 = vmatmul.msk.bf16.vlgmr.msrb.gmra.mxu3 %vm1006_vm13, %v5263_v63  ;;  %v3612_v11 = vpack.c.bf16 %v1386_v40, %v1384_v27  ;;  %v7198_v40 = vunpack.i.l.bf16 %v5193_v19  ;;  %v3901_v19 = vunpack.i.h.bf16 %v5177_v16 }
 0x4ca   : > { %1596 = vmatpush.bf16.msra.mxu3 %v1543_v36  ;;  %v7191_v36 = vld [vmem:[#allocation17_spill] sm:$0xff]  ;;  %2381 = vperm.xlu0 %3982, %v1719_v57   ;;  %v7197_v57 = vunpack.i.l.bf16 %v5191_v29 }
 0x4cb   : > { %v1506_v34 = vsel %vm1006_vm13, %v7191_v36, %v3970_v32  ;;  %3610 = vmatpush.bf16.msk.msra.mxu2 %vm4586_vm7, %v3609_v35  ;;  %v1504_v8 = vsel %vm1006_vm13, %v7191_v36, %v3930_v62  ;;  %v3911_v36 = vunpack.i.h.bf16 %v5191_v29  ;;  %vm7048_vm7 = vcmask 244736  }
 0x4cc   : > { %v1530_v18 = vpack.c.bf16 %v1506_v34, %v1504_v8  ;;  %v1485_v34 = vsel %vm983_vm9, %v3926_v59, %v7194_v46  ;;  %v3946_v8 = vunpack.i.h.bf16 %v5195_v50 }
 0x4cd   : > { %v3634_v54 = vpack.c.bf16 %v1487_v3, %v1485_v34  ;;  %v1425_v9 = vsel %vm914_vm8, %v7197_v57, %v3911_v36  ;;  %v7203_v34 = vld [vmem:[#allocation25_spill] sm:$0xff] }
 0x4ce   : > { %3620 = vmatpush.bf16.msk.msra.mxu3 %vm4693_vm12, %v3619_v47  ;;  %v3676_v47 = vld [vmem:[%s6865_s10 + $0x4] sm:$0xf0] }
 0x4cf   : > { %1574 = vmatpush.bf16.msra.mxu2 %v1530_v18  ;;  %v7196_v18 = vunpack.i.l.bf16 %v5221_v24  ;;  %v3594_v37 = vor.u32 %v3676_v47, %v3593_v6  ;;  %v1405_v24 = vsel %vm891_vm10, %v7198_v40, %v3906_v56  ;;  %v1385_v47 = vsel %vm864_vm14, %v3900_v23, %v3901_v19  ;;  %v3677_v40 = vld [vmem:[%s6867_s12] sm:$0xff] }
 0x4d2   : > { %3623 = vmatpush.bf16.msk.msra.mxu3 %vm4717_vm15, %v3622_v26  ;;  %v1427_v26 = vsel %vm914_vm8, %v7196_v18, %v3951_v49  ;;  %v7199_v49 = vunpack.i.l.bf16 %v5195_v50 }
 0x4d3   : > { %3613 = vmatpush.bf16.msk.msra.mxu2 %vm4559_vm4, %v3612_v11  ;;  %v3625_v59 = vpack.c.bf16 %v1427_v26, %v1425_v9  ;;  %v1507_v9 = vsel %vm1006_vm13, %v3970_v32, %v3971_v15 }
 0x4d4   : > { %v1407_v3 = vsel %vm891_vm10, %v7199_v49, %v3946_v8 }
 0x4d5   : > { %v3628_v29 = vpack.c.bf16 %v1407_v3, %v1405_v24 }
 0x4d6   : > { %1599 = vmatpush.bf16.msra.mxu3 %v5087_v12  ;;  %1576 = vmatmul.bf16.vlgmr.msra.gmra.mxu2 %v3594_v37  ;;  %v3931_v12 = vunpack.i.h.bf16 %v5189_v48 }
 0x4d7   : > { %3635 = vmatpush.bf16.msk.msrb.mxu2 %vm4717_vm15, %v3634_v54  ;;  %v3941_v54 = vunpack.i.h.bf16 %v5206_v55  ;;  %v5352_v55 = vpop.permute.xlu0 %2345 }
 0x4d8   : > { %v1505_v50 = vsel %vm1006_vm13, %v3930_v62, %v3931_v12  ;;  %7200 = vst [vmem:[#allocation17_spill] sm:$0xff] %v5352_v55 }
 0x4d9   : > { %v1531_v6 = vpack.c.bf16 %v1507_v9, %v1505_v50  ;;  %v1387_v60 = vsel %vm864_vm14, %v3940_v17, %v3941_v54  ;;  %v3678_v50 = vld [vmem:[%s6867_s12 + $0x8] sm:$0xff] }
 0x4da   : > { %3626 = vmatpush.bf16.msk.msra.mxu3 %vm4693_vm12, %v3625_v59  ;;  %v3631_v27 = vpack.c.bf16 %v1387_v60, %v1385_v47  ;;  %v7204_v60 = vld [vmem:[#allocation22_spill] sm:$0xff] }
 0x4de   : > { %3629 = vmatpush.bf16.msk.msra.mxu3 %vm4717_vm15, %v3628_v29  ;;  %vm7033_vm15 = vcmask 261120  }
 0x4df   : > { %v5354_v48 = vpop.permute.xlu0 %2880 }
 0x4e0   : > { %7201 = vst [vmem:[#allocation18_spill] sm:$0xff] %v5354_v48 }
 0x4e2   : > { %1602 = vmatpush.bf16.msra.mxu3 %v1531_v6 }
 0x4e6   : > { %3632 = vmatpush.bf16.msk.msra.mxu3 %vm4693_vm12, %v3631_v27  ;;  %3636 = vmatmul.msk.bf16.vlgmr.msrb.gmra.mxu2 %vm1006_vm13, %v5263_v63  ;;  %vm7049_vm12 = vcmask 15360  }
 0x4e7   : > { %v5356_v16 = vpop.permute.xlu0 %2876 }
 0x4e9   : > { %1604 = vmatmul.bf16.vlgmr.msra.gmra.mxu3 %v3594_v37 }
 0x4ef   : > { %v5358_v32 = vpop.permute.xlu0 %2995 }
 0x4f0   : > { %7202 = vst [vmem:[#allocation20_spill] sm:$0xff] %v5358_v32 }
 0x4f7   : > { %v5360_v62 = vpop.permute.xlu0 %2908 }
 0x4ff   : > { %v1549_v35 = vpop.permute.xlu0 %1548 }
 0x54c   : > { %v1591_v17 = vpop.f32.mrf.mxu3 }
 0x554   : > { %v1593_v10 = vpop.f32.mrf.mxu3 }
 0x559   : > { %v1577_v23 = vpop.f32.mrf.mxu2 }
 0x55a   : > { %v1578_v36 = vadd.f32 %v1577_v23, %v1549_v35 }
 0x55c   : > { %v1592_v37 = vadd.f32 %v1591_v17, %v1578_v36  ;;  %v7205_v17 = vld [vmem:[#allocation54_spill] sm:$0xff] }
 0x55e   : > { %v1624_v8 = vmax.f32 %v1592_v37, 0.0 }
 0x561   : > { %v1579_v56 = vpop.f32.mrf.mxu2 }
 0x562   : > { %v1580_v11 = vadd.f32 %v1579_v56, %v7203_v34  ;;  %v5403_v56 = vpop.permute.xlu0 %1637 }
 0x564   : > { %v1594_v63 = vadd.f32 %v1593_v10, %v1580_v11  ;;  %v5409_v11 = vpop.permute.xlu2 %2627 }
 0x565   : > { %7211 = vst [vmem:[#allocation19_spill] sm:$0xff] %v5409_v11 }
 0x566   : > { %v1626_v18 = vmax.f32 %v1594_v63, 0.0 }
 0x568   : > { %v1628_v26 = vpack.c.bf16 %v1626_v18, %v1624_v8  ;;  %v7216_v18 = vld [vmem:[#allocation57_spill] sm:$0xff] }
 0x569   : > { %v1619_v59 = vpop.f32.mrf.mxu2 }
 0x56a   : > { %1673 = vmatpush.bf16.msrb.mxu0 %v1628_v26 }
 0x56c   : > { %v1605_v57 = vpop.f32.mrf.mxu3  ;;  %v5423_v63 = vpop.permute.xlu2 %2844 }
 0x56d   : > { %3645 = vmatmul.msk.bf16.vlgmr.msrb.gmra.mxu0 %vm1006_vm13, %v3677_v40  ;;  %v1606_v24 = vadd.f32 %v1605_v57, %v1549_v35  ;;  %v7217_v57 = vld [vmem:[#allocation30_spill] sm:$0xff] }
 0x56f   : > { %v1620_v15 = vadd.f32 %v1619_v59, %v1606_v24 }
 0x571   : > { %v1621_v3 = vpop.f32.mrf.mxu2  ;;  %v1625_v54 = vmax.f32 %v1620_v15, 0.0 }
 0x574   : > { %v1607_v49 = vpop.f32.mrf.mxu3  ;;  %v5431_v8 = vpop.permute.xlu2 %3001 }
 0x575   : > { %v1608_v12 = vadd.f32 %v1607_v49, %v7203_v34  ;;  %7215 = vst [vmem:[#allocation25_spill] sm:$0xff] %v5431_v8 }
 0x577   : > { %v1622_v29 = vadd.f32 %v1621_v3, %v1608_v12 }
 0x579   : > { %v1627_v9 = vmax.f32 %v1622_v29, 0.0 }
 0x57b   : > { %v1629_v19 = vpack.c.bf16 %v1627_v9, %v1625_v54  ;;  %v5462_v54 = vpop.permute.xlu1 %2916 }
 0x57c   : > { %7221 = vst [vmem:[#allocation57_spill] sm:$0xff] %v5462_v54 }
 0x57d   : > { %1692 = vmatpush.bf16.msra.mxu1 %v1629_v19  ;;  %3646 = vmatmul.msk.bf16.gmra.mxu0 %vm1006_vm13, %v3678_v50 }
 0x580   : > { %3647 = vmatmul.msk.bf16.vlgmr.msra.gmra.mxu1 %vm1006_vm13, %v3677_v40  ;;  %v5441_v40 = vpop.permute.xlu2 %3041 }
 0x581   : > { %7218 = vst [vmem:[#allocation22_spill] sm:$0xff] %v5441_v40 }
 0x588   : > { %v5455_v29 = vpop.permute.xlu2 %2989 }
 0x589   : > { %7219 = vst [vmem:[#allocation54_spill] sm:$0xff] %v5455_v29 }
 0x590   : > { %3648 = vmatmul.msk.bf16.gmra.mxu1 %vm1006_vm13, %v3678_v50  ;;  %v5468_v19 = vpop.permute.xlu2 %3073  ;;  %v7223_v50 = vld [vmem:[#allocation27_spill] sm:$0xff] }
 0x591   : > { %7222 = vst [vmem:[#allocation30_spill] sm:$0xff] %v5468_v19 }
 0x5ea   : > { %v1675_v6 = vpop.f32.mrf.mxu0 }
 0x5eb   : > { %v1676_v47 = vadd.f32 %v1675_v6, %v7204_v60 }
 0x5ed   : > { %v5375_v27 = vmax.f32 %v1676_v47, 0.0  ;;  %v5475_v47 = vpop.permute.xlu0 %1970 }
 0x5ef   : > { %1808 = vrot.lane.b32.xlu1 %v5375_v27, %s7164_s29  ;;  %1768 = vrot.lane.b32.xlu2 %v5375_v27, %s7165_s23  ;;  %v2260_v23 = vmul.f32 %v7205_v17, %v5375_v27  ;;  %v2707_v35 = vmul.f32 %v5044_v5, %v5375_v27  ;;  %v2955_v10 = vmul.f32 %v5066_v45, %v5375_v27 }
 0x5f0   : > { %1728 = vrot.lane.b32.xlu0 %v5375_v27, %s7166_s20  ;;  %v2013_v59 = vmul.f32 %v7217_v57, %v5375_v27 }
 0x5f2   : > { %v1677_v36 = vpop.f32.mrf.mxu0 }
 0x5f3   : > { %v1678_v37 = vadd.f32 %v1677_v36, %v5403_v56  ;;  %v7226_v36 = vld [vmem:[#allocation26_spill] sm:$0xff] }
 0x5f5   : > { %v5407_v34 = vmax.f32 %v1678_v37, 0.0 }
 0x5f7   : > { %1928 = vrot.lane.b32.xlu1 %v5375_v27, %s7083_s2  ;;  %1888 = vrot.lane.b32.xlu2 %v5375_v27, %s7168_s25  ;;  %7210 = vst [vmem:[#allocation21_spill] sm:$0xff] %v5407_v34  ;;  %v2263_v26 = vmul.f32 %v7216_v18, %v5407_v34  ;;  %v2710_v24 = vmul.f32 %v5030_v42, %v5407_v34 }
 0x5f8   : > { %1848 = vrot.lane.b32.xlu0 %v5375_v27, %s7169_s22  ;;  %v2958_v15 = vmul.f32 %v5102_v61, %v5407_v34 }
 0x5fa   : > { %v1680_v9 = vpop.f32.mrf.mxu0 }
 0x5fb   : > { %v1681_v6 = vadd.f32 %v1680_v9, %v7223_v50 }
 0x5fd   : > { %v1694_v49 = vpop.f32.mrf.mxu1 }
 0x5fe   : > { %v1695_v3 = vadd.f32 %v1694_v49, %v7204_v60  ;;  %v5473_v60 = vpop.permute.xlu1 %2912 }
 0x5ff   : > { %2453 = vrot.lane.b32.xlu1 %v5375_v27, %s7206_s28  ;;  %2284 = vrot.lane.b32.xlu2 %v2260_v23, %s7145_s27  ;;  %7224 = vst [vmem:[#allocation27_spill] sm:$0xff] %v5473_v60  ;;  %v5477_v23 = vmax.f32 %v1681_v6, 0.0 }
 0x600   : > { %2406 = vrot.lane.b32.xlu0 %v5375_v27, %s7207_s26  ;;  %v5453_v12 = vmax.f32 %v1695_v3, 0.0 }
 0x601   : > { %7225 = vst [vmem:[#allocation90_spill] sm:$0xff] %v5477_v23 }
 0x602   : > { %v2956_v60 = vmul.f32 %v5066_v45, %v5453_v12  ;;  %v1682_v48 = vpop.f32.mrf.mxu0 }
 0x605   : > { %v1696_v8 = vpop.f32.mrf.mxu1 }
 0x606   : > { %v5492_v37 = vpop.permute.xlu1 %3037  ;;  %v1697_v32 = vadd.f32 %v1696_v8, %v5403_v56  ;;  %v2014_v56 = vmul.f32 %v7217_v57, %v5453_v12 }
 0x607   : > { %2496 = vrot.lane.b32.xlu1 %v5375_v27, %s7208_s6  ;;  %2732 = vrot.lane.b32.xlu2 %v2707_v35, %s7209_s5  ;;  %7227 = vst [vmem:[#allocation26_spill] sm:$0xff] %v5492_v37 }
 0x608   : > { %2979 = vrot.lane.b32.xlu0 %v2955_v10, %s6996_s4  ;;  %s7214_s4 = smov 94   ;;  %v2016_v10 = vmul.f32 %v7226_v36, %v5407_v34 }
 0x60e   : > { %v5507_v49 = vpop.permute.xlu1 %3033 }
 0x60f   : > { %2537 = vrot.lane.b32.xlu1 %v5375_v27, %s7212_s7  ;;  %1732 = vrot.lane.b32.xlu2 %v5407_v34, %s7166_s20  ;;  %7229 = vst [vmem:[#allocation92_spill] sm:$0xff] %v5507_v49 }
 0x610   : > { %1812 = vrot.lane.b32.xlu0 %v5407_v34, %s7164_s29 }
 0x617   : > { %2580 = vrot.lane.b32.xlu1 %v5375_v27, %s7213_s8  ;;  %1852 = vrot.lane.b32.xlu2 %v5407_v34, %s7169_s22 }
 0x618   : > { %1932 = vrot.lane.b32.xlu0 %v5407_v34, %s7083_s2 }
 0x61f   : > { %2623 = vrot.lane.b32.xlu1 %v5375_v27, %s7214_s4  ;;  %2457 = vrot.lane.b32.xlu2 %v5407_v34, %s7206_s28 }
 0x620   : > { %2410 = vrot.lane.b32.xlu0 %v5407_v34, %s7207_s26 }
 0x627   : > { %2290 = vrot.lane.b32.xlu2 %v2263_v26, %s7145_s27  ;;  %2038 = vrot.lane.b32.xlu1 %v2013_v59, %s7114_s24  ;;  %v5494_v26 = vpop.permute.xlu0 %1985 }
 0x628   : > { %2500 = vrot.lane.b32.xlu0 %v5407_v34, %s7208_s6  ;;  %7228 = vst [vmem:[#allocation91_spill] sm:$0xff] %v5494_v26  ;;  %v5563_v26 = vmax.f32 %v1697_v32, 0.0 }
 0x62f   : > { %2738 = vrot.lane.b32.xlu2 %v2710_v24, %s7209_s5  ;;  %1772 = vrot.lane.b32.xlu1 %v5407_v34, %s7165_s23  ;;  %v2261_v24 = vmul.f32 %v7205_v17, %v5453_v12 }
 0x630   : > { %2586 = vrot.lane.b32.xlu0 %v5407_v34, %s7213_s8 }
 0x637   : > { %2985 = vrot.lane.b32.xlu2 %v2958_v15, %s7220_s9  ;;  %1892 = vrot.lane.b32.xlu1 %v5407_v34, %s7168_s25  ;;  %v5511_v15 = vpop.permute.xlu0 %2381 }
 0x638   : > { %1770 = vrot.lane.b32.xlu0 %v5453_v12, %s7165_s23  ;;  %7230 = vst [vmem:[#allocation93_spill] sm:$0xff] %v5511_v15 }
 0x63f   : > { %1810 = vrot.lane.b32.xlu2 %v5453_v12, %s7164_s29  ;;  %2543 = vrot.lane.b32.xlu1 %v5407_v34, %s7212_s7 }
 0x640   : > { %1890 = vrot.lane.b32.xlu0 %v5453_v12, %s7168_s25 }
 0x647   : > { %1930 = vrot.lane.b32.xlu2 %v5453_v12, %s7083_s2  ;;  %2629 = vrot.lane.b32.xlu1 %v5407_v34, %s7214_s4 }
 0x648   : > { %1776 = vrot.lane.b32.xlu0 %v5477_v23, %s7165_s23 }
 0x649   : > { %v5485_v35 = vpop.permute.xlu2 %1768 }
 0x64f   : > { %2455 = vrot.lane.b32.xlu2 %v5453_v12, %s7206_s28  ;;  %2044 = vrot.lane.b32.xlu1 %v2016_v10, %s7114_s24  ;;  %v2708_v10 = vmul.f32 %v5044_v5, %v5453_v12 }
 0x650   : > { %1896 = vrot.lane.b32.xlu0 %v5477_v23, %s7168_s25 }
 0x651   : > { %v5498_v59 = vpop.permute.xlu2 %1888 }
 0x657   : > { %2498 = vrot.lane.b32.xlu2 %v5453_v12, %s7208_s6  ;;  %1730 = vrot.lane.b32.xlu1 %v5453_v12, %s7166_s20 }
 0x658   : > { %2286 = vrot.lane.b32.xlu0 %v2261_v24, %s7145_s27 }
 0x659   : > { %v5509_v3 = vpop.permute.xlu2 %2284 }
 0x65f   : > { %2539 = vrot.lane.b32.xlu2 %v5453_v12, %s7212_s7  ;;  %1850 = vrot.lane.b32.xlu1 %v5453_v12, %s7169_s22 }
 0x660   : > { %2414 = vrot.lane.b32.xlu0 %v5477_v23, %s7207_s26 }
 0x661   : > { %v5519_v17 = vpop.permute.xlu1 %1808  ;;  %v5521_v9 = vpop.permute.xlu2 %2732 }
 0x662   : > { %v5523_v6 = vpop.permute.xlu0 %1728 }
 0x667   : > { %2582 = vrot.lane.b32.xlu2 %v5453_v12, %s7213_s8  ;;  %2408 = vrot.lane.b32.xlu1 %v5453_v12, %s7207_s26 }
 0x668   : > { %2734 = vrot.lane.b32.xlu0 %v2708_v10, %s7209_s5 }
 0x669   : > { %v5532_v24 = vpop.permute.xlu1 %1928  ;;  %v5534_v19 = vpop.permute.xlu2 %1732 }
 0x66a   : > { %v5536_v15 = vpop.permute.xlu0 %1848 }
 0x66f   : > { %2625 = vrot.lane.b32.xlu2 %v5453_v12, %s7214_s4  ;;  %1736 = vrot.lane.b32.xlu1 %v5477_v23, %s7166_s20 }
 0x670   : > { %2547 = vrot.lane.b32.xlu0 %v5477_v23, %s7212_s7 }
 0x671   : > { %v5544_v5 = vpop.permute.xlu1 %2453  ;;  %v5546_v40 = vpop.permute.xlu2 %1852 }
 0x672   : > { %7231 = vst [vmem:[#allocation94_spill] sm:$0xff] %v5546_v40  ;;  %v5548_v10 = vpop.permute.xlu0 %2406 }
 0x677   : > { %1816 = vrot.lane.b32.xlu2 %v5477_v23, %s7164_s29  ;;  %1856 = vrot.lane.b32.xlu1 %v5477_v23, %s7169_s22 }
 0x678   : > { %2590 = vrot.lane.b32.xlu0 %v5477_v23, %s7213_s8 }
 0x679   : > { %v5556_v55 = vpop.permute.xlu1 %2496  ;;  %v5558_v37 = vpop.permute.xlu2 %2457 }
 0x67a   : > { %7232 = vst [vmem:[#allocation95_spill] sm:$0xff] %v5558_v37  ;;  %v5561_v54 = vpop.permute.xlu0 %2979  ;;  %v7241_v37 = vld [vmem:[#allocation58_spill] sm:$0xff] }
 0x67b   : > { %7233 = vst [vmem:[#allocation96_spill] sm:$0xff] %v5561_v54  ;;  %v2266_v45 = vmul.f32 %v7241_v37, %v5477_v23 }
 0x67f   : > { %1936 = vrot.lane.b32.xlu2 %v5477_v23, %s7083_s2  ;;  %2504 = vrot.lane.b32.xlu1 %v5477_v23, %s7208_s6 }
 0x680   : > { %1734 = vrot.lane.b32.xlu0 %v5563_v26, %s7166_s20 }
 0x681   : > { %v5571_v49 = vpop.permute.xlu1 %2537  ;;  %v5573_v29 = vpop.permute.xlu2 %2290 }
 0x682   : > { %7234 = vst [vmem:[#allocation97_spill] sm:$0xff] %v5573_v29  ;;  %v5575_v11 = vpop.permute.xlu0 %1812  ;;  %v2264_v29 = vmul.f32 %v7216_v18, %v5563_v26 }
 0x683   : > { %7235 = vst [vmem:[#allocation98_spill] sm:$0xff] %v5575_v11 }
 0x687   : > { %2040 = vrot.lane.b32.xlu2 %v2014_v56, %s7114_s24  ;;  %2633 = vrot.lane.b32.xlu1 %v5477_v23, %s7214_s4 }
 0x688   : > { %1854 = vrot.lane.b32.xlu0 %v5563_v26, %s7169_s22 }
 0x689   : > { %v5584_v32 = vpop.permute.xlu1 %2580  ;;  %v5586_v8 = vpop.permute.xlu2 %2738 }
 0x68a   : > { %7236 = vst [vmem:[#allocation99_spill] sm:$0xff] %v5586_v8  ;;  %v5588_v54 = vpop.permute.xlu0 %1932  ;;  %v1683_v8 = vadd.f32 %v1682_v48, %v7239_v7 }
 0x68b   : > { %7237 = vst [vmem:[#allocation100_spill] sm:$0xff] %v5588_v54  ;;  %v2019_v54 = vmul.f32 %v7242_v43, %v5477_v23 }
 0x68c   : > { %v5608_v44 = vmax.f32 %v1683_v8, 0.0 }
 0x68f   : > { %2461 = vrot.lane.b32.xlu2 %v5477_v23, %s7206_s28  ;;  %2981 = vrot.lane.b32.xlu1 %v2956_v60, %s7220_s9 }
 0x690   : > { %2459 = vrot.lane.b32.xlu0 %v5563_v26, %s7206_s28 }
 0x691   : > { %v5597_v57 = vpop.permute.xlu1 %2623  ;;  %v5599_v56 = vpop.permute.xlu2 %2985 }
 0x692   : > { %7238 = vst [vmem:[#allocation101_spill] sm:$0xff] %v5599_v56  ;;  %v5602_v38 = vpop.permute.xlu0 %2410 }
 0x693   : > { %7240 = vst [vmem:[#allocation23_spill] sm:$0xff] %v5602_v38  ;;  %v2713_v38 = vmul.f32 %v5040_v52, %v5477_v23  ;;  %v2423_v52 = vsel %vm7034_vm0, %v5109_v14, %v5548_v10  ;;  %v2513_v14 = vsel %vm7049_vm12, %v5111_v31, %v5556_v55  ;;  %vm2598_vm0 = vcmask 801792  }
 0x697   : > { %2296 = vrot.lane.b32.xlu2 %v2266_v45, %s7145_s27  ;;  %2050 = vrot.lane.b32.xlu1 %v2019_v54, %s7114_s24 }
 0x698   : > { %1740 = vrot.lane.b32.xlu0 %v5608_v44, %s7166_s20 }
 0x699   : > { %v5614_v60 = vpop.permute.xlu2 %1810  ;;  %v5616_v48 = vpop.permute.xlu1 %2038 }
 0x69a   : > { %v5618_v56 = vpop.permute.xlu0 %2500 }
 0x69b   : > { %7243 = vst [vmem:[#allocation58_spill] sm:$0xff] %v5618_v56  ;;  %v2961_v56 = vmul.f32 %v5059_v20, %v5477_v23 }
 0x69f   : > { %1774 = vrot.lane.b32.xlu2 %v5563_v26, %s7165_s23  ;;  %2744 = vrot.lane.b32.xlu1 %v2713_v38, %s7209_s5  ;;  %v7246_v38 = vld [vmem:[#allocation13_spill] sm:$0xff] }
 0x6a0   : > { %1860 = vrot.lane.b32.xlu0 %v5608_v44, %s7169_s22  ;;  %vm7047_vm4 = vcmp.ge.s32.totalorder %v7246_v38, 2  ;;  %vm7036_vm11 = vcmp.lt.s32.totalorder %v7246_v38, 14 }
 0x6a1   : > { %v5627_v45 = vpop.permute.xlu2 %1930  ;;  %v5629_v54 = vpop.permute.xlu1 %1772  ;;  %v2439_v18 = vsel %vm7047_vm4, %v2423_v52, 0.0  ;;  %v2755_v52 = vsel %vm7033_vm15, %v5175_v51, %v5521_v9  ;;  %v2711_v51 = vmul.f32 %v5030_v42, %v5563_v26  ;;  %vm2555_vm15 = vcmask 1031168  }
 0x6a2   : > { %7244 = vst [vmem:[#allocation102_spill] sm:$0xff] %v5629_v54  ;;  %v5631_v8 = vpop.permute.xlu0 %2586 }
 0x6a3   : > { %7245 = vst [vmem:[#allocation103_spill] sm:$0xff] %v5631_v8 }
 0x6a7   : > { %1894 = vrot.lane.b32.xlu2 %v5563_v26, %s7168_s25  ;;  %2991 = vrot.lane.b32.xlu1 %v2961_v56, %s7220_s9  ;;  %v2470_v56 = vsel %vm7048_vm7, %v5068_v28, %v5544_v5  ;;  %v2529_v28 = vsel %vm7047_vm4, %v2513_v14, 0.0 }
 0x6a8   : > { %2292 = vrot.lane.b32.xlu0 %v2264_v29, %s7145_s27  ;;  %v2682_v29 = vmul.f32 %v5097_v0, %v2439_v18  ;;  %v2486_v18 = vsel %vm7036_vm11, %v2470_v56, 0.0  ;;  %v2827_v40 = vmul.f32 %v5154_v58, %v2529_v28 }
 0x6a9   : > { %v5645_v8 = vpop.permute.xlu2 %2455  ;;  %v5647_v43 = vpop.permute.xlu1 %1892  ;;  %v2795_v13 = vmul.f32 %v5130_v22, %v2486_v18  ;;  %v1744_v18 = vsel %vm864_vm14, %v7193_v30, %v5523_v6 }
 0x6aa   : > { %7247 = vst [vmem:[#allocation13_spill] sm:$0xff] %v5647_v43  ;;  %v5649_v23 = vpop.permute.xlu0 %1770  ;;  %v2771_v43 = vadd.f32 %v2755_v52, %v2682_v29 }
 0x6ac   : > { %v2803_v11 = vadd.f32 %v2795_v13, %v2771_v43  ;;  %v2859_v13 = vmul.f32 %v5423_v63, %v5375_v27 }
 0x6ae   : > { %v2835_v14 = vadd.f32 %v2827_v40, %v2803_v11 }
 0x6af   : > { %2545 = vrot.lane.b32.xlu2 %v5563_v26, %s7212_s7  ;;  %1814 = vrot.lane.b32.xlu1 %v5563_v26, %s7164_s29 }
 0x6b0   : > { %2465 = vrot.lane.b32.xlu0 %v5608_v44, %s7206_s28  ;;  %v2867_v43 = vadd.f32 %v2859_v13, %v2835_v14 }
 0x6b1   : > { %v5674_v31 = vpop.permute.xlu2 %2498  ;;  %v5676_v20 = vpop.permute.xlu1 %2543 }
 0x6b2   : > { %7248 = vst [vmem:[#allocation104_spill] sm:$0xff] %v5676_v20  ;;  %v5678_v34 = vpop.permute.xlu0 %1890 }
 0x6b7   : > { %2631 = vrot.lane.b32.xlu2 %v5563_v26, %s7214_s4  ;;  %1934 = vrot.lane.b32.xlu1 %v5563_v26, %s7083_s2 }
 0x6b8   : > { %2740 = vrot.lane.b32.xlu0 %v2711_v51, %s7209_s5 }
 0x6b9   : > { %v5689_v56 = vpop.permute.xlu2 %2539  ;;  %v5691_v29 = vpop.permute.xlu1 %2629 }
 0x6ba   : > { %7249 = vst [vmem:[#allocation105_spill] sm:$0xff] %v5691_v29  ;;  %v5693_v52 = vpop.permute.xlu0 %1776  ;;  %v2556_v42 = vsel %vm2555_vm15, %v5571_v49, %v5689_v56 }
 0x6bb   : > { %7250 = vst [vmem:[#allocation106_spill] sm:$0xff] %v5693_v52  ;;  %v2572_v28 = vsel %vm7036_vm11, %v2556_v42, 0.0  ;;  %v1760_v42 = vsel %vm624_vm2, %v1744_v18, 0.0  ;;  %v7253_v52 = vld [vmem:[#allocation32_spill] sm:$0xff]  ;;  %vm7046_vm11 = vcmask 769024   ;;  %v1824_v18 = vsel %vm914_vm8, %v4600_v2, %v5519_v17 }
 0x6bc   : > { %v2891_v11 = vmul.f32 %v5356_v16, %v2572_v28  ;;  %v1988_v29 = vmul.f32 %v5475_v47, %v1760_v42  ;;  %v7256_v42 = vld [vmem:[#allocation43_spill] sm:$0xff] }
 0x6be   : > { %v2899_v40 = vadd.f32 %v2891_v11, %v2867_v43  ;;  %v1784_v43 = vsel %vm891_vm10, %v4632_v41, %v5485_v35  ;;  %v1699_v41 = vpop.f32.mrf.mxu1 }
 0x6bf   : > { %1780 = vrot.lane.b32.xlu2 %v5608_v44, %s7165_s23  ;;  %2412 = vrot.lane.b32.xlu1 %v5563_v26, %s7207_s26 }
 0x6c0   : > { %2551 = vrot.lane.b32.xlu0 %v5608_v44, %s7212_s7 }
 0x6c1   : > { %v5712_v49 = vpop.permute.xlu2 %2582  ;;  %v5714_v51 = vpop.permute.xlu1 %2044 }
 0x6c2   : > { %7251 = vst [vmem:[#allocation107_spill] sm:$0xff] %v5714_v51  ;;  %v5716_v14 = vpop.permute.xlu0 %1896  ;;  %v2599_v13 = vsel %vm2598_vm0, %v5584_v32, %v5712_v49  ;;  %v1800_v32 = vsel %vm626_vm5, %v1784_v43, 0.0 }
 0x6c3   : > { %7252 = vst [vmem:[#allocation108_spill] sm:$0xff] %v5716_v14  ;;  %v2615_v28 = vsel %vm7047_vm4, %v2599_v13, 0.0  ;;  %v2060_v14 = vsel %vm1006_vm13, %v7253_v52, %v5616_v48 }
 0x6c4   : > { %v2923_v11 = vmul.f32 %v5360_v62, %v2615_v28  ;;  %v2076_v13 = vadd.f32 %v2060_v14, %v1988_v29  ;;  %v2100_v28 = vmul.f32 %v7256_v42, %v1800_v32  ;;  %v2017_v29 = vmul.f32 %v7226_v36, %v5563_v26  ;;  %v7258_v14 = vld [vmem:[#allocation38_spill] sm:$0xff] }
 0x6c5   : > { %v1700_v36 = vadd.f32 %v1699_v41, %v7223_v50  ;;  %v7262_v41 = vld [vmem:[#allocation47_spill] sm:$0xff] }
 0x6c6   : > { %v5733_v20 = vadd.f32 %v2923_v11, %v2899_v40  ;;  %v2108_v2 = vadd.f32 %v2100_v28, %v2076_v13  ;;  %v7261_v28 = vld [vmem:[#allocation42_spill] sm:$0xff] }
 0x6c7   : > { %1900 = vrot.lane.b32.xlu2 %v5608_v44, %s7168_s25  ;;  %2502 = vrot.lane.b32.xlu1 %v5563_v26, %s7208_s6 }
 0x6c8   : > { %7254 = vst [vmem:[#allocation32_spill] sm:$0xff] %v5733_v20  ;;  %2594 = vrot.lane.b32.xlu0 %v5608_v44, %s7213_s8  ;;  %v1840_v20 = vsel %vm624_vm2, %v1824_v18, 0.0 }
 0x6c9   : > { %v5746_v52 = vpop.permute.xlu2 %2625  ;;  %v1731_v40 = vpop.permute.xlu1 %1730  ;;  %v2132_v51 = vmul.f32 %v7258_v14, %v1840_v20 }
 0x6ca   : > { %7255 = vst [vmem:[#allocation109_spill] sm:$0xff] %v5746_v52  ;;  %v5749_v43 = vpop.permute.xlu0 %2286  ;;  %v5754_v11 = vsel %vm7046_vm11, %v5597_v57, %v5746_v52  ;;  %v1904_v57 = vsel %vm7052_vm3, %v5498_v59, %v5678_v34 }
 0x6cb   : > { %7257 = vst [vmem:[#allocation43_spill] sm:$0xff] %v5754_v11  ;;  %v2140_v32 = vadd.f32 %v2132_v51, %v2108_v2  ;;  %v1920_v51 = vsel %vm624_vm2, %v1904_v57, 0.0  ;;  %v1944_v11 = vsel %vm983_vm9, %v5532_v24, %v5627_v45  ;;  %v7264_v57 = vld [vmem:[#allocation16_spill] sm:$0xff]  ;;  %v2471_v24 = vsel %vm7048_vm7, %v5544_v5, %v5645_v8 }
 0x6cc   : > { %vm631_vm11 = vcmp.lt.s32.totalorder %v7264_v57, 14  ;;  %vm629_vm4 = vcmp.ge.s32.totalorder %v7264_v57, 2  ;;  %vm7265_vm7 = vcmask 277504  }
 0x6cf   : > { %2046 = vrot.lane.b32.xlu2 %v2017_v29, %s7114_s24  ;;  %2588 = vrot.lane.b32.xlu1 %v5563_v26, %s7213_s8  ;;  %v2164_v29 = vmul.f32 %v7261_v28, %v5375_v27 }
 0x6d0   : > { %2637 = vrot.lane.b32.xlu0 %v5608_v44, %s7214_s4 }
 0x6d1   : > { %v5769_v18 = vpop.permute.xlu2 %1816  ;;  %v1851_v13 = vpop.permute.xlu1 %1850  ;;  %v2172_v52 = vadd.f32 %v2164_v29, %v2140_v32 }
 0x6d2   : > { %7259 = vst [vmem:[#allocation38_spill] sm:$0xff] %v5769_v18  ;;  %v5772_v20 = vpop.permute.xlu0 %2414  ;;  %v1864_v2 = vsel %vm7053_vm6, %v5536_v15, %v1851_v13  ;;  %v7263_v18 = vld [vmem:[#allocation52_spill] sm:$0xff]  ;;  %v1960_v15 = vsel %vm626_vm5, %v1944_v11, 0.0 }
 0x6d3   : > { %7260 = vst [vmem:[#allocation110_spill] sm:$0xff] %v5772_v20  ;;  %v1880_v59 = vsel %vm626_vm5, %v1864_v2, 0.0  ;;  %v5786_v20 = vmax.f32 %v1700_v36, 0.0  ;;  %v2228_v27 = vmul.f32 %v7263_v18, %v1920_v51  ;;  %v2348_v29 = vmul.f32 %v5017_v39, %v1960_v15  ;;  %v7268_v15 = vld [vmem:[#allocation59_spill] sm:$0xff] }
 0x6d4   : > { %v2196_v50 = vmul.f32 %v7262_v41, %v1880_v59  ;;  %v2514_v2 = vsel %vm7049_vm12, %v5556_v55, %v5674_v31  ;;  %v2487_v51 = vsel %vm631_vm11, %v2471_v24, 0.0  ;;  %v1785_v31 = vsel %vm891_vm10, %v5485_v35, %v5649_v23 }
 0x6d5   : > { %v2530_v55 = vsel %vm629_vm4, %v2514_v2, 0.0  ;;  %vm7269_vm12 = vcmp.ge.s32.totalorder %v7264_v57, 1  ;;  %v1825_v23 = vsel %vm914_vm8, %v5519_v17, %v5614_v60 }
 0x6d6   : > { %v2204_v54 = vadd.f32 %v2196_v50, %v2172_v52  ;;  %v2308_v52 = vsel %vm7055_vm1, %v5509_v3, %v5749_v43  ;;  %v1745_v3 = vsel %vm864_vm14, %v5523_v6, %v1731_v40  ;;  %v2269_v6 = vmul.f32 %v7268_v15, %v5608_v44 }
 0x6d7   : > { %2508 = vrot.lane.b32.xlu2 %v5608_v44, %s7208_s6  ;;  %1820 = vrot.lane.b32.xlu1 %v5608_v44, %s7164_s29  ;;  %v2796_v40 = vmul.f32 %v5130_v22, %v2487_v51  ;;  %v1761_v24 = vsel %vm7269_vm12, %v1745_v3, 0.0  ;;  %v2828_v35 = vmul.f32 %v5154_v58, %v2530_v55 }
 0x6d8   : > { %1818 = vrot.lane.b32.xlu0 %v5786_v20, %s7164_s29  ;;  %v2236_v32 = vadd.f32 %v2228_v27, %v2204_v54  ;;  %v1989_v60 = vmul.f32 %v5475_v47, %v1761_v24 }
 0x6d9   : > { %v5805_v11 = vpop.permute.xlu2 %1936  ;;  %v2409_v36 = vpop.permute.xlu1 %2408 }
 0x6da   : > { %v2735_v5 = vpop.permute.xlu0 %2734  ;;  %v2424_v8 = vsel %vm7265_vm7, %v5548_v10, %v2409_v36  ;;  %v2324_v54 = vadd.f32 %v2308_v52, %v2236_v32  ;;  %vm7267_vm7 = vcmask 261120  }
 0x6db   : > { %v2440_v59 = vsel %vm629_vm4, %v2424_v8, 0.0  ;;  %v2756_v10 = vsel %vm7267_vm7, %v5521_v9, %v2735_v5  ;;  %vm7270_vm7 = vcmp.lt.s32.totalorder %v7264_v57, 15  ;;  %v2600_v9 = vsel %vm2598_vm0, %v5712_v49, %v5118_v4 }
 0x6dc   : > { %v2683_v50 = vmul.f32 %v5097_v0, %v2440_v59  ;;  %v5820_v27 = vadd.f32 %v2348_v29, %v2324_v54  ;;  %v2557_v0 = vsel %vm2555_vm15, %v5689_v56, %v5090_v1  ;;  %v1801_v22 = vsel %vm7270_vm7, %v1785_v31, 0.0 }
 0x6dd   : > { %v2573_v17 = vsel %vm631_vm11, %v2557_v0, 0.0  ;;  %v1841_v29 = vsel %vm7269_vm12, %v1825_v23, 0.0  ;;  %v2860_v5 = vmul.f32 %v5423_v63, %v5453_v12  ;;  %v2101_v8 = vmul.f32 %v7256_v42, %v1801_v22 }
 0x6de   : > { %7266 = vst [vmem:[#allocation42_spill] sm:$0xff] %v5820_v27  ;;  %v2772_v32 = vadd.f32 %v2756_v10, %v2683_v50  ;;  %v2616_v47 = vsel %vm629_vm4, %v2600_v9, 0.0  ;;  %v1865_v54 = vsel %vm7053_vm6, %v1851_v13, %v4522_v53  ;;  %v2892_v3 = vmul.f32 %v5356_v16, %v2573_v17 }
 0x6df   : > { %2302 = vrot.lane.b32.xlu2 %v2269_v6, %s7145_s27  ;;  %1940 = vrot.lane.b32.xlu1 %v5608_v44, %s7083_s2  ;;  %v2133_v50 = vmul.f32 %v7258_v14, %v1841_v29  ;;  %v2964_v63 = vmul.f32 %v5092_v33, %v5608_v44  ;;  %v2924_v42 = vmul.f32 %v5360_v62, %v2616_v47  ;;  %v1881_v55 = vsel %vm7270_vm7, %v1865_v54, 0.0  ;;  %v7277_v47 = vld [vmem:[#allocation28_spill] sm:$0xff] }
 0x6e0   : > { %v2804_v56 = vadd.f32 %v2796_v40, %v2772_v32  ;;  %1938 = vrot.lane.b32.xlu0 %v5786_v20, %s7083_s2  ;;  %v2165_v16 = vmul.f32 %v7261_v28, %v5453_v12  ;;  %v1945_v14 = vsel %vm983_vm9, %v5627_v45, %v7194_v46  ;;  %v2197_v12 = vmul.f32 %v7262_v41, %v1881_v55 }
 0x6e1   : > { %v2041_v52 = vpop.permute.xlu2 %2040  ;;  %v5854_v36 = vpop.permute.xlu1 %1736  ;;  %v1961_v23 = vsel %vm7270_vm7, %v1945_v14, 0.0  ;;  %v2959_v22 = vmul.f32 %v5102_v61, %v5563_v26  ;;  %v1746_v45 = vsel %vm864_vm14, %v7193_v30, %v5534_v19  ;;  %v2309_v41 = vsel %vm7055_vm1, %v5749_v43, %v5012_v25 }
 0x6e2   : > { %v2836_v58 = vadd.f32 %v2828_v35, %v2804_v56  ;;  %v5858_v2 = vpop.permute.xlu0 %2547  ;;  %v2061_v49 = vsel %vm1006_vm13, %v5616_v48, %v2041_v52  ;;  %v1905_v48 = vsel %vm7052_vm3, %v5678_v34, %v4486_v21  ;;  %v2267_v9 = vmul.f32 %v7241_v37, %v5786_v20  ;;  %v7274_v52 = vld [vmem:[#allocation15_spill] sm:$0xff] }
 0x6e3   : > { %v2077_v51 = vadd.f32 %v2061_v49, %v1989_v60  ;;  %v1921_v34 = vsel %vm7269_vm12, %v1905_v48, 0.0  ;;  %v2349_v56 = vmul.f32 %v5017_v39, %v1961_v23  ;;  %v1762_v17 = vsel %vm624_vm2, %v1746_v45, 0.0  ;;  %v7273_v39 = vld [vmem:[#allocation102_spill] sm:$0xff]  ;;  %v7275_v49 = vld [vmem:[#allocation107_spill] sm:$0xff] }
 0x6e4   : > { %v2868_v59 = vadd.f32 %v2860_v5, %v2836_v58  ;;  %v2229_v24 = vmul.f32 %v7263_v18, %v1921_v34  ;;  %v1701_v18 = vpop.f32.mrf.mxu1  ;;  %v1786_v29 = vsel %vm891_vm10, %v7274_v52, %v7273_v39  ;;  %v7276_v5 = vld [vmem:[#allocation34_spill] sm:$0xff]  ;;  %v1990_v54 = vmul.f32 %v7277_v47, %v1762_v17 }
 0x6e5   : > { %v2109_v31 = vadd.f32 %v2101_v8, %v2077_v51  ;;  %v1702_v37 = vadd.f32 %v1701_v18, %v7239_v7  ;;  %v2062_v8 = vsel %vm1006_vm13, %v7276_v5, %v7275_v49  ;;  %v1802_v51 = vsel %vm626_vm5, %v1786_v29, 0.0  ;;  %v7280_v7 = vld [vmem:[#allocation98_spill] sm:$0xff] }
 0x6e6   : > { %v2900_v13 = vadd.f32 %v2892_v3, %v2868_v59  ;;  %v7278_v3 = vld [vmem:[#allocation31_spill] sm:$0xff]  ;;  %v7281_v48 = vld [vmem:[#allocation14_spill] sm:$0xff] }
 0x6e7   : > { %v2141_v10 = vadd.f32 %v2133_v50, %v2109_v31  ;;  %2997 = vrot.lane.b32.xlu2 %v2964_v63, %s7220_s9  ;;  %2418 = vrot.lane.b32.xlu1 %v5608_v44, %s7207_s26  ;;  %v2022_v59 = vmul.f32 %v7278_v3, %v5608_v44  ;;  %v5940_v50 = vmax.f32 %v1702_v37, 0.0  ;;  %v1826_v31 = vsel %vm914_vm8, %v7281_v48, %v7280_v7 }
 0x6e8   : > { %2463 = vrot.lane.b32.xlu0 %v5786_v20, %s7206_s28  ;;  %v5888_v62 = vadd.f32 %v2924_v42, %v2900_v13  ;;  %v2078_v63 = vadd.f32 %v2062_v8, %v1990_v54  ;;  %v7282_v42 = vld [vmem:[#allocation33_spill] sm:$0xff]  ;;  %v1842_v13 = vsel %vm624_vm2, %v1826_v31, 0.0 }
 0x6e9   : > { %v2173_v28 = vadd.f32 %v2165_v16, %v2141_v10  ;;  %v5894_v6 = vpop.permute.xlu2 %2461  ;;  %v5896_v40 = vpop.permute.xlu1 %1856  ;;  %7279 = vst [vmem:[#allocation16_spill] sm:$0xff] %v5940_v50  ;;  %v2102_v55 = vmul.f32 %v7282_v42, %v1802_v51  ;;  %v7290_v8 = vld [vmem:[#allocation13_spill] sm:$0xff] }
 0x6ea   : > { %7271 = vst [vmem:[#allocation47_spill] sm:$0xff] %v5888_v62  ;;  %v5898_v0 = vpop.permute.xlu0 %2590  ;;  %v7291_v31 = vld [vmem:[#allocation53_spill] sm:$0xff] }
 0x6eb   : > { %v2205_v32 = vadd.f32 %v2197_v12, %v2173_v28  ;;  %v2110_v34 = vadd.f32 %v2102_v55, %v2078_v63  ;;  %v7283_v12 = vld [vmem:[#allocation94_spill] sm:$0xff] }
 0x6ed   : > { %v2237_v35 = vadd.f32 %v2229_v24, %v2205_v32  ;;  %v7284_v24 = vld [vmem:[#allocation45_spill] sm:$0xff] }
 0x6ee   : > { %v2134_v32 = vmul.f32 %v7284_v24, %v1842_v13 }
 0x6ef   : > { %1738 = vrot.lane.b32.xlu2 %v5786_v20, %s7166_s20  ;;  %2987 = vrot.lane.b32.xlu1 %v2959_v22, %s7220_s9  ;;  %v2325_v61 = vadd.f32 %v2309_v41, %v2237_v35  ;;  %v7285_v22 = vld [vmem:[#allocation62_spill] sm:$0xff]  ;;  %v7286_v41 = vld [vmem:[#allocation21_spill] sm:$0xff] }
 0x6f0   : > { %2298 = vrot.lane.b32.xlu0 %v2267_v9, %s7145_s27  ;;  %v2716_v35 = vmul.f32 %v7285_v22, %v5608_v44  ;;  %v2142_v45 = vadd.f32 %v2134_v32, %v2110_v34  ;;  %v7287_v9 = vld [vmem:[#allocation44_spill] sm:$0xff] }
 0x6f1   : > { %v5920_v60 = vpop.permute.xlu2 %2296  ;;  %v5922_v25 = vpop.permute.xlu1 %2504  ;;  %v5924_v43 = vadd.f32 %v2349_v56, %v2325_v61  ;;  %v2166_v18 = vmul.f32 %v7287_v9, %v7286_v41  ;;  %v7288_v56 = vld [vmem:[#allocation49_spill] sm:$0xff] }
 0x6f2   : > { %v5930_v58 = vpop.permute.xlu0 %1734 }
 0x6f3   : > { %7272 = vst [vmem:[#allocation52_spill] sm:$0xff] %v5924_v43  ;;  %v2174_v29 = vadd.f32 %v2166_v18, %v2142_v45 }
 0x6f7   : > { %1858 = vrot.lane.b32.xlu2 %v5786_v20, %s7169_s22  ;;  %2056 = vrot.lane.b32.xlu1 %v2022_v59, %s7114_s24 }
 0x6f8   : > { %1782 = vrot.lane.b32.xlu0 %v5940_v50, %s7165_s23 }
 0x6f9   : > { %v1775_v16 = vpop.permute.xlu2 %1774  ;;  %v5953_v10 = vpop.permute.xlu1 %2633 }
 0x6fa   : > { %v5955_v14 = vpop.permute.xlu0 %1854 }
 0x6fb   : > { %v1866_v28 = vsel %vm7053_vm6, %v7283_v12, %v5955_v14 }
 0x6fc   : > { %v1882_v23 = vsel %vm626_vm5, %v1866_v28, 0.0  ;;  %v7292_v28 = vld [vmem:[#allocation29_spill] sm:$0xff] }
 0x6fd   : > { %v2198_v61 = vmul.f32 %v7288_v56, %v1882_v23  ;;  %v2020_v32 = vmul.f32 %v7292_v28, %v5786_v20  ;;  %v2270_v23 = vmul.f32 %v7268_v15, %v5940_v50  ;;  %v7294_v15 = vld [vmem:[#allocation65_spill] sm:$0xff] }
 0x6ff   : > { %2506 = vrot.lane.b32.xlu2 %v5786_v20, %s7208_s6  ;;  %2750 = vrot.lane.b32.xlu1 %v2716_v35, %s7209_s5  ;;  %v2206_v59 = vadd.f32 %v2198_v61, %v2174_v29  ;;  %v6011_v61 = vld [vmem:[%s6870_s15 + $0x10] sm:$0xff]  ;;  %v2714_v29 = vmul.f32 %v7294_v15, %v5786_v20 }
 0x700   : > { %1902 = vrot.lane.b32.xlu0 %v5940_v50, %s7168_s25 }
 0x701   : > { %v1895_v17 = vpop.permute.xlu2 %1894  ;;  %v5973_v37 = vpop.permute.xlu1 %2981 }
 0x702   : > { %7289 = vst [vmem:[#allocation59_spill] sm:$0xff] %v5973_v37  ;;  %v5975_v5 = vpop.permute.xlu0 %2459  ;;  %v1906_v54 = vsel %vm7052_vm3, %v7290_v8, %v1895_v17 }
 0x703   : > { %v1922_v51 = vsel %vm624_vm2, %v1906_v54, 0.0 }
 0x704   : > { %v2230_v63 = vmul.f32 %v7291_v31, %v1922_v51 }
 0x706   : > { %v2238_v55 = vadd.f32 %v2230_v63, %v2206_v59  ;;  %v7296_v59 = vld [vmem:[#allocation97_spill] sm:$0xff] }
 0x707   : > { %2635 = vrot.lane.b32.xlu2 %v5786_v20, %s7214_s4  ;;  %1778 = vrot.lane.b32.xlu1 %v5786_v20, %s7165_s23 }
 0x708   : > { %2510 = vrot.lane.b32.xlu0 %v5940_v50, %s7208_s6 }
 0x709   : > { %v5988_v13 = vpop.permute.xlu2 %2545  ;;  %v5990_v34 = vpop.permute.xlu1 %2050 }
 0x70a   : > { %v5992_v12 = vpop.permute.xlu0 %1740 }
 0x70f   : > { %2052 = vrot.lane.b32.xlu2 %v2020_v32, %s7114_s24  ;;  %1898 = vrot.lane.b32.xlu1 %v5786_v20, %s7168_s25  ;;  %v6031_v32 = vld [vmem:[%s6870_s15 + $0x8] sm:$0xff] }
 0x710   : > { %2304 = vrot.lane.b32.xlu0 %v2270_v23, %s7145_s27  ;;  %v7297_v23 = vld [vmem:[#allocation66_spill] sm:$0xff] }
 0x711   : > { %v6002_v35 = vpop.permute.xlu2 %2631  ;;  %v6004_v45 = vpop.permute.xlu1 %2744  ;;  %v2962_v15 = vmul.f32 %v7297_v23, %v5786_v20 }
 0x712   : > { %v6006_v18 = vpop.permute.xlu0 %1860 }
 0x713   : > { %7293 = vst [vmem:[#allocation102_spill] sm:$0xff] %v6006_v18 }
 0x717   : > { %2746 = vrot.lane.b32.xlu2 %v2714_v29, %s7209_s5  ;;  %2416 = vrot.lane.b32.xlu1 %v5786_v20, %s7207_s26 }
 0x718   : > { %2376 = vperm.xlu0 %3982, %v6011_v61  }
 0x719   : > { %v6019_v8 = vpop.permute.xlu2 %1780  ;;  %v6021_v54 = vpop.permute.xlu1 %2991 }
 0x71a   : > { %7295 = vst [vmem:[#allocation15_spill] sm:$0xff] %v6021_v54  ;;  %v6023_v51 = vpop.permute.xlu0 %2292  ;;  %v7303_v54 = vld [vmem:[#allocation23_spill] sm:$0xff] }
 0x71b   : > { %v2310_v63 = vsel %vm7055_vm1, %v7296_v59, %v6023_v51  ;;  %v1787_v59 = vsel %vm891_vm10, %v7273_v39, %v1775_v16 }
 0x71c   : > { %v2326_v28 = vadd.f32 %v2310_v63, %v2238_v55  ;;  %v1747_v55 = vsel %vm864_vm14, %v5534_v19, %v5930_v58  ;;  %v7300_v19 = vmov 1  }
 0x71d   : > { %v1763_v63 = vsel %vm7269_vm12, %v1747_v55, 0.0  ;;  %v7301_v55 = vld [vmem:[#allocation100_spill] sm:$0xff] }
 0x71e   : > { %v1991_v39 = vmul.f32 %v7277_v47, %v1763_v63  ;;  %v7302_v63 = vld [vmem:[#allocation88_spill] sm:$0xff] }
 0x71f   : > { %2993 = vrot.lane.b32.xlu2 %v2962_v15, %s7220_s9  ;;  %2549 = vrot.lane.b32.xlu1 %v5786_v20, %s7212_s7  ;;  %v1803_v15 = vsel %vm7270_vm7, %v1787_v59, 0.0  ;;  %v1867_v59 = vsel %vm7053_vm6, %v5955_v14, %v4522_v53  ;;  %vm7305_vm7 = vcmask 277504  }
 0x720   : > { %2371 = vperm.xlu0 %3982, %v6031_v32   ;;  %v2103_v37 = vmul.f32 %v7282_v42, %v1803_v15 }
 0x721   : > { %v6039_v29 = vpop.permute.xlu2 %1900  ;;  %v1815_v43 = vpop.permute.xlu1 %1814 }
 0x722   : > { %7298 = vst [vmem:[#allocation107_spill] sm:$0xff] %v6039_v29  ;;  %v1827_v23 = vsel %vm914_vm8, %v7280_v7, %v1815_v43  ;;  %v6056_v27 = vpop.permute.xlu0 %2465 }
 0x723   : > { %7299 = vst [vmem:[#allocation34_spill] sm:$0xff] %v6056_v27  ;;  %v1843_v43 = vsel %vm7269_vm12, %v1827_v23, 0.0  ;;  %v1907_v23 = vsel %vm7052_vm3, %v1895_v17, %v4486_v21  ;;  %vm7306_vm12 = vcmp.lt.s32.totalorder %v7264_v57, 15  ;;  %vm7309_vm3 = vcmask 244736  }
 0x724   : > { %v1883_v14 = vsel %vm7306_vm12, %v1867_v59, 0.0  ;;  %vm7311_vm12 = vcmp.ge.s32.totalorder %v7246_v38, 2  ;;  %vm7314_vm6 = vmmov %vm7309_vm3 }
 0x727   : > { %1822 = vrot.lane.b32.xlu2 %v5940_v50, %s7164_s29  ;;  %2592 = vrot.lane.b32.xlu1 %v5786_v20, %s7213_s8  ;;  %s610_s29 = sand.u32 1, %s4099_s30  }
 0x728   : > { %3987 = vset.pattern.permute.xlu0 %v7300_v19  ;;  %s3395_s25 = scalar_lea.sflag [#allocation4], %s610_s29 }
 0x729   : > { %v2047_v58 = vpop.permute.xlu2 %2046  ;;  %v1935_v16 = vpop.permute.xlu1 %1934 }
 0x72a   : > { %v2063_v7 = vsel %vm1006_vm13, %v7275_v49, %v2047_v58  ;;  %v1946_v62 = vsel %vm983_vm9, %v7301_v55, %v1935_v16  ;;  %v2135_v49 = vmul.f32 %v7284_v24, %v1843_v43  ;;  %v7304_v55 = vld [vmem:[#allocation73_spill] sm:$0xff] }
 0x72b   : > { %v2079_v27 = vadd.f32 %v2063_v7, %v1991_v39  ;;  %v1962_v47 = vsel %vm626_vm5, %v1946_v62, 0.0  ;;  %v2425_v29 = vsel %vm7305_vm7, %v7304_v55, %v7303_v54  ;;  %v2167_v62 = vmul.f32 %v7287_v9, %v5563_v26  ;;  %v7313_v7 = vld [vmem:[#allocation68_spill] sm:$0xff] }
 0x72c   : > { %v2350_v18 = vmul.f32 %v7302_v63, %v1962_v47  ;;  %vm7310_vm7 = vcmp.ge.s32.totalorder %v7264_v57, 1 }
 0x72d   : > { %v2111_v58 = vadd.f32 %v2103_v37, %v2079_v27  ;;  %v7308_v27 = vld [vmem:[#allocation95_spill] sm:$0xff]  ;;  %v1923_v17 = vsel %vm7310_vm7, %v1907_v23, 0.0  ;;  %v2441_v37 = vsel %vm7311_vm12, %v2425_v29, 0.0  ;;  %vm7319_vm7 = vcmask 15360  }
 0x72e   : > { %v6081_v42 = vadd.f32 %v2350_v18, %v2326_v28  ;;  %v2473_v24 = vsel %vm7309_vm3, %v7308_v27, %v5975_v5  ;;  %v2199_v18 = vmul.f32 %v7288_v56, %v1883_v14  ;;  %v1947_v28 = vsel %vm983_vm9, %v1935_v16, %v7194_v46  ;;  %v2741_v5 = vpop.permute.xlu0 %2740  ;;  %v7317_v14 = vld [vmem:[#allocation58_spill] sm:$0xff] }
 0x72f   : > { %v2143_v15 = vadd.f32 %v2135_v49, %v2111_v58  ;;  %1942 = vrot.lane.b32.xlu2 %v5940_v50, %s7083_s2  ;;  %1742 = vrot.lane.b32.xlu1 %v5940_v50, %s7166_s20  ;;  %v2472_v59 = vsel %vm7314_vm6, %v7313_v7, %v7308_v27  ;;  %vm7315_vm3 = vcmask 277504   ;;  %v2489_v29 = vsel %vm631_vm11, %v2473_v24, 0.0  ;;  %v7316_v49 = vld [vmem:[#allocation80_spill] sm:$0xff] }
 0x730   : > { %7307 = vst [vmem:[#allocation28_spill] sm:$0xff] %v6081_v42  ;;  %v2231_v56 = vmul.f32 %v7291_v31, %v1923_v17  ;;  %v2684_v58 = vmul.f32 %v7316_v49, %v2441_v37  ;;  %vm7320_vm6 = vcmp.lt.s32.totalorder %v7264_v57, 15  ;;  %vm7322_vm12 = vcmask 261120   ;;  %v7324_v17 = vld [vmem:[#allocation82_spill] sm:$0xff] }
 0x731   : > { %v2175_v9 = vadd.f32 %v2167_v62, %v2143_v15  ;;  %v6099_v39 = vpop.permute.xlu2 %2508  ;;  %v2413_v43 = vpop.permute.xlu1 %2412  ;;  %v7318_v62 = vld [vmem:[#allocation74_spill] sm:$0xff]  ;;  %v1963_v27 = vsel %vm7320_vm6, %v1947_v28, 0.0  ;;  %vm7328_vm6 = vcmp.ge.s32.totalorder %v7246_v38, 2 }
 0x732   : > { %7312 = vst [vmem:[#allocation31_spill] sm:$0xff] %v6099_v39  ;;  %v2426_v47 = vsel %vm7315_vm3, %v7303_v54, %v2413_v43  ;;  %v2515_v15 = vsel %vm7319_vm7, %v7318_v62, %v7317_v14  ;;  %v7321_v43 = vld [vmem:[#allocation99_spill] sm:$0xff]  ;;  %vm7323_vm3 = vcmp.lt.s32.totalorder %v7246_v38, 14  ;;  %v7326_v39 = vld [vmem:[#allocation81_spill] sm:$0xff]  ;;  %vm7327_vm7 = vmmov %vm7322_vm12 }
 0x733   : > { %v2442_v23 = vsel %vm629_vm4, %v2426_v47, 0.0  ;;  %v2207_v16 = vadd.f32 %v2199_v18, %v2175_v9  ;;  %v2758_v24 = vsel %vm7322_vm12, %v7321_v43, %v2741_v5  ;;  %v2488_v31 = vsel %vm7323_vm3, %v2472_v59, 0.0  ;;  %v7325_v9 = vld [vmem:[#allocation60_spill] sm:$0xff] }
 0x734   : > { %v2685_v54 = vmul.f32 %v7316_v49, %v2442_v23  ;;  %v2798_v18 = vmul.f32 %v7324_v17, %v2489_v29  ;;  %v2311_v37 = vsel %vm7055_vm1, %v6023_v51, %v7325_v9  ;;  %v2757_v28 = vsel %vm7327_vm7, %v7326_v39, %v7321_v43  ;;  %vm7339_vm7 = vmmov %vm7328_vm6 }
 0x735   : > { %v2239_v42 = vadd.f32 %v2231_v56, %v2207_v16  ;;  %v2531_v23 = vsel %vm7328_vm6, %v2515_v15, 0.0  ;;  %v2351_v5 = vmul.f32 %v7302_v63, %v1963_v27  ;;  %v2773_v29 = vadd.f32 %v2757_v28, %v2684_v58  ;;  %v7332_v63 = vld [vmem:[#allocation104_spill] sm:$0xff] }
 0x736   : > { %v2774_v47 = vadd.f32 %v2758_v24, %v2685_v54  ;;  %v2797_v51 = vmul.f32 %v7324_v17, %v2488_v31  ;;  %v7331_v54 = vld [vmem:[#allocation85_spill] sm:$0xff]  ;;  %v2558_v27 = vsel %vm2555_vm15, %v7332_v63, %v5988_v13  ;;  %v2559_v43 = vsel %vm2555_vm15, %v5988_v13, %v5090_v1  ;;  %v7334_v13 = vld [vmem:[#allocation86_spill] sm:$0xff]  ;;  %v1716_v28 = vld [vmem:[%s6870_s15] sm:$0xff] }
 0x737   : > { %2420 = vrot.lane.b32.xlu2 %v5940_v50, %s7207_s26  ;;  %1862 = vrot.lane.b32.xlu1 %v5940_v50, %s7169_s22  ;;  %v2327_v59 = vadd.f32 %v2311_v37, %v2239_v42  ;;  %v2829_v15 = vmul.f32 %v7331_v54, %v2531_v23  ;;  %vm7333_vm12 = vcmask 15360   ;;  %v2574_v17 = vsel %vm7323_vm3, %v2558_v27, 0.0  ;;  %s3679_s26 = sshll.u32 %s4269_s1, 6 }
 0x738   : > { %v2806_v56 = vadd.f32 %v2798_v18, %v2774_v47  ;;  %v2805_v24 = vadd.f32 %v2797_v51, %v2773_v29  ;;  %v2575_v18 = vsel %vm631_vm11, %v2559_v43, 0.0  ;;  %v2023_v9 = vmul.f32 %v7278_v3, %v5940_v50  ;;  %v6171_v29 = vpop.permute.xlu0 %2551  ;;  %3061 = vperm.xlu0 %3987, %v1716_v28   ;;  %s3406_s6 = scalar_lea.hbm %s6874_s19, %s3679_s26 }
 0x739   : > { %v6137_v16 = vpop.permute.xlu2 %2302  ;;  %v2503_v49 = vpop.permute.xlu1 %2502  ;;  %v6139_v39 = vadd.f32 %v2351_v5, %v2327_v59  ;;  %v2862_v47 = vmul.f32 %v7334_v13, %v5563_v26  ;;  %v2861_v23 = vmul.f32 %v7334_v13, %v7286_v41  ;;  %v7335_v5 = vld [vmem:[#allocation18_spill] sm:$0xff]  ;;  %7336 = vst [vmem:[#allocation33_spill] sm:$0xff] %v6171_v29  ;;  %vm7346_vm6 = vcmask 769024   ;;  %v7374_v29 = vld [vmem:[#allocation35_spill] sm:$0xff]  ;;  %s3409_s1 = sshll.u32 %s3406_s6, 4  ;;  %s3410_s1 = int_to_ptr.hbm [resolvable:$true] %s3409_s1 }
 0x73a   : > { %7329 = vst [vmem:[#allocation98_spill] sm:$0xff] %v6137_v16  ;;  %v2516_v42 = vsel %vm7333_vm12, %v7317_v14, %v2503_v49  ;;  %v2837_v37 = vadd.f32 %v2829_v15, %v2805_v24  ;;  %v2893_v59 = vmul.f32 %v7335_v5, %v2574_v17  ;;  %v2894_v3 = vmul.f32 %v7335_v5, %v2575_v18  ;;  %vm7348_vm12 = vmmov %vm7346_vm6  ;;  %v7375_v16 = vld [vmem:[#allocation39_spill] sm:$0xff]  ;;  %s4055_s2 = sshra.s32 %s3410_s1, 4  ;;  %s4056_s2 = int_to_ptr.hbm [resolvable:$true] %s4055_s2 }
 0x73b   : > { %7330 = vst [vmem:[#allocation14_spill] sm:$0xff] %v6139_v39  ;;  %v2532_v58 = vsel %vm629_vm4, %v2516_v42, 0.0  ;;  %v2717_v17 = vmul.f32 %v7285_v22, %v5940_v50  ;;  %vm3003_vm3 = vcmask 785408   ;;  %s4057_s22 = scalar_lea.hbm %s4056_s2, 64  ;;  %p4062_p3 = scmp.lt.s32.totalorder %s4056_s2, %s6874_s19 }
 0x73c   : > { %v2830_v31 = vmul.f32 %v7331_v54, %v2532_v58  ;;  %v2869_v49 = vadd.f32 %v2861_v23, %v2837_v37  ;;  %v7338_v54 = vld [vmem:[#allocation103_spill] sm:$0xff]  ;;  %v7341_v37 = vmov 0   ;;  %p4058_p0 = scmp.ne.s32.totalorder %s4056_s2, %s4057_s22 }
 0x73d   : > { %v7340_v58 = vld [vmem:[#allocation27_spill] sm:$0xff] }
 0x73e   : > { %v2838_v14 = vadd.f32 %v2830_v31, %v2806_v56  ;;  %v2901_v42 = vadd.f32 %v2893_v59, %v2869_v49  ;;  %v7343_v23 = vld [vmem:[#allocation67_spill] sm:$0xff]  ;;  %v2965_v49 = vmul.f32 %v5092_v33, %v5940_v50  ;;  %p4059_p1 = pnand %p4058_p0, %p4286_p5 }
 0x73f   : > { %2058 = vrot.lane.b32.xlu2 %v2023_v9, %s7114_s24  ;;  %2467 = vrot.lane.b32.xlu1 %v5940_v50, %s7206_s28  ;;  %v2957_v5 = vmul.f32 0.0, %v7343_v23 }
 0x740   : > { %v2870_v26 = vadd.f32 %v2862_v47, %v2838_v14  ;;  %3989 = vset.pattern.permute.xlu0 %v7341_v37  ;;  %v6193_v14 = vpop.permute.xlu0 %2594  ;;  %p4060_p2 = pneg %p4059_p1 }
 0x741   : > { %v6173_v56 = vpop.permute.xlu2 %2997  ;;  %v2589_v51 = vpop.permute.xlu1 %2588  ;;  %7342 = vst [vmem:[#allocation45_spill] sm:$0xff] %v6193_v14 }
 0x742   : > { %7337 = vst [vmem:[#allocation94_spill] sm:$0xff] %v6173_v56  ;;  %v2601_v15 = vsel %vm2598_vm0, %v7338_v54, %v2589_v51  ;;  %v2602_v63 = vsel %vm2598_vm0, %v2589_v51, %v5118_v4  ;;  %v2902_v27 = vadd.f32 %v2894_v3, %v2870_v26  ;;  %v7345_v54 = vld [vmem:[#allocation105_spill] sm:$0xff] }
 0x743   : > { %v2617_v41 = vsel %vm7339_vm7, %v2601_v15, 0.0  ;;  %v2618_v43 = vsel %vm629_vm4, %v2602_v63, 0.0  ;;  %v2644_v15 = vsel %vm7346_vm6, %v7345_v54, %v6002_v35  ;;  %v7347_v63 = vld [vmem:[#allocation19_spill] sm:$0xff]  ;;  %vm7349_vm7 = vcmp.lt.s32.totalorder %v7246_v38, 14 }
 0x744   : > { %v2925_v24 = vmul.f32 %v7340_v58, %v2617_v41  ;;  %v2926_v31 = vmul.f32 %v7340_v58, %v2618_v43  ;;  %v7350_v58 = vld [vmem:[#allocation101_spill] sm:$0xff]  ;;  %vm7359_vm6 = vcmask 277504  }
 0x746   : > { %v2933_v18 = vadd.f32 %v2925_v24, %v2901_v42  ;;  %v2934_v9 = vadd.f32 %v2926_v31, %v2902_v27  ;;  %v2645_v27 = vsel %vm7348_vm12, %v6002_v35, %v7347_v63  ;;  %v7351_v35 = vld [vmem:[#allocation54_spill] sm:$0xff]  ;;  %vm7361_vm12 = vcmp.ge.s32.totalorder %v7246_v38, 2 }
 0x747   : > { %2752 = vrot.lane.b32.xlu2 %v2717_v17, %s7209_s5  ;;  %2553 = vrot.lane.b32.xlu1 %v5940_v50, %s7212_s7  ;;  %v2661_v33 = vsel %vm631_vm11, %v2645_v27, 0.0  ;;  %v7352_v17 = vld [vmem:[#allocation92_spill] sm:$0xff] }
 0x748   : > { %v6203_v3 = vpop.permute.xlu0 %2637 }
 0x749   : > { %v1739_v13 = vpop.permute.xlu2 %1738  ;;  %v6191_v47 = vpop.permute.xlu1 %1820  ;;  %7344 = vst [vmem:[#allocation62_spill] sm:$0xff] %v6203_v3 }
 0x74f   : > { %2983 = vrot.lane.b32.xlu2 %v2957_v5, %s7220_s9  ;;  %2596 = vrot.lane.b32.xlu1 %v5940_v50, %s7213_s8  ;;  %v3047_v5 = vmul.f32 %v7352_v17, %v2661_v33  ;;  %v7355_v33 = vld [vmem:[#allocation91_spill] sm:$0xff] }
 0x750   : > { %v1819_v41 = vpop.permute.xlu0 %1818 }
 0x751   : > { %v6199_v22 = vpop.permute.xlu2 %1858  ;;  %v6201_v59 = vpop.permute.xlu1 %1940 }
 0x757   : > { %3069 = vperm.xlu2 %3984, %v6011_v61   ;;  %2639 = vrot.lane.b32.xlu1 %v5940_v50, %s7214_s4  ;;  %v2660_v61 = vsel %vm7349_vm7, %v2644_v15, 0.0  ;;  %v1790_v15 = vsel %vm891_vm10, %v7274_v52, %v6019_v8  ;;  %vm7365_vm7 = vcmask 261120   ;;  %s3490_s4 = sshll.u32 %s610_s29, 6 }
 0x758   : > { %v3046_v23 = vmul.f32 %v7352_v17, %v2660_v61  ;;  %v6254_v61 = vpop.permute.xlu0 %1938  ;;  %s6786_s28 = scalar_lea.vmem [#allocation5], %s3490_s4 }
 0x759   : > { %v6208_v26 = vpop.permute.xlu2 %2506  ;;  %v6210_v51 = vpop.permute.xlu1 %2418  ;;  %s3407_s27 = sshll.u32 %s6786_s28, 4  ;;  %s3408_s27 = int_to_ptr.vmem [resolvable:$true] %s3407_s27 }
 0x75f   : > { %3986 = vset.pattern.permute.xlu2 %v7341_v37  ;;  %2999 = vrot.lane.b32.xlu1 %v2965_v49, %s7220_s9  ;;  %s4061_s9 = scalar_lea.hbm %s6874_s19, 128 }
 0x760   : > { %2366 = vperm.xlu2 %3986, %v1716_v28   ;;  %v1750_v28 = vsel %vm864_vm14, %v7193_v30, %v5992_v12  ;;  %v2464_v14 = vpop.permute.xlu0 %2463  ;;  %p4063_p4 = scmp.lt.s32.totalorder %s4061_s9, %s4057_s22 }
 0x761   : > { %v6226_v43 = vpop.permute.xlu2 %2635  ;;  %v2988_v42 = vpop.permute.xlu1 %2987  ;;  %v1766_v27 = vsel %vm624_vm2, %v1750_v28, 0.0 }
 0x762   : > { %v3006_v24 = vsel %vm3003_vm3, %v7350_v58, %v2988_v42  ;;  %v3007_v31 = vsel %vm3003_vm3, %v2988_v42, %v7351_v35  ;;  %v1830_v35 = vsel %vm914_vm8, %v7281_v48, %v6191_v47  ;;  %p4064_p7 = por %p4063_p4, %p4062_p3 }
 0x763   : > { %v3022_v49 = vadd.f32 %v3006_v24, %v2933_v18  ;;  %v3023_v54 = vadd.f32 %v3007_v31, %v2934_v9  ;;  %v4010_v18 = vld [vmem:[%s6869_s14] sm:$0xff]  ;;  %v1806_v9 = vsel %vm626_vm5, %v1790_v15, 0.0  ;;  %v1994_v24 = vmul.f32 %v7355_v33, %v1766_v27 }
 0x764   : > { %v1846_v17 = vsel %vm624_vm2, %v1830_v35, 0.0  ;;  %v2429_v15 = vsel %vm7359_vm6, %v7304_v55, %v6210_v51  ;;  %v7363_v35 = vld [vmem:[#allocation69_spill] sm:$0xff]  ;;  %vm7367_vm6 = vcmp.ge.s32.totalorder %v7264_v57, 1  ;;  %p4065_p8 = pnand %p4064_p7, %p4060_p2 }
 0x765   : > { %v6242_v58 = vadd.f32 %v3046_v23, %v3022_v49  ;;  %v6244_v42 = vadd.f32 %v3047_v5, %v3023_v54  ;;  %v7357_v23 = vld [vmem:[#allocation40_spill] sm:$0xff]  ;;  %v2445_v39 = vsel %vm7361_vm12, %v2429_v15, 0.0  ;;  %vm7371_vm12 = vmmov %vm7367_vm6 }
 0x766   : > { %v7358_v49 = vld [vmem:[#allocation36_spill] sm:$0xff] }
 0x767   : > { %7353 = vst [vmem:[#allocation21_spill] sm:$0xff] %v6242_v58  ;;  %3029 = vperm.xlu1 %3983, %v4010_v18   ;;  %v2106_v54 = vmul.f32 %v7358_v49, %v1806_v9  ;;  %v7378_v49 = vld [vmem:[#allocation50_spill] sm:$0xff] }
 0x768   : > { %7354 = vst [vmem:[#allocation44_spill] sm:$0xff] %v6244_v42  ;;  %v7360_v42 = vld [vmem:[#allocation41_spill] sm:$0xff] }
 0x769   : > { %v2053_v31 = vpop.permute.xlu2 %2052  ;;  %v6257_v28 = vpop.permute.xlu1 %2056  ;;  %v2138_v58 = vmul.f32 %v7360_v42, %v1846_v17 }
 0x76a   : > { %7356 = vst [vmem:[#allocation49_spill] sm:$0xff] %v6257_v28  ;;  %v2066_v5 = vsel %vm1006_vm13, %v7357_v23, %v6257_v28  ;;  %v2688_v23 = vmul.f32 %v7363_v35, %v2445_v39  ;;  %v2065_v39 = vsel %vm1006_vm13, %v5990_v34, %v2053_v31 }
 0x76b   : > { %v2082_v18 = vadd.f32 %v2066_v5, %v1994_v24  ;;  %v7364_v24 = vld [vmem:[#allocation75_spill] sm:$0xff] }
 0x76d   : > { %v2114_v27 = vadd.f32 %v2106_v54, %v2082_v18  ;;  %v7368_v54 = vld [vmem:[#allocation38_spill] sm:$0xff] }
 0x76f   : > { %v6271_v56 = vadd.f32 %v2138_v58, %v2114_v27  ;;  %3985 = vset.pattern.permute.xlu1 %v7300_v19  ;;  %v1749_v58 = vsel %vm864_vm14, %v5854_v36, %v1739_v13  ;;  %v7369_v27 = vld [vmem:[#allocation24_spill] sm:$0xff] }
 0x770   : > { %3065 = vperm.xlu1 %3985, %v6031_v32   ;;  %v1765_v19 = vsel %vm7367_vm6, %v1749_v58, 0.0  ;;  %v1829_v32 = vsel %vm914_vm8, %v7368_v54, %v1819_v41  ;;  %vm7373_vm6 = vcmask 1039360   ;;  %v6304_v41 = vpop.permute.xlu0 %2298 }
 0x771   : > { %7362 = vst [vmem:[#allocation13_spill] sm:$0xff] %v6271_v56  ;;  %v2747_v9 = vpop.permute.xlu2 %2746  ;;  %v6276_v3 = vpop.permute.xlu1 %2750  ;;  %v1845_v13 = vsel %vm7371_vm12, %v1829_v32, 0.0  ;;  %v7377_v32 = vld [vmem:[#allocation48_spill] sm:$0xff]  ;;  %vm7381_vm12 = vcmask 244736  }
 0x772   : > { %v2761_v17 = vsel %vm7365_vm7, %v7364_v24, %v6276_v3  ;;  %v7370_v24 = vld [vmem:[#allocation106_spill] sm:$0xff]  ;;  %vm7372_vm7 = vcmp.lt.s32.totalorder %v7264_v57, 15  ;;  %v2169_v50 = vmul.f32 %v7377_v32, %v5786_v20 }
 0x773   : > { %v6281_v5 = vadd.f32 %v2761_v17, %v2688_v23  ;;  %v1993_v23 = vmul.f32 %v7369_v27, %v1765_v19  ;;  %v2137_v19 = vmul.f32 %v7375_v16, %v1845_v13  ;;  %vm7376_vm1 = vmmov %vm7372_vm7 }
 0x775   : > { %7366 = vst [vmem:[#allocation53_spill] sm:$0xff] %v6281_v5  ;;  %v2081_v31 = vadd.f32 %v2065_v39, %v1993_v23 }
 0x778   : > { %3988 = vset.pattern.permute.xlu1 %v7341_v37  ;;  %v1869_v37 = vsel %vm7373_vm6, %v6199_v22, %v4522_v53  ;;  %v6322_v13 = vpop.permute.xlu0 %1782 }
 0x779   : > { %v6292_v15 = vpop.permute.xlu2 %2993  ;;  %v1779_v18 = vpop.permute.xlu1 %1778 }
 0x77a   : > { %v1789_v17 = vsel %vm891_vm10, %v7370_v24, %v1779_v18  ;;  %v1885_v18 = vsel %vm7376_vm1, %v1869_v37, 0.0  ;;  %vm7380_vm1 = vcmask 277504   ;;  %v2475_v37 = vsel %vm7381_vm12, %v5894_v6, %v2464_v14 }
 0x77b   : > { %v1805_v58 = vsel %vm7372_vm7, %v1789_v17, 0.0  ;;  %v2201_v33 = vmul.f32 %v7378_v49, %v1885_v18  ;;  %vm7382_vm7 = vcmp.ge.s32.totalorder %v7246_v38, 2  ;;  %vm7383_vm6 = vmmov %vm7380_vm1  ;;  %v7386_v18 = vld [vmem:[#allocation77_spill] sm:$0xff] }
 0x77c   : > { %v2105_v5 = vmul.f32 %v7374_v29, %v1805_v58 }
 0x77e   : > { %v2113_v56 = vadd.f32 %v2105_v5, %v2081_v31  ;;  %v1748_v5 = vsel %vm864_vm14, %v7193_v30, %v5854_v36 }
 0x780   : > { %v2145_v42 = vadd.f32 %v2137_v19, %v2113_v56  ;;  %v7379_v56 = vld [vmem:[#allocation110_spill] sm:$0xff] }
 0x781   : > { %v1823_v17 = vpop.permute.xlu2 %1822  ;;  %v1899_v28 = vpop.permute.xlu1 %1898  ;;  %v2427_v58 = vsel %vm7380_vm1, %v7304_v55, %v7379_v56  ;;  %vm7384_vm1 = vmmov %vm7381_vm12  ;;  %vm7387_vm12 = vcmask 261120  }
 0x782   : > { %v6315_v53 = vsel %vm914_vm8, %v6191_v47, %v1823_v17  ;;  %v2177_v39 = vadd.f32 %v2169_v50, %v2145_v42  ;;  %v1764_v47 = vsel %vm624_vm2, %v1748_v5, 0.0  ;;  %v1788_v42 = vsel %vm891_vm10, %v7274_v52, %v7370_v24 }
 0x783   : > { %v2443_v30 = vsel %vm7382_vm7, %v2427_v58, 0.0  ;;  %v2474_v14 = vsel %vm7384_vm1, %v7313_v7, %v5894_v6  ;;  %v2491_v52 = vsel %vm631_vm11, %v2475_v37, 0.0  ;;  %v2759_v17 = vsel %vm7387_vm12, %v7386_v18, %v6004_v45 }
 0x784   : > { %v6317_v23 = vadd.f32 %v2201_v33, %v2177_v39  ;;  %v7385_v33 = vld [vmem:[#allocation37_spill] sm:$0xff]  ;;  %vm7388_vm7 = vcmask 15360   ;;  %v7389_v39 = vld [vmem:[#allocation76_spill] sm:$0xff]  ;;  %v1828_v58 = vsel %vm914_vm8, %v7281_v48, %v7368_v54  ;;  %vm7391_vm1 = vcmp.lt.s32.totalorder %v7246_v38, 14  ;;  %v6380_v54 = vpop.permute.xlu0 %1902 }
 0x785   : > { %v2064_v19 = vsel %vm1006_vm13, %v7385_v33, %v5990_v34  ;;  %v2518_v6 = vsel %vm7388_vm7, %v5922_v25, %v6208_v26  ;;  %v1804_v34 = vsel %vm626_vm5, %v1788_v42, 0.0  ;;  %v2490_v37 = vsel %vm7391_vm1, %v2474_v14, 0.0 }
 0x786   : > { %v2104_v48 = vmul.f32 %v7374_v29, %v1804_v34  ;;  %vm7394_vm8 = vcmp.ge.s32.totalorder %v7246_v38, 2 }
 0x789   : > { %v6331_v31 = vpop.permute.xlu2 %1942  ;;  %v2417_v50 = vpop.permute.xlu1 %2416 }
 0x78a   : > { %v6341_v36 = vsel %vm983_vm9, %v6201_v59, %v6331_v31  ;;  %v2428_v55 = vsel %vm7383_vm6, %v7379_v56, %v2417_v50  ;;  %v1992_v59 = vmul.f32 %v7369_v27, %v1764_v47  ;;  %v2686_v56 = vmul.f32 %v7389_v39, %v2443_v30  ;;  %vm7390_vm6 = vmmov %vm7387_vm12  ;;  %v7392_v50 = vld [vmem:[#allocation78_spill] sm:$0xff] }
 0x78b   : > { %v2444_v24 = vsel %vm629_vm4, %v2428_v55, 0.0  ;;  %v2760_v27 = vsel %vm7390_vm6, %v6004_v45, %v2747_v9  ;;  %v2800_v26 = vmul.f32 %v7392_v50, %v2491_v52  ;;  %vm7393_vm12 = vmmov %vm7388_vm7  ;;  %v2534_v30 = vsel %vm629_vm4, %v2518_v6, 0.0 }
 0x78c   : > { %v2687_v5 = vmul.f32 %v7389_v39, %v2444_v24  ;;  %v2080_v47 = vadd.f32 %v2064_v19, %v1992_v59  ;;  %v2517_v42 = vsel %vm7393_vm12, %v7318_v62, %v5922_v25  ;;  %v2775_v33 = vadd.f32 %v2759_v17, %v2686_v56  ;;  %v7395_v59 = vld [vmem:[#allocation83_spill] sm:$0xff] }
 0x78d   : > { %v1844_v9 = vsel %vm624_vm2, %v1828_v58, 0.0  ;;  %v2799_v14 = vmul.f32 %v7392_v50, %v2490_v37  ;;  %v2533_v24 = vsel %vm7394_vm8, %v2517_v42, 0.0  ;;  %v2832_v18 = vmul.f32 %v7395_v59, %v2534_v30  ;;  %v7398_v50 = vld [vmem:[#allocation108_spill] sm:$0xff]  ;;  %v7401_v30 = vld [vmem:[#allocation89_spill] sm:$0xff] }
 0x78e   : > { %v2776_v55 = vadd.f32 %v2760_v27, %v2687_v5  ;;  %v2112_v25 = vadd.f32 %v2104_v48, %v2080_v47  ;;  %v2136_v6 = vmul.f32 %v7375_v16, %v1844_v9  ;;  %v2831_v5 = vmul.f32 %v7395_v59, %v2533_v24  ;;  %v7397_v27 = vld [vmem:[#allocation87_spill] sm:$0xff]  ;;  %v7403_v9 = vld [vmem:[#allocation46_spill] sm:$0xff] }
 0x78f   : > { %v2807_v29 = vadd.f32 %v2799_v14, %v2775_v33  ;;  %vm7396_vm7 = vcmask 1039360   ;;  %v2864_v37 = vmul.f32 %v7397_v27, %v5786_v20  ;;  %vm7399_vm6 = vcmask 924672  }
 0x790   : > { %v2808_v45 = vadd.f32 %v2800_v26, %v2776_v55  ;;  %v1868_v34 = vsel %vm7396_vm7, %v5896_v40, %v6199_v22  ;;  %v2144_v58 = vadd.f32 %v2136_v6, %v2112_v25  ;;  %v1908_v26 = vsel %vm7399_vm6, %v7398_v50, %v1899_v28  ;;  %v7400_v55 = vld [vmem:[#allocation90_spill] sm:$0xff]  ;;  %vm7402_vm1 = vmmov %vm7399_vm6  ;;  %v6417_v25 = vpop.permute.xlu0 %2510 }
 0x791   : > { %v2421_v19 = vpop.permute.xlu2 %2420  ;;  %v2550_v52 = vpop.permute.xlu1 %2549  ;;  %v2839_v47 = vadd.f32 %v2831_v5, %v2807_v29  ;;  %v2168_v16 = vmul.f32 %v7377_v32, %v7400_v55  ;;  %v1884_v42 = vsel %vm626_vm5, %v1868_v34, 0.0  ;;  %v1909_v22 = vsel %vm7402_vm1, %v1899_v28, %v4486_v21 }
 0x792   : > { %v2561_v17 = vsel %vm2555_vm15, %v2550_v52, %v5090_v1  ;;  %v2840_v39 = vadd.f32 %v2832_v18, %v2808_v45  ;;  %v2863_v48 = vmul.f32 %v7397_v27, %v7400_v55  ;;  %v6412_v14 = vmul.f32 %v7403_v9, %v5608_v44  ;;  %v7408_v27 = vld [vmem:[#allocation55_spill] sm:$0xff] }
 0x793   : > { %v2577_v56 = vsel %vm631_vm11, %v2561_v17, 0.0  ;;  %v2176_v24 = vadd.f32 %v2168_v16, %v2144_v58  ;;  %vm7404_vm12 = vcmask 769024   ;;  %v1924_v59 = vsel %vm624_vm2, %v1908_v26, 0.0  ;;  %v7409_v26 = vld [vmem:[#allocation20_spill] sm:$0xff] }
 0x794   : > { %v2872_v33 = vadd.f32 %v2864_v37, %v2840_v39  ;;  %v2896_v40 = vmul.f32 %v7401_v30, %v2577_v56  ;;  %v2647_v32 = vsel %vm7404_vm12, %v6226_v43, %v7347_v63  ;;  %v2200_v18 = vmul.f32 %v7378_v49, %v1884_v42  ;;  %v7407_v56 = vld [vmem:[#allocation57_spill] sm:$0xff]  ;;  %v7412_v42 = vld [vmem:[#allocation26_spill] sm:$0xff] }
 0x795   : > { %vm7405_vm8 = vcmask 277504   ;;  %v2871_v29 = vadd.f32 %v2863_v48, %v2839_v47  ;;  %vm7406_vm7 = vcmp.ge.s32.totalorder %v7264_v57, 1  ;;  %v2560_v5 = vsel %vm2555_vm15, %v5858_v2, %v2550_v52 }
 0x796   : > { %v2430_v17 = vsel %vm7405_vm8, %v6210_v51, %v2421_v19  ;;  %v1925_v39 = vsel %vm7406_vm7, %v1909_v22, 0.0  ;;  %v2904_v34 = vadd.f32 %v2896_v40, %v2872_v33  ;;  %v1948_v49 = vsel %vm983_vm9, %v5805_v11, %v6254_v61 }
 0x797   : > { %v1949_v51 = vsel %vm983_vm9, %v6254_v61, %v7194_v46  ;;  %v2663_v19 = vsel %vm631_vm11, %v2647_v32, 0.0  ;;  %v2232_v37 = vmul.f32 %v7408_v27, %v1924_v59  ;;  %v1791_v2 = vsel %vm891_vm10, %v6019_v8, %v6322_v13 }
 0x798   : > { %v2446_v52 = vsel %vm629_vm4, %v2430_v17, 0.0  ;;  %v2208_v50 = vadd.f32 %v2200_v18, %v2176_v24  ;;  %v3009_v61 = vsel %vm3003_vm3, %v6292_v15, %v7409_v26  ;;  %v2233_v55 = vmul.f32 %v7408_v27, %v1925_v39 }
 0x799   : > { %v2059_v20 = vpop.permute.xlu2 %2058  ;;  %v2593_v45 = vpop.permute.xlu1 %2592  ;;  %vm7410_vm6 = vcmp.lt.s32.totalorder %v7246_v38, 14  ;;  %v1964_v8 = vsel %vm626_vm5, %v1948_v49, 0.0  ;;  %vm7411_vm10 = vcmp.lt.s32.totalorder %v7264_v57, 15  ;;  %v3049_v33 = vmul.f32 %v7412_v42, %v2663_v19  ;;  %v7421_v49 = vld [vmem:[#allocation91_spill] sm:$0xff] }
 0x79a   : > { %v2604_v28 = vsel %vm2598_vm0, %v2593_v45, %v5118_v4  ;;  %v2603_v47 = vsel %vm2598_vm0, %v5898_v0, %v2593_v45  ;;  %v2576_v16 = vsel %vm7410_vm6, %v2560_v5, 0.0  ;;  %v1965_v13 = vsel %vm7411_vm10, %v1949_v51, 0.0  ;;  %vm7413_vm1 = vmmov %vm7411_vm10  ;;  %v7423_v51 = vld [vmem:[#allocation107_spill] sm:$0xff] }
 0x79b   : > { %v2620_v6 = vsel %vm629_vm4, %v2604_v28, 0.0  ;;  %v1807_v40 = vsel %vm7413_vm1, %v1791_v2, 0.0  ;;  %v2240_v22 = vadd.f32 %v2232_v37, %v2208_v50  ;;  %v2689_v48 = vmul.f32 %v7363_v35, %v2446_v52 }
 0x79c   : > { %v2928_v58 = vmul.f32 %v7407_v56, %v2620_v6  ;;  %vm7414_vm12 = vcmp.ge.s32.totalorder %v7246_v38, 2  ;;  %v2895_v59 = vmul.f32 %v7401_v30, %v2576_v16  ;;  %vm7415_vm8 = vcmask 261120   ;;  %v7419_v30 = vld [vmem:[#allocation61_spill] sm:$0xff] }
 0x79d   : > { %v2619_v45 = vsel %vm7414_vm12, %v2603_v47, 0.0  ;;  %vm7416_vm7 = vcmask 769024   ;;  %v2241_v35 = vadd.f32 %v2233_v55, %v6317_v23  ;;  %vm7417_vm6 = vcmp.ge.s32.totalorder %v7264_v57, 1  ;;  %v7428_v47 = vld [vmem:[#allocation64_spill] sm:$0xff]  ;;  %v7431_v16 = vld [vmem:[#allocation41_spill] sm:$0xff] }
 0x79e   : > { %v2936_v11 = vadd.f32 %v2928_v58, %v2904_v34  ;;  %v2646_v6 = vsel %vm7416_vm7, %v5953_v10, %v6226_v43  ;;  %vm7418_vm10 = vcmask 916480   ;;  %v2305_v34 = vpop.permute.xlu0 %2304  ;;  %v2927_v58 = vmul.f32 %v7407_v56, %v2619_v45  ;;  %v7422_v43 = vld [vmem:[#allocation36_spill] sm:$0xff]  ;;  %vm7425_vm12 = vmmov %vm7417_vm6 }
 0x79f   : > { %v2107_v23 = vmul.f32 %v7422_v43, %v1807_v40  ;;  %vm7424_vm1 = vcmask 924672   ;;  %v1847_v27 = vsel %vm7425_vm12, %v6315_v53, 0.0  ;;  %v2903_v2 = vadd.f32 %v2895_v59, %v2871_v29  ;;  %v7433_v29 = vld [vmem:[#allocation15_spill] sm:$0xff]  ;;  %v7437_v59 = vld [vmem:[#allocation12_spill] sm:$0xff] }
 0x7a0   : > { %v3025_v0 = vadd.f32 %v3009_v61, %v2936_v11  ;;  %v1910_v19 = vsel %vm7424_vm1, %v7423_v51, %v6380_v54  ;;  %v2352_v11 = vmul.f32 %v7428_v47, %v1964_v8  ;;  %v2353_v50 = vmul.f32 %v7428_v47, %v1965_v13  ;;  %v7429_v61 = vld [vmem:[#allocation16_spill] sm:$0xff] }
 0x7a1   : > { %v2753_v24 = vpop.permute.xlu2 %2752  ;;  %v1743_v32 = vpop.permute.xlu1 %1742  ;;  %v2171_v55 = vmul.f32 %v7403_v9, %v7429_v61  ;;  %vm7430_vm7 = vcmp.lt.s32.totalorder %v7246_v38, 14  ;;  %v3008_v8 = vsel %vm3003_vm3, %v7433_v29, %v6292_v15  ;;  %v7434_v9 = vld [vmem:[#allocation13_spill] sm:$0xff] }
 0x7a2   : > { %v2762_v28 = vsel %vm7415_vm8, %v6276_v3, %v2753_v24  ;;  %v1751_v18 = vsel %vm864_vm14, %v5992_v12, %v1743_v32  ;;  %v6470_v17 = vadd.f32 %v3049_v33, %v3025_v0  ;;  %v2312_v3 = vsel %vm7418_vm10, %v5920_v60, %v6304_v41  ;;  %vm7420_vm14 = vmmov %vm7418_vm10  ;;  %v7426_v60 = vld [vmem:[#allocation49_spill] sm:$0xff]  ;;  %v7435_v24 = vld [vmem:[#allocation102_spill] sm:$0xff] }
 0x7a3   : > { %v6476_v39 = vadd.f32 %v2762_v28, %v2689_v48  ;;  %v1767_v5 = vsel %vm7417_vm6, %v1751_v18, 0.0  ;;  %v2313_v12 = vsel %vm7420_vm14, %v6304_v41, %v7419_v30  ;;  %v2067_v37 = vsel %vm1006_vm13, %v7426_v60, %v2059_v20  ;;  %vm7427_vm8 = vmmov %vm7424_vm1 }
 0x7a4   : > { %v1995_v10 = vmul.f32 %v7421_v49, %v1767_v5  ;;  %v1911_v41 = vsel %vm7427_vm8, %v6380_v54, %v4486_v21  ;;  %v2328_v56 = vadd.f32 %v2312_v3, %v2240_v22  ;;  %v2329_v26 = vadd.f32 %v2313_v12, %v2241_v35  ;;  %vm7432_vm13 = vmmov %vm7417_vm6  ;;  %v7440_v5 = vld [vmem:[#allocation51_spill] sm:$0xff]  ;;  %v7441_v49 = vld [vmem:[#allocation56_spill] sm:$0xff] }
 0x7a5   : > { %v2662_v53 = vsel %vm7430_vm7, %v2646_v6, 0.0  ;;  %v2139_v20 = vmul.f32 %v7431_v16, %v1847_v27  ;;  %v2935_v33 = vadd.f32 %v2927_v58, %v2903_v2  ;;  %v1926_v21 = vsel %vm624_vm2, %v1910_v19, 0.0  ;;  %vm7445_vm1 = vmmov %vm7420_vm14 }
 0x7a6   : > { %v2083_v52 = vadd.f32 %v2067_v37, %v1995_v10  ;;  %v1927_v54 = vsel %vm7432_vm13, %v1911_v41, 0.0  ;;  %v2178_v40 = vadd.f32 %v6412_v14, %v7434_v9  ;;  %v2360_v48 = vadd.f32 %v2352_v11, %v2328_v56  ;;  %v7443_v56 = vld [vmem:[#allocation98_spill] sm:$0xff]  ;;  %v7446_v11 = vld [vmem:[#allocation17_spill] sm:$0xff]  ;;  %vm7450_vm8 = vmmov %vm7430_vm7 }
 0x7a7   : > { %vm7436_vm6 = vcmask 1039360   ;;  %v2361_v18 = vadd.f32 %v2353_v50, %v2329_v26  ;;  %v1951_v6 = vsel %vm983_vm9, %v6331_v31, %v7194_v46  ;;  %vm7439_vm10 = vcmp.lt.s32.totalorder %v7264_v57, 15 }
 0x7a8   : > { %v2115_v0 = vadd.f32 %v2107_v23, %v2083_v52  ;;  %vm7438_vm2 = vmmov %vm7436_vm6  ;;  %v3024_v12 = vadd.f32 %v3008_v8, %v2935_v33  ;;  %v3048_v58 = vmul.f32 %v7412_v42, %v2662_v53  ;;  %v2234_v10 = vmul.f32 %v7441_v49, %v1926_v21  ;;  %v2377_v23 = vpop.permute.xlu0 %2376  ;;  %v7444_v52 = vld [vmem:[#allocation63_spill] sm:$0xff] }
 0x7a9   : > { %v6514_v13 = vpop.permute.xlu2 %2983  ;;  %v1863_v22 = vpop.permute.xlu1 %1862  ;;  %v2235_v43 = vmul.f32 %v7441_v49, %v1927_v54  ;;  %v1966_v46 = vsel %vm626_vm5, %v6341_v36, 0.0  ;;  %v6537_v19 = vadd.f32 %v2377_v23, %v2360_v48  ;;  %vm7442_vm9 = vmmov %vm7439_vm10  ;;  %v6541_v60 = vadd.f32 %v2377_v23, %v2361_v18  ;;  %v7447_v48 = vld [vmem:[#allocation34_spill] sm:$0xff] }
 0x7aa   : > { %v2147_v45 = vadd.f32 %v2139_v20, %v2115_v0  ;;  %v1870_v32 = vsel %vm7436_vm6, %v7435_v24, %v1863_v22  ;;  %v1871_v28 = vsel %vm7438_vm2, %v1863_v22, %v7437_v59  ;;  %v1967_v27 = vsel %vm7442_vm9, %v1951_v6, 0.0  ;;  %vm7460_vm2 = vmmov %vm7450_vm8 }
 0x7ab   : > { %v1886_v15 = vsel %vm626_vm5, %v1870_v32, 0.0  ;;  %v1887_v14 = vsel %vm7439_vm10, %v1871_v28, 0.0  ;;  %v3056_v41 = vadd.f32 %v3048_v58, %v3024_v12  ;;  %v2314_v2 = vsel %vm7420_vm14, %v7443_v56, %v2305_v34  ;;  %v7451_v28 = vld [vmem:[#allocation31_spill] sm:$0xff]  ;;  %vm7479_vm14 = vmmov %vm7460_vm2 }
 0x7ac   : > { %v2179_v35 = vadd.f32 %v2171_v55, %v2147_v45  ;;  %v2202_v3 = vmul.f32 %v7440_v5, %v1886_v15  ;;  %v2203_v30 = vmul.f32 %v7440_v5, %v1887_v14  ;;  %v2315_v47 = vsel %vm7445_vm1, %v2305_v34, %v7444_v52  ;;  %v7454_v15 = vld [vmem:[#allocation70_spill] sm:$0xff] }
 0x7ad   : > { %v2354_v36 = vmul.f32 %v7446_v11, %v1966_v46  ;;  %v2396_v33 = vmax.f32 %v6537_v19, 0.0  ;;  %v2355_v0 = vmul.f32 %v7446_v11, %v1967_v27  ;;  %v2397_v21 = vmax.f32 %v6541_v60, 0.0  ;;  %v7459_v46 = vld [vmem:[#allocation45_spill] sm:$0xff] }
 0x7ae   : > { %v2210_v31 = vadd.f32 %v2202_v3, %v2178_v40  ;;  %v2211_v51 = vadd.f32 %v2203_v30, %v2179_v35  ;;  %vm7448_vm5 = vcmask 244736   ;;  %vm7452_vm7 = vcmask 15360   ;;  %v7456_v30 = vld [vmem:[#allocation53_spill] sm:$0xff] }
 0x7af   : > { %vm7449_vm12 = vmmov %vm7448_vm5  ;;  %v2519_v18 = vsel %vm7452_vm7, %v7318_v62, %v7451_v28  ;;  %vm7455_vm6 = vcmp.ge.s32.totalorder %v7246_v38, 2  ;;  %v7457_v62 = vld [vmem:[#allocation33_spill] sm:$0xff] }
 0x7b0   : > { %v2242_v37 = vadd.f32 %v2234_v10, %v2210_v31  ;;  %v2243_v42 = vadd.f32 %v2235_v43, %v2211_v51  ;;  %v2476_v24 = vsel %vm7449_vm12, %v7313_v7, %v7447_v48  ;;  %vm7453_vm13 = vmmov %vm7452_vm7  ;;  %v2535_v7 = vsel %vm7455_vm6, %v2519_v18, 0.0  ;;  %v7458_v10 = vld [vmem:[#allocation71_spill] sm:$0xff]  ;;  %v7470_v18 = vld [vmem:[#allocation25_spill] sm:$0xff] }
 0x7b1   : > { %v3070_v50 = vpop.permute.xlu2 %3069  ;;  %v2468_v26 = vpop.permute.xlu1 %2467  ;;  %v2492_v59 = vsel %vm7450_vm8, %v2476_v24, 0.0  ;;  %v2520_v6 = vsel %vm7453_vm13, %v7451_v28, %v6417_v25  ;;  %v2833_v43 = vmul.f32 %v7458_v10, %v2535_v7 }
 0x7b2   : > { %v2330_v55 = vadd.f32 %v2314_v2, %v2242_v37  ;;  %v2331_v53 = vadd.f32 %v2315_v47, %v2243_v42  ;;  %v6548_v16 = vadd.f32 %v3070_v50, %v3056_v41  ;;  %v6551_v20 = vadd.f32 %v3070_v50, %v6470_v17  ;;  %v7463_v47 = vld [vmem:[#allocation79_spill] sm:$0xff] }
 0x7b3   : > { %v2477_v45 = vsel %vm7448_vm5, %v7447_v48, %v2468_v26  ;;  %v2801_v5 = vmul.f32 %v7454_v15, %v2492_v59  ;;  %v2536_v3 = vsel %vm629_vm4, %v2520_v6, 0.0  ;;  %v7469_v59 = vld [vmem:[#allocation94_spill] sm:$0xff] }
 0x7b4   : > { %v3088_v54 = vmax.f32 %v6548_v16, 0.0  ;;  %v3089_v34 = vmax.f32 %v6551_v20, 0.0  ;;  %v2362_v29 = vadd.f32 %v2354_v36, %v2330_v55  ;;  %v2363_v8 = vadd.f32 %v2355_v0, %v2331_v53  ;;  %v7464_v55 = vld [vmem:[#allocation84_spill] sm:$0xff] }
 0x7b5   : > { %v2493_v32 = vsel %vm631_vm11, %v2477_v45, 0.0  ;;  %v2809_v12 = vadd.f32 %v2801_v5, %v7456_v30  ;;  %v2834_v23 = vmul.f32 %v7458_v10, %v2536_v3  ;;  %v7472_v30 = vld [vmem:[#allocation109_spill] sm:$0xff] }
 0x7b6   : > { %v3096_v9 = vadd.f32 %v3088_v54, %v2396_v33  ;;  %v3097_v17 = vadd.f32 %v3089_v34, %v2397_v21  ;;  %v2802_v14 = vmul.f32 %v7454_v15, %v2493_v32  ;;  %v2372_v15 = vpop.permute.xlu0 %2371 }
 0x7b7   : > { %v2841_v27 = vadd.f32 %v2833_v43, %v2809_v12  ;;  %v7475_v43 = vld [vmem:[#allocation59_spill] sm:$0xff] }
 0x7b8   : > { %v3106_v40 = vadd.f32 %v3097_v17, %v3096_v9  ;;  %v2810_v58 = vadd.f32 %v2802_v14, %v6476_v39  ;;  %v7471_v14 = vld [vmem:[#allocation22_spill] sm:$0xff] }
 0x7b9   : > { %v2554_v22 = vpop.permute.xlu1 %2553 }
 0x7ba   : > { %3107 = vadd.xlane.f32.xlu2 %v3106_v40  ;;  %v2562_v49 = vsel %vm2555_vm15, %v7457_v62, %v2554_v22  ;;  %v2563_v25 = vsel %vm2555_vm15, %v2554_v22, %v5090_v1  ;;  %v2842_v37 = vadd.f32 %v2834_v23, %v2810_v58  ;;  %v7461_v1 = vld [vmem:[#allocation72_spill] sm:$0xff]  ;;  %vm7462_vm15 = vmmov %vm7455_vm6 }
 0x7bb   : > { %v2578_v39 = vsel %vm7460_vm2, %v2562_v49, 0.0  ;;  %v2579_v42 = vsel %vm631_vm11, %v2563_v25, 0.0  ;;  %v2865_v56 = vmul.f32 %v7461_v1, %v5608_v44  ;;  %v2866_v2 = vmul.f32 %v7461_v1, %v7429_v61  ;;  %v7465_v44 = vld [vmem:[#allocation62_spill] sm:$0xff]  ;;  %v7474_v49 = vld [vmem:[#allocation93_spill] sm:$0xff]  ;;  %v7476_v23 = vld [vmem:[#allocation96_spill] sm:$0xff] }
 0x7bc   : > { %v2897_v11 = vmul.f32 %v7463_v47, %v2578_v39  ;;  %v2898_v36 = vmul.f32 %v7463_v47, %v2579_v42  ;;  %v6633_v25 = vadd.f32 %v7474_v49, %v2362_v29  ;;  %v6636_v10 = vadd.f32 %v7474_v49, %v2363_v8  ;;  %v2367_v39 = vpop.permute.xlu2 %2366 }
 0x7bd   : > { %v2873_v50 = vadd.f32 %v2865_v56, %v2841_v27  ;;  %v2874_v26 = vadd.f32 %v2866_v2, %v2842_v37  ;;  %v7478_v37 = vld [vmem:[#allocation43_spill] sm:$0xff]  ;;  %v7480_v2 = vld [vmem:[#allocation32_spill] sm:$0xff] }
 0x7be   : > { %v2658_v29 = vsel %vm7479_vm14, %v7478_v37, 0.0  ;;  %v2399_v56 = vmax.f32 %v6636_v10, 0.0 }
 0x7bf   : > { %v2905_v17 = vadd.f32 %v2897_v11, %v2873_v50  ;;  %v2906_v40 = vadd.f32 %v2898_v36, %v2874_v26  ;;  %v3062_v36 = vpop.permute.xlu0 %3061  ;;  %v7482_v26 = vld [vmem:[#allocation42_spill] sm:$0xff] }
 0x7c1   : > { %v2597_v35 = vpop.permute.xlu1 %2596 }
 0x7c2   : > { %v2605_v31 = vsel %vm2598_vm0, %v7459_v46, %v2597_v35  ;;  %v2606_v51 = vsel %vm2598_vm0, %v2597_v35, %v5118_v4  ;;  %vm7466_vm0 = vcmask 769024   ;;  %v3004_v46 = vsel %vm3003_vm3, %v7476_v23, %v7475_v43 }
 0x7c3   : > { %v2621_v52 = vsel %vm7462_vm15, %v2605_v31, 0.0  ;;  %v2622_v4 = vsel %vm629_vm4, %v2606_v51, 0.0  ;;  %vm7467_vm10 = vmmov %vm7466_vm0  ;;  %v3005_v31 = vsel %vm3003_vm3, %v7475_v43, %v6514_v13  ;;  %v7477_v51 = vld [vmem:[#allocation30_spill] sm:$0xff]  ;;  %v2398_v13 = vmax.f32 %v6633_v25, 0.0 }
 0x7c4   : > { %v2929_v53 = vmul.f32 %v7464_v55, %v2621_v52  ;;  %v2930_v0 = vmul.f32 %v7464_v55, %v2622_v4  ;;  %vm7468_vm4 = vmmov %vm7460_vm2  ;;  %v3020_v52 = vadd.f32 %v3004_v46, %v7480_v2  ;;  %v7481_v4 = vld [vmem:[#allocation47_spill] sm:$0xff]  ;;  %v6670_v55 = vadd.f32 %v2367_v39, %v7482_v26 }
 0x7c5   : > { %vm7473_vm9 = vmmov %vm7466_vm0  ;;  %v3021_v47 = vadd.f32 %v3005_v31, %v7481_v4  ;;  %v3117_v4 = vld [vmem:[%s6871_s16 + $0x8] sm:$0xff]  ;;  %v3123_v26 = vld [vmem:[%s6872_s17 + $0x18] sm:$0xff] }
 0x7c6   : > { %v2937_v45 = vadd.f32 %v2929_v53, %v2905_v17  ;;  %v2938_v24 = vadd.f32 %v2930_v0, %v2906_v40  ;;  %v2643_v12 = vsel %vm7473_vm9, %v7472_v30, %v7347_v63  ;;  %v7483_v53 = vld [vmem:[#allocation52_spill] sm:$0xff] }
 0x7c7   : > { %v2659_v8 = vsel %vm631_vm11, %v2643_v12, 0.0  ;;  %v6673_v0 = vadd.f32 %v2367_v39, %v7483_v53  ;;  %v3121_v53 = vld [vmem:[%s6872_s17 + $0x8] sm:$0xff] }
 0x7c9   : > { %v2640_v41 = vpop.permute.xlu1 %2639 }
 0x7ca   : > { %v2648_v9 = vsel %vm7466_vm0, %v7465_v44, %v2640_v41  ;;  %v2649_v61 = vsel %vm7467_vm10, %v2640_v41, %v7347_v63 }
 0x7cb   : > { %v2664_v22 = vsel %vm7468_vm4, %v2648_v9, 0.0  ;;  %v2665_v48 = vsel %vm631_vm11, %v2649_v61, 0.0  ;;  %vm7488_vm11 = vcmask 261120  }
 0x7cc   : > { %v3050_v35 = vmul.f32 %v7471_v14, %v2664_v22  ;;  %v3051_v5 = vmul.f32 %v7471_v14, %v2665_v48  ;;  %v2392_v22 = vmax.f32 %v6670_v55, 0.0  ;;  %v2393_v48 = vmax.f32 %v6673_v0, 0.0 }
 0x7d1   : > { %v3000_v32 = vpop.permute.xlu1 %2999 }
 0x7d2   : > { %v3010_v28 = vsel %vm3003_vm3, %v7469_v59, %v3000_v32  ;;  %v3011_v6 = vsel %vm3003_vm3, %v3000_v32, %v7470_v18  ;;  %v7484_v32 = vld [vmem:[#allocation28_spill] sm:$0xff]  ;;  %vm7489_vm3 = vmmov %vm7488_vm11 }
 0x7d3   : > { %v3026_v7 = vadd.f32 %v3010_v28, %v2937_v45  ;;  %v3027_v3 = vadd.f32 %v3011_v6, %v2938_v24  ;;  %v6684_v59 = vadd.f32 %v2372_v15, %v7484_v32  ;;  %v7485_v28 = vld [vmem:[#allocation14_spill] sm:$0xff]  ;;  %vm7490_vm1 = vmmov %vm7489_vm3  ;;  %v3120_v32 = vld [vmem:[%s6872_s17] sm:$0xff] }
 0x7d4   : > { %v6687_v18 = vadd.f32 %v2372_v15, %v7485_v28  ;;  %vm7491_vm5 = vmmov %vm7490_vm1 }
 0x7d5   : > { %v3058_v58 = vadd.f32 %v3050_v35, %v3026_v7  ;;  %v3059_v62 = vadd.f32 %v3051_v5, %v3027_v3  ;;  %v7486_v5 = vld [vmem:[#allocation21_spill] sm:$0xff]  ;;  %v7487_v3 = vld [vmem:[#allocation44_spill] sm:$0xff]  ;;  %v2394_v15 = vmax.f32 %v6684_v59, 0.0  ;;  %vm7492_vm12 = vmmov %vm7490_vm1 }
 0x7d6   : > { %vm7493_vm8 = vmmov %vm7490_vm1 }
 0x7d7   : > { %v6645_v27 = vadd.f32 %v7477_v51, %v3058_v58  ;;  %v6648_v63 = vadd.f32 %v7477_v51, %v3059_v62  ;;  %v2395_v58 = vmax.f32 %v6687_v18, 0.0  ;;  %vm7494_vm7 = vmmov %vm7490_vm1 }
 0x7d8   : > { %vm7495_vm13 = vmmov %vm7490_vm1 }
 0x7d9   : > { %v3090_v42 = vmax.f32 %v6645_v27, 0.0  ;;  %v3091_v41 = vmax.f32 %v6648_v63, 0.0  ;;  %v3030_v1 = vpop.permute.xlu1 %3029  ;;  %vm7496_vm6 = vmmov %vm7490_vm1 }
 0x7da   : > { %v3044_v11 = vmul.f32 %v3030_v1, %v2658_v29  ;;  %v3045_v38 = vmul.f32 %v3030_v1, %v2659_v8  ;;  %vm7497_vm2 = vmmov %vm7490_vm1 }
 0x7db   : > { %v3098_v57 = vadd.f32 %v3090_v42, %v2398_v13  ;;  %v3099_v50 = vadd.f32 %v3091_v41, %v2399_v56  ;;  %vm7498_vm15 = vmmov %vm7490_vm1 }
 0x7dc   : > { %v3052_v44 = vadd.f32 %v3044_v11, %v3020_v52  ;;  %v3053_v9 = vadd.f32 %v3045_v38, %v3021_v47  ;;  %v3116_v52 = vld [vmem:[%s6871_s16] sm:$0xff]  ;;  %v3118_v47 = vld [vmem:[%s6871_s16 + $0x10] sm:$0xff]  ;;  %v3119_v11 = vld [vmem:[%s6871_s16 + $0x18] sm:$0xff] }
 0x7dd   : > { %v3109_v61 = vadd.f32 %v3099_v50, %v3098_v57  ;;  %v3122_v50 = vld [vmem:[%s6872_s17 + $0x10] sm:$0xff]  ;;  %vm7499_vm0 = vmmov %vm7490_vm1 }
 0x7de   : > { %v6675_v17 = vadd.f32 %v3062_v36, %v3052_v44  ;;  %v6677_v40 = vadd.f32 %v3062_v36, %v3053_v9 }
 0x7df   : > { %3110 = vadd.xlane.f32.xlu1 %v3109_v61 }
 0x7e0   : > { %v3084_v45 = vmax.f32 %v6675_v17, 0.0  ;;  %v3085_v24 = vmax.f32 %v6677_v40, 0.0 }
 0x7e2   : > { %v3092_v6 = vadd.f32 %v3084_v45, %v2392_v22  ;;  %v3093_v14 = vadd.f32 %v3085_v24, %v2393_v48  ;;  %v3066_v35 = vpop.permute.xlu1 %3065 }
 0x7e3   : > { %v6698_v7 = vadd.f32 %v3066_v35, %v7486_v5  ;;  %v6701_v30 = vadd.f32 %v3066_v35, %v7487_v3 }
 0x7e4   : > { %v3100_v12 = vadd.f32 %v3093_v14, %v3092_v6 }
 0x7e5   : > { %v3086_v62 = vmax.f32 %v6698_v7, 0.0  ;;  %v3087_v49 = vmax.f32 %v6701_v30, 0.0 }
 0x7e6   : > { %3101 = vadd.xlane.f32.xlu2 %v3100_v12  ;;  %v3169_v12 = vld [vmem:[%s6873_s18] sm:$0xff] }
 0x7e7   : > { %v3094_v43 = vadd.f32 %v3086_v62, %v2394_v15  ;;  %v3095_v23 = vadd.f32 %v3087_v49, %v2395_v58 }
 0x7e9   : > { %v3103_v46 = vadd.f32 %v3095_v23, %v3094_v43  ;;  %v3170_v43 = vld [vmem:[%s6873_s18 + $0x8] sm:$0xff]  ;;  %v3171_v23 = vld [vmem:[%s6873_s18 + $0x10] sm:$0xff] }
 0x7eb   : > { %3104 = vadd.xlane.f32.xlu0 %v3103_v46  ;;  %v3172_v46 = vld [vmem:[%s6873_s18 + $0x18] sm:$0xff] }
 0x82d   : > { %v3108_v31 = vpop.xlane.xlu2 %3107 }
 0x82e   : > { %v3114_v29 = vmul.f32 0.00390625, %v3108_v31  ;;  %v3173_v31 = vld [vmem:[%s6873_s18 + $0x20] sm:$0xff] }
 0x852   : > { %v3111_v51 = vpop.xlane.xlu1 %3110 }
 0x853   : > { %v3115_v37 = vmul.f32 0.00390625, %v3111_v51  ;;  %v3174_v51 = vld [vmem:[%s6873_s18 + $0x28] sm:$0xff] }
 0x855   : > { %3148 = vmatpush.msra.mxu2 %v3115_v37  ;;  %v3175_v37 = vld [vmem:[%s6873_s18 + $0x30] sm:$0xff] }
 0x857   : > { %3149 = vmatpush.msra.mxu2 %v3114_v29  ;;  %v3176_v29 = vld [vmem:[%s6873_s18 + $0x38] sm:$0xff] }
 0x859   : > { %v3102_v8 = vpop.xlane.xlu2 %3101 }
 0x85a   : > { %v3112_v2 = vmul.f32 0.00390625, %v3102_v8 }
 0x85e   : > { %v3105_v39 = vpop.xlane.xlu0 %3104 }
 0x85f   : > { %v3113_v1 = vmul.f32 0.00390625, %v3105_v39 }
 0x861   : > { %3150 = vmatpush.msra.mxu2 %v3113_v1 }
 0x863   : > { %3151 = vmatpush.msra.mxu2 %v3112_v2 }
 0x864   : > { %3649 = vmatmul.msk.f32.vlgmr.msra.gmra.mxu2 %vm7488_vm11, %v3116_v52 }
 0x86c   : > { %3650 = vmatmul.msk.f32.gmra.mxu2 %vm7489_vm3, %v3117_v4 }
 0x874   : > { %3651 = vmatmul.msk.f32.gmra.mxu2 %vm7490_vm1, %v3118_v47 }
 0x87c   : > { %3652 = vmatmul.msk.f32.gmra.mxu2 %vm7491_vm5, %v3119_v11 }
 0x8e7   : > { %v3153_v38 = vpop.f32.mrf.mxu2 }
 0x8e8   : > { %v3154_v14 = vadd.f32 %v3153_v38, %v3120_v32 }
 0x8ea   : > { %v3165_v3 = vmax.f32 %v3154_v14, 0.0 }
 0x8ef   : > { %v3156_v36 = vpop.f32.mrf.mxu2 }
 0x8f0   : > { %v3157_v28 = vadd.f32 %v3156_v36, %v3121_v53 }
 0x8f2   : > { %v3166_v5 = vmax.f32 %v3157_v28, 0.0 }
 0x8f7   : > { %v3159_v57 = vpop.f32.mrf.mxu2 }
 0x8f8   : > { %v3160_v9 = vadd.f32 %v3159_v57, %v3122_v50 }
 0x8fa   : > { %v3167_v35 = vmax.f32 %v3160_v9, 0.0 }
 0x8ff   : > { %v3162_v44 = vpop.f32.mrf.mxu2 }
 0x900   : > { %v3163_v61 = vadd.f32 %v3162_v44, %v3123_v26 }
 0x902   : > { %v3168_v6 = vmax.f32 %v3163_v61, 0.0 }
 0x904   : > { %3213 = vmatpush.msrb.mxu3 %v3168_v6 }
 0x906   : > { %3214 = vmatpush.msrb.mxu3 %v3167_v35 }
 0x908   : > { %3215 = vmatpush.msrb.mxu3 %v3166_v5 }
 0x90a   : > { %3216 = vmatpush.msrb.mxu3 %v3165_v3 }
 0x90b   : > { %3653 = vmatmul.msk.f32.vlgmr.msrb.gmra.mxu3 %vm7492_vm12, %v3169_v12 }
 0x913   : > { %3654 = vmatmul.msk.f32.gmra.mxu3 %vm7493_vm8, %v3170_v43 }
 0x91b   : > { %3655 = vmatmul.msk.f32.gmra.mxu3 %vm7494_vm7, %v3171_v23 }
 0x923   : > { %3656 = vmatmul.msk.f32.gmra.mxu3 %vm7495_vm13, %v3172_v46 }
 0x92b   : > { %3657 = vmatmul.msk.f32.gmra.mxu3 %vm7496_vm6, %v3173_v31 }
 0x933   : > { %3658 = vmatmul.msk.f32.gmra.mxu3 %vm7497_vm2, %v3174_v51 }
 0x93b   : > { %3659 = vmatmul.msk.f32.gmra.mxu3 %vm7498_vm15, %v3175_v37 }
 0x943   : > { %3660 = vmatmul.msk.f32.gmra.mxu3 %vm7499_vm0, %v3176_v29 }
 0x98e   : > { %v3218_v8 = vpop.f32.mrf.mxu3 }
 0x996   : > { %v3221_v39 = vpop.f32.mrf.mxu3 }
 0x99e   : > { %v3224_v1 = vpop.f32.mrf.mxu3 }
 0x9a6   : > { %v3227_v2 = vpop.f32.mrf.mxu3 }
 0x9ae   : > { %v3230_v52 = vpop.f32.mrf.mxu3 }
 0x9af   : > { %v3242_v4 = vsub.f32 %v3230_v52, %v3218_v8 }
 0x9b1   : > { %v3246_v47 = vmul.f32 1.442695, %v3242_v4 }
 0x9b3   : > { %3990 = vpow2.f32 %v3246_v47 }
 0x9b6   : > { %v3233_v11 = vpop.f32.mrf.mxu3 }
 0x9b7   : > { %v3243_v38 = vsub.f32 %v3233_v11, %v3221_v39 }
 0x9b9   : > { %v3991_v36 = vpop.eup %3990  ;;  %v3248_v57 = vmul.f32 1.442695, %v3243_v38 }
 0x9ba   : > { %v3254_v50 = vadd.f32 1.0, %v3991_v36 }
 0x9bb   : > { %3992 = vpow2.f32 %v3248_v57 }
 0x9bc   : > { %3994 = vrcp.f32 %v3254_v50  ;;  %v3269_v35 = vand.u32 2147483648, %v3254_v50  ;;  %v3267_v12 = vand.u32 2147483647, %v3254_v50  ;;  %vm3263_vm4 = vweird.f32 %v3254_v50 }
 0x9be   : > { %v3236_v26 = vpop.f32.mrf.mxu3  ;;  %v3270_v37 = vor.u32 1.1754944e-38, %v3269_v35  ;;  %vm3268_vm14 = vcmp.eq.f32.partialorder %v3267_v12, 8.507059e+37 }
 0x9bf   : > { %v3244_v53 = vsub.f32 %v3236_v26, %v3224_v1 }
 0x9c1   : > { %v3993_v44 = vpop.eup %3992  ;;  %v3250_v9 = vmul.f32 1.442695, %v3244_v53 }
 0x9c2   : > { %v3995_v61 = vpop.eup %3994  ;;  %v3255_v32 = vadd.f32 1.0, %v3993_v44 }
 0x9c3   : > { %3996 = vpow2.f32 %v3250_v9  ;;  %v3259_v28 = vmul.f32 %v3995_v61, %v3254_v50  ;;  %vm3264_vm10 = vweird.f32 %v3995_v61 }
 0x9c4   : > { %3998 = vrcp.f32 %v3255_v32  ;;  %vm3265_vm9 = vmor %vm3263_vm4, %vm3264_vm10  ;;  %v3282_v4 = vand.u32 2147483647, %v3255_v32  ;;  %vm3278_vm3 = vweird.f32 %v3255_v32 }
 0x9c5   : > { %v3260_v6 = vsub.f32 1.0, %v3259_v28 }
 0x9c6   : > { %v3239_v14 = vpop.f32.mrf.mxu3  ;;  %vm3283_vm5 = vcmp.eq.f32.partialorder %v3282_v4, 8.507059e+37 }
 0x9c7   : > { %v3245_v5 = vsub.f32 %v3239_v14, %v3227_v2  ;;  %v3261_v3 = vmul.f32 %v3995_v61, %v3260_v6  ;;  %v3284_v2 = vand.u32 2147483648, %v3255_v32 }
 0x9c9   : > { %v3997_v43 = vpop.eup %3996  ;;  %v3252_v23 = vmul.f32 1.442695, %v3245_v5  ;;  %v3262_v46 = vadd.f32 %v3995_v61, %v3261_v3  ;;  %v3285_v57 = vor.u32 1.1754944e-38, %v3284_v2 }
 0x9ca   : > { %v3999_v31 = vpop.eup %3998  ;;  %v3256_v51 = vadd.f32 1.0, %v3997_v43 }
 0x9cb   : > { %4000 = vpow2.f32 %v3252_v23  ;;  %v3266_v29 = vsel %vm3265_vm9, %v3995_v61, %v3262_v46  ;;  %v3274_v8 = vmul.f32 %v3999_v31, %v3255_v32  ;;  %vm3279_vm11 = vweird.f32 %v3999_v31 }
 0x9cc   : > { %4002 = vrcp.f32 %v3256_v51  ;;  %v3271_v39 = vsel %vm3268_vm14, %v3270_v37, %v3266_v29  ;;  %vm3280_vm1 = vmor %vm3278_vm3, %vm3279_vm11  ;;  %v3299_v61 = vand.u32 2147483648, %v3256_v51  ;;  %v3297_v6 = vand.u32 2147483647, %v3256_v51 }
 0x9cd   : > { %3320 = vperm.xlu1 %3988, %v3271_v39   ;;  %v3275_v1 = vsub.f32 1.0, %v3274_v8  ;;  %vm3293_vm8 = vweird.f32 %v3256_v51  ;;  %v3346_v5 = vsub.f32 1.0, %v3271_v39 }
 0x9ce   : > { %v3300_v35 = vor.u32 1.1754944e-38, %v3299_v61  ;;  %vm3298_vm13 = vcmp.eq.f32.partialorder %v3297_v6, 8.507059e+37 }
 0x9cf   : > { %v3276_v52 = vmul.f32 %v3999_v31, %v3275_v1 }
 0x9d1   : > { %v4001_v47 = vpop.eup %4000  ;;  %v3277_v11 = vadd.f32 %v3999_v31, %v3276_v52 }
 0x9d2   : > { %v4003_v38 = vpop.eup %4002  ;;  %v3257_v36 = vadd.f32 1.0, %v4001_v47 }
 0x9d3   : > { %v3281_v50 = vsel %vm3280_vm1, %v3999_v31, %v3277_v11  ;;  %v3289_v26 = vmul.f32 %v4003_v38, %v3256_v51  ;;  %vm3294_vm12 = vweird.f32 %v4003_v38 }
 0x9d4   : > { %4004 = vrcp.f32 %v3257_v36  ;;  %v3286_v53 = vsel %vm3283_vm5, %v3285_v57, %v3281_v50  ;;  %vm3295_vm7 = vmor %vm3293_vm8, %vm3294_vm12  ;;  %v3314_v46 = vand.u32 2147483648, %v3257_v36  ;;  %v3312_v37 = vand.u32 2147483647, %v3257_v36 }
 0x9d5   : > { %3325 = vperm.xlu2 %3986, %v3286_v53   ;;  %v3347_v44 = vsub.f32 1.0, %v3286_v53  ;;  %v3290_v9 = vsub.f32 1.0, %v3289_v26  ;;  %vm3308_vm2 = vweird.f32 %v3257_v36 }
 0x9d6   : > { %v3315_v51 = vor.u32 1.1754944e-38, %v3314_v46  ;;  %vm3313_vm0 = vcmp.eq.f32.partialorder %v3312_v37, 8.507059e+37 }
 0x9d7   : > { %3357 = vperm.xlu1 %3988, %v3347_v44   ;;  %v3291_v28 = vmul.f32 %v4003_v38, %v3290_v9 }
 0x9d9   : > { %v3292_v14 = vadd.f32 %v4003_v38, %v3291_v28 }
 0x9da   : > { %v4005_v32 = vpop.eup %4004 }
 0x9db   : > { %v3296_v3 = vsel %vm3295_vm7, %v4003_v38, %v3292_v14  ;;  %v3304_v12 = vmul.f32 %v4005_v32, %v3257_v36  ;;  %vm3309_vm6 = vweird.f32 %v4005_v32 }
 0x9dc   : > { %v3301_v43 = vsel %vm3298_vm13, %v3300_v35, %v3296_v3  ;;  %vm3310_vm15 = vmor %vm3308_vm2, %vm3309_vm6 }
 0x9dd   : > { %3352 = vperm.xlu2 %3986, %v3346_v5   ;;  %3330 = vperm.xlu0 %3989, %v3301_v43   ;;  %v3305_v23 = vsub.f32 1.0, %v3304_v12  ;;  %v3348_v8 = vsub.f32 1.0, %v3301_v43 }
 0x9df   : > { %v3306_v31 = vmul.f32 %v4005_v32, %v3305_v23 }
 0x9e1   : > { %v3307_v29 = vadd.f32 %v4005_v32, %v3306_v31 }
 0x9e3   : > { %v3311_v1 = vsel %vm3310_vm15, %v4005_v32, %v3307_v29 }
 0x9e4   : > { %v3316_v39 = vsel %vm3313_vm0, %v3315_v51, %v3311_v1 }
 0x9e5   : > { %3362 = vperm.xlu2 %3986, %v3348_v8   ;;  %3335 = vperm.xlu1 %3988, %v3316_v39   ;;  %v3349_v2 = vsub.f32 1.0, %v3316_v39 }
 0x9ed   : > { %3367 = vperm.xlu1 %3988, %v3349_v2  }
 0xa2f   : > { %v3326_v52 = vpop.permute.xlu2 %3325 }
 0xa30   : > { %v3340_v40 = vmul.f32 %v3326_v52, %v2394_v15  ;;  %v3341_v55 = vmul.f32 %v3326_v52, %v2395_v58 }
 0xa37   : > { %v3353_v4 = vpop.permute.xlu2 %3352 }
 0xa38   : > { %v3370_v11 = vmul.f32 %v3353_v4, %v3084_v45  ;;  %v3371_v38 = vmul.f32 %v3353_v4, %v3085_v24 }
 0xa3f   : > { %v3321_v47 = vpop.permute.xlu1 %3320  ;;  %v3363_v24 = vpop.permute.xlu2 %3362 }
 0xa40   : > { %v3338_v36 = vmul.f32 %v3321_v47, %v2392_v22  ;;  %v3339_v57 = vmul.f32 %v3321_v47, %v2393_v48  ;;  %v3374_v18 = vmul.f32 %v3363_v24, %v3088_v54  ;;  %v3375_v15 = vmul.f32 %v3363_v24, %v3089_v34 }
 0xa42   : > { %v3378_v50 = vadd.f32 %v3370_v11, %v3338_v36  ;;  %v3379_v26 = vadd.f32 %v3371_v38, %v3339_v57 }
 0xa44   : > { %3386 = vst [vmem:[%s6786_s28] sm:$0xff] %v3378_v50 }
 0xa45   : > { %3387 = vst [vmem:[%s6786_s28 + $0x8] sm:$0xff] %v3379_v26 }
 0xa49   : > { %v3358_v17 = vpop.permute.xlu1 %3357 }
 0xa4a   : > { %v3372_v0 = vmul.f32 %v3358_v17, %v3086_v62  ;;  %v3373_v22 = vmul.f32 %v3358_v17, %v3087_v49 }
 0xa4c   : > { %v3380_v48 = vadd.f32 %v3372_v0, %v3340_v40  ;;  %v3381_v45 = vadd.f32 %v3373_v22, %v3341_v55 }
 0xa4e   : > { %3388 = vst [vmem:[%s6786_s28 + $0x10] sm:$0xff] %v3380_v48 }
 0xa4f   : > { %3389 = vst [vmem:[%s6786_s28 + $0x18] sm:$0xff] %v3381_v45  ;;  %v3331_v59 = vpop.permute.xlu0 %3330 }
 0xa50   : > { %v3342_v7 = vmul.f32 %v3331_v59, %v2396_v33  ;;  %v3343_v30 = vmul.f32 %v3331_v59, %v2397_v21 }
 0xa52   : > { %v3382_v58 = vadd.f32 %v3374_v18, %v3342_v7  ;;  %v3383_v62 = vadd.f32 %v3375_v15, %v3343_v30 }
 0xa54   : > { %3390 = vst [vmem:[%s6786_s28 + $0x20] sm:$0xff] %v3382_v58 }
 0xa55   : > { %3391 = vst [vmem:[%s6786_s28 + $0x28] sm:$0xff] %v3383_v62 }
 0xa57   : > { %v3336_v49 = vpop.permute.xlu1 %3335 }
 0xa58   : > { %v3344_v19 = vmul.f32 %v3336_v49, %v2398_v13  ;;  %v3345_v60 = vmul.f32 %v3336_v49, %v2399_v56 }
 0xa5f   : > { %v3368_v16 = vpop.permute.xlu1 %3367 }
 0xa60   : > { %v3376_v20 = vmul.f32 %v3368_v16, %v3090_v42  ;;  %v3377_v33 = vmul.f32 %v3368_v16, %v3091_v41 }
 0xa62   : > { %v3384_v21 = vadd.f32 %v3376_v20, %v3344_v19  ;;  %v3385_v54 = vadd.f32 %v3377_v33, %v3345_v60 }
 0xa64   : > { %3392 = vst [vmem:[%s6786_s28 + $0x30] sm:$0xff] %v3384_v21 }
 0xa65   : > { %3393 = vst [vmem:[%s6786_s28 + $0x38] sm:$0xff] %v3385_v54 }
 0xa66   : > { %4068 = shalt.err (!%p4065_p8)
}
 0xa67   : > { %s4147_s29 = smov 256  }
 0xa68   : > { %3684 = dma.vmem_to_hbm [thread:$0]  (%p4286_p5), %s3408_s27, 1024, %s3410_s1, %s3395_s25, %s4147_s29, %s4147_s29, %s7114_s24  }
 0xa69 PF: > { %p3696_p9 = scmp.ge.s32.totalorder %s4107_s21, 2  ;;  %s3424_s26 = sand.u32 1, %s4095_s0  }
 0xa6a   : > { %s3425_s5 = scalar_lea.sflag [#allocation4], %s3424_s26 }
 0xa6b   : > { %p3691_p10 = pnand %p3696_p9, %p4290_p6 }
 0xa6d   : > { %p3692_p11 = pneg %p3691_p10 }
 0xa6f   : > { %4090 = dma.done.wait (%p3692_p11), %s3425_s5, 1024  }
 0xa70   : > { %4092 = vsyncadd (%p3692_p11), %s3425_s5, 4294966272  ;;  %s7501_s21 = sld [smem:[#allocation9_spill]]  ;;  %s7504_s0 = smov %s4099_s30 }
 0xa71   : > { %s7502_s23 = sld [smem:[#allocation8_spill]] }
 0xa72   : > { %s7503_s20 = sld [smem:[#allocation10_spill]] }
 0xa76   : > { %p30_p12 = scmp.ge.s32.totalorder %s7501_s21, 4  }
 0xa77   : > { %s7505_s30 = smov %s7502_s23 }
 0xa78   :  { %32 = sbr.rel (!%p30_p12) target bundleno = 15 (0xf), region = 136 }
 0xa7d   :  { %3431 = vsyncpa [#allocation3], 1 }
 0xa7e   :  { %3433 = vsyncpa [#allocation3 + $0x1], 1 }
 0xa7f   :  { %3434 = vsyncpa [#allocation4], 1 }
 0xa80   :  { %3436 = vsyncpa [#allocation4 + $0x1], 1 }

</bundles_post_ra>
